<compile_context>
chip_gen: v7x
topology: tpu7x:2x2x1
jax: 0.10.0
libtpu: 0.0.40
codegen_flags: <defaults>
</compile_context>

<pallas_src>
import functools

import jax
import jax.numpy as jnp
import numpy as np
from jax.experimental import pallas as pl
from jax.experimental.pallas import tpu as pltpu

NEG_SLOPE = 0.01  # nn.LeakyReLU default


def _round_up(x, m):
    return (x + m - 1) // m * m


# ----------------------------------------------------------------------------
# Pallas kernel: tiled  y = x @ w + b  (+ optional LeakyReLU), K-accumulated.
# ----------------------------------------------------------------------------
def _mm_bias_act_kernel(x_ref, w_ref, b_ref, o_ref, acc_ref, *, apply_act):
    @pl.when(pl.program_id(2) == 0)
    def _init():
        acc_ref[...] = jnp.zeros_like(acc_ref)

    acc_ref[...] += jnp.dot(x_ref[...], w_ref[...],
                            preferred_element_type=jnp.float32)

    @pl.when(pl.program_id(2) == pl.num_programs(2) - 1)
    def _finalize():
        y = acc_ref[...] + b_ref[...]          # f32 epilogue
        if apply_act:
            y = jnp.where(y >= 0.0, y, NEG_SLOPE * y)
        o_ref[...] = y.astype(o_ref.dtype)


def matmul_bias_act(x, packed, apply_act):
    """x: (M, K) f32/bf16.  packed: pre-padded bf16 weights (Kp, Np), f32 bias
    (1, Np), true K/N.  Returns (M, N) f32."""
    M, K = x.shape
    Kp, Np = packed["w"].shape
    assert K == packed["k"], (K, packed["k"])

    Mp = _round_up(M, 128)
    tm = 256 if Mp % 256 == 0 else 128
    tk = 256 if Kp % 256 == 0 else 128
    tn = 128

    x_pad = jnp.pad(x.astype(jnp.bfloat16), ((0, Mp - M), (0, Kp - K)))

    grid = (Mp // tm, Np // tn, Kp // tk)
    kernel = functools.partial(_mm_bias_act_kernel, apply_act=apply_act)

    out = pl.pallas_call(
        kernel,
        out_shape=jax.ShapeDtypeStruct((Mp, Np), jnp.float32),
        grid_spec=pltpu.PrefetchScalarGridSpec(
            num_scalar_prefetch=0,
            grid=grid,
            in_specs=[
                pl.BlockSpec((tm, tk), lambda i, j, k: (i, k)),
                pl.BlockSpec((tk, tn), lambda i, j, k: (k, j)),
                pl.BlockSpec((1, tn), lambda i, j, k: (0, j)),
            ],
            out_specs=pl.BlockSpec((tm, tn), lambda i, j, k: (i, j)),
            scratch_shapes=[pltpu.VMEM((tm, tn), jnp.float32)],
        ),
        compiler_params=pltpu.CompilerParams(
            dimension_semantics=("parallel", "parallel", "arbitrary"),
            vmem_limit_bytes=32 * 1024 * 1024,
        ),
        cost_estimate=pl.CostEstimate(
            flops=2 * Mp * Np * Kp,
            transcendentals=0,
            bytes_accessed=Mp * Kp * 2 + Kp * Np * 2 + Mp * Np * 4,
        ),
    )(x_pad, packed["w"], packed["b"])

    return out[:M, :packed["n"]]


# ----------------------------------------------------------------------------
# Weight packing (done ONCE at init): matmul-ready layout, padded, bf16.
# ----------------------------------------------------------------------------
def _pack_mm_weights(w_mat, b, kh=None, kw=None):
    """w_mat: (K, N) f32, b: (N,) f32 -> padded bf16 weights / f32 bias."""
    K, N = w_mat.shape
    Kp, Np = _round_up(K, 128), _round_up(N, 128)
    w_pad = jnp.pad(w_mat.astype(jnp.bfloat16), ((0, Kp - K), (0, Np - N)))
    b_pad = jnp.pad(b.astype(jnp.float32).reshape(1, N), ((0, 0), (0, Np - N)))
    out = {"w": w_pad, "b": b_pad, "k": K, "n": N}
    if kh is not None:
        out["kh"], out["kw"] = kh, kw
    return out


# ----------------------------------------------------------------------------
# Conv / ConvTranspose: im2col layout glue (JAX) + Pallas matmul (hot path).
# ----------------------------------------------------------------------------
def _im2col(x_pad, kh, kw, stride):
    """x_pad: (B, Hp, Wp, C) -> (B, Hout, Wout, kh*kw*C), tap order (di,dj,c)."""
    B, Hp, Wp, C = x_pad.shape
    Hout = (Hp - kh) // stride + 1
    Wout = (Wp - kw) // stride + 1
    cols = []
    for di in range(kh):
        for dj in range(kw):
            sl = x_pad[:, di:di + stride * (Hout - 1) + 1:stride,
                          dj:dj + stride * (Wout - 1) + 1:stride, :]
            cols.append(sl)
    return jnp.concatenate(cols, axis=-1), Hout, Wout


def conv2d_nhwc(x, layer, stride, padding, act):
    kh, kw = layer["kh"], layer["kw"]
    B = x.shape[0]
    x_pad = jnp.pad(x, ((0, 0), (padding, padding), (padding, padding), (0, 0)))
    patches, Hout, Wout = _im2col(x_pad, kh, kw, stride)
    patches2d = patches.reshape(B * Hout * Wout, -1)
    y = matmul_bias_act(patches2d, layer, apply_act=act)
    return y.reshape(B, Hout, Wout, layer["n"])


def conv_transpose2d_nhwc(x, layer, stride, padding, output_padding, act):
    kh, kw = layer["kh"], layer["kw"]
    B, H, W, Cin = x.shape
    if stride > 1:  # zero-dilate the input
        xd = jnp.zeros((B, (H - 1) * stride + 1, (W - 1) * stride + 1, Cin), x.dtype)
        xd = xd.at[:, ::stride, ::stride, :].set(x)
    else:
        xd = x
    p_lo = kh - 1 - padding
    p_hi = kh - 1 - padding + output_padding
    x_pad = jnp.pad(xd, ((0, 0), (p_lo, p_hi), (p_lo, p_hi), (0, 0)))
    patches, Hout, Wout = _im2col(x_pad, kh, kw, stride=1)
    patches2d = patches.reshape(B * Hout * Wout, -1)
    y = matmul_bias_act(patches2d, layer, apply_act=act)
    return y.reshape(B, Hout, Wout, layer["n"])


# ----------------------------------------------------------------------------
# AEOld parameters + forward
# ----------------------------------------------------------------------------
HIDDEN_DIMS = [32, 32, 64]
KERNEL_SIZES = [4, 4, 4]
STRIDES = [1, 2, 2]
PADDINGS = [2, 1, 1]
OUTPUT_PADDINGS_REV = [0, 1, 0]


def compute_output_shapes(in_channels, img_width):
    shapes = [(in_channels, img_width, img_width)]
    for i in range(len(HIDDEN_DIMS)):
        _, hin, _ = shapes[-1]
        hout = int(np.floor((hin + 2 * PADDINGS[i] - KERNEL_SIZES[i]) / STRIDES[i] + 1))
        shapes.append((HIDDEN_DIMS[i], hout, hout))
    return shapes


def _uniform(key, shape, fan_in):
    bound = 1.0 / np.sqrt(fan_in)
    return jax.random.uniform(key, shape, jnp.float32, -bound, bound)


def init_params(key, in_channels, latent_dim, out_channels, img_width):
    shapes = compute_output_shapes(in_channels, img_width)
    last_shape = int(np.prod(shapes[-1]))
    params = {"enc": [], "dec": []}
    cin = in_channels
    for i in range(len(HIDDEN_DIMS)):
        key, kw_, kb_ = jax.random.split(key, 3)
        k = KERNEL_SIZES[i]
        fan_in = cin * k * k
        params["enc"].append({
            "w": _uniform(kw_, (HIDDEN_DIMS[i], cin, k, k), fan_in),
            "b": _uniform(kb_, (HIDDEN_DIMS[i],), fan_in),
        })
        cin = HIDDEN_DIMS[i]
    key, kw_, kb_ = jax.random.split(key, 3)
    params["fc_z"] = {"w": _uniform(kw_, (latent_dim, last_shape), last_shape),
                      "b": _uniform(kb_, (latent_dim,), last_shape)}
    key, kw_, kb_ = jax.random.split(key, 3)
    params["dec_in"] = {"w": _uniform(kw_, (last_shape, latent_dim), latent_dim),
                        "b": _uniform(kb_, (last_shape,), latent_dim)}
    # decoder conv-transpose layers (mirrors the PyTorch loop)
    dec_specs = []
    for i in range(1, len(HIDDEN_DIMS)):
        dec_specs.append((HIDDEN_DIMS[-i], HIDDEN_DIMS[-i - 1], KERNEL_SIZES[-i],
                          STRIDES[-i], PADDINGS[-i], OUTPUT_PADDINGS_REV[-i], True))
    dec_specs.append((HIDDEN_DIMS[0], out_channels, KERNEL_SIZES[0],
                      STRIDES[0], PADDINGS[0], OUTPUT_PADDINGS_REV[0], False))
    for (ci, co, k, s, p, op, act) in dec_specs:
        key, kw_, kb_ = jax.random.split(key, 3)
        fan_in = ci * k * k
        params["dec"].append({
            "w": _uniform(kw_, (ci, co, k, k), fan_in),  # ConvTranspose layout
            "b": _uniform(kb_, (co,), fan_in),
            "spec": (s, p, op, act),
        })
    return params, shapes


def prepare_params(params):
    """Pre-bake all weight re-layouts / padding / bf16 casts (once, at init)."""
    prepped = {"enc": [], "dec": []}
    for layer in params["enc"]:
        w = layer["w"]                                  # (Cout, Cin, kh, kw)
        Cout, Cin, kh, kw = w.shape
        w_mat = jnp.transpose(w, (2, 3, 1, 0)).reshape(kh * kw * Cin, Cout)
        prepped["enc"].append(_pack_mm_weights(w_mat, layer["b"], kh, kw))
    prepped["fc_z"] = _pack_mm_weights(params["fc_z"]["w"].T, params["fc_z"]["b"])
    prepped["dec_in"] = _pack_mm_weights(params["dec_in"]["w"].T, params["dec_in"]["b"])
    for layer in params["dec"]:
        w = layer["w"]                                  # (Cin, Cout, kh, kw)
        Cin, Cout, kh, kw = w.shape
        # equivalent forward-conv weight: flip spatially, swap channel dims
        w_eq = jnp.flip(w, axis=(2, 3)).transpose(2, 3, 0, 1).reshape(kh * kw * Cin, Cout)
        d = _pack_mm_weights(w_eq, layer["b"], kh, kw)
        d["spec"] = layer["spec"]
        prepped["dec"].append(d)
    return prepped


def aeold_forward(prepped, shapes, x_nchw):
    # ---- encode ----
    x = jnp.transpose(x_nchw, (0, 2, 3, 1))  # NCHW -> NHWC
    for i, layer in enumerate(prepped["enc"]):
        x = conv2d_nhwc(x, layer, stride=STRIDES[i], padding=PADDINGS[i], act=True)
    B = x.shape[0]
    flat = jnp.transpose(x, (0, 3, 1, 2)).reshape(B, -1)  # flatten in (C,H,W) order
    z = matmul_bias_act(flat, prepped["fc_z"], apply_act=False)
    # ---- decode ----
    h = matmul_bias_act(z, prepped["dec_in"], apply_act=False)
    c, hh, ww = shapes[-1]
    x = h.reshape(B, c, hh, ww).transpose(0, 2, 3, 1)  # view as NCHW, go NHWC
    for layer in prepped["dec"]:
        s, p, op, act = layer["spec"]
        x = conv_transpose2d_nhwc(x, layer, stride=s, padding=p,
                                  output_padding=op, act=act)
    return jnp.transpose(x, (0, 3, 1, 2))  # back to NCHW


if __name__ == "__main__":
    B, IN_CH, LATENT, OUT_CH, IMG_W = 2, 4, 8, 4, 16
    key = jax.random.PRNGKey(0)
    key, kx = jax.random.split(key)
    x = jax.random.normal(kx, (B, IN_CH, IMG_W, IMG_W), jnp.float32)

    params, shapes = init_params(key, IN_CH, LATENT, OUT_CH, IMG_W)
    prepped = prepare_params(params)

    fwd = jax.jit(lambda inp: aeold_forward(prepped, shapes, inp))
    recon = fwd(x)
    recon = jax.block_until_ready(recon)

    assert recon.shape == (B, OUT_CH, IMG_W, IMG_W), recon.shape
    assert recon.dtype == jnp.float32
    assert bool(jnp.all(jnp.isfinite(recon)))
    print("KERNEL_OK")
</pallas_src>

<mosaic_0001>
module attributes {stable_mosaic.version = 11 : i64} {
  func.func @_mm_bias_act_kernel(%arg0: i32, %arg1: i32, %arg2: i32, %arg3: memref<128x128xbf16, #tpu.memory_space<vmem>>, %arg4: memref<128x128xbf16, #tpu.memory_space<vmem>>, %arg5: memref<1x128xf32, #tpu.memory_space<vmem>>, %arg6: memref<128x128xf32, #tpu.memory_space<vmem>>, %arg7: memref<128x128xf32, #tpu.memory_space<vmem>>) attributes {dimension_semantics = [#tpu.dimension_semantics<parallel>, #tpu.dimension_semantics<parallel>, #tpu.dimension_semantics<arbitrary>], iteration_bounds = array<i64: 5, 1, 1>, scalar_prefetch = 0 : i64, scratch_operands = 1 : i64, tpu.core_type = #tpu.core_type<tc>, window_params = [{transform_indices = @transform_0, window_bounds = array<i64: 128, 128>}, {transform_indices = @transform_1, window_bounds = array<i64: 128, 128>}, {transform_indices = @transform_2, window_bounds = array<i64: 1, 128>}, {transform_indices = @transform_3, window_bounds = array<i64: 128, 128>}]} {
    %c0_i32 = arith.constant 0 : i32
    %0 = arith.cmpi eq, %arg2, %c0_i32 : i32
    %1 = arith.extui %0 : i1 to i32
    %c0_i32_0 = arith.constant 0 : i32
    %2 = arith.cmpi ne, %1, %c0_i32_0 : i32
    scf.if %2 {
      %cst_10 = arith.constant 0.000000e+00 : f32
      %12 = vector.broadcast %cst_10 : f32 to vector<128x128xf32>
      %c0_11 = arith.constant 0 : index
      %c0_12 = arith.constant 0 : index
      %13 = vector.load %arg7[%c0_11, %c0_12] : memref<128x128xf32, #tpu.memory_space<vmem>>, vector<128x128xf32>
      tpu.vector_store %arg7[%c0_11, %c0_12], %12 {strides = array<i32>} : memref<128x128xf32, #tpu.memory_space<vmem>>, vector<128x128xf32>,
    } else {
    }
    %c0 = arith.constant 0 : index
    %c0_1 = arith.constant 0 : index
    %3 = vector.load %arg7[%c0, %c0_1] : memref<128x128xf32, #tpu.memory_space<vmem>>, vector<128x128xf32>
    %c0_2 = arith.constant 0 : index
    %c0_3 = arith.constant 0 : index
    %4 = vector.load %arg3[%c0_2, %c0_3] : memref<128x128xbf16, #tpu.memory_space<vmem>>, vector<128x128xbf16>
    %c0_4 = arith.constant 0 : index
    %c0_5 = arith.constant 0 : index
    %5 = vector.load %arg4[%c0_4, %c0_5] : memref<128x128xbf16, #tpu.memory_space<vmem>>, vector<128x128xbf16>
    %cst = arith.constant dense<0.000000e+00> : vector<128x128xf32>
    %6 = tpu.matmul %4, %5, %cst {dimension_numbers = #tpu.dot_dimension_numbers<[1], [0], [0], [1], [0, 0, 1, 1], [], []>} : vector<128x128xbf16>, vector<128x128xbf16>, vector<128x128xf32> -> vector<128x128xf32>
    %7 = arith.addf %3, %6 : vector<128x128xf32>
    %c0_6 = arith.constant 0 : index
    %c0_7 = arith.constant 0 : index
    %8 = vector.load %arg7[%c0_6, %c0_7] : memref<128x128xf32, #tpu.memory_space<vmem>>, vector<128x128xf32>
    tpu.vector_store %arg7[%c0_6, %c0_7], %7 {strides = array<i32>} : memref<128x128xf32, #tpu.memory_space<vmem>>, vector<128x128xf32>,
    %c0_i32_8 = arith.constant 0 : i32
    %9 = arith.cmpi eq, %arg2, %c0_i32_8 : i32
    %10 = arith.extui %9 : i1 to i32
    %c0_i32_9 = arith.constant 0 : i32
    %11 = arith.cmpi ne, %10, %c0_i32_9 : i32
    scf.if %11 {
      %c0_10 = arith.constant 0 : index
      %c0_11 = arith.constant 0 : index
      %12 = vector.load %arg7[%c0_10, %c0_11] : memref<128x128xf32, #tpu.memory_space<vmem>>, vector<128x128xf32>
      %c0_12 = arith.constant 0 : index
      %c0_13 = arith.constant 0 : index
      %13 = vector.load %arg5[%c0_12, %c0_13] : memref<1x128xf32, #tpu.memory_space<vmem>>, vector<1x128xf32>
      %14 = vector.broadcast %13 : vector<1x128xf32> to vector<128x128xf32>
      %15 = arith.addf %12, %14 : vector<128x128xf32>
      %cst_14 = arith.constant 0.000000e+00 : f32
      %16 = vector.broadcast %cst_14 : f32 to vector<128x128xf32>
      %17 = arith.cmpf oge, %15, %16 : vector<128x128xf32>
      %cst_15 = arith.constant 0.00999999977 : f32
      %18 = vector.broadcast %cst_15 : f32 to vector<128x128xf32>
      %19 = arith.mulf %18, %15 : vector<128x128xf32>
      %20 = arith.select %17, %15, %19 : vector<128x128xi1>, vector<128x128xf32>
      %c0_16 = arith.constant 0 : index
      %c0_17 = arith.constant 0 : index
      %21 = vector.load %arg6[%c0_16, %c0_17] : memref<128x128xf32, #tpu.memory_space<vmem>>, vector<128x128xf32>
      tpu.vector_store %arg6[%c0_16, %c0_17], %20 {strides = array<i32>} : memref<128x128xf32, #tpu.memory_space<vmem>>, vector<128x128xf32>,
    } else {
    }
    return
  }
  func.func @transform_0(%arg0: i32, %arg1: i32, %arg2: i32) -> (i32, i32) {
    %c0_i32 = arith.constant 0 : i32
    return %arg0, %arg2 : i32, i32
  }
  func.func @transform_1(%arg0: i32, %arg1: i32, %arg2: i32) -> (i32, i32) {
    %c0_i32 = arith.constant 0 : i32
    return %arg2, %arg1 : i32, i32
  }
  func.func @transform_2(%arg0: i32, %arg1: i32, %arg2: i32) -> (i32, i32) {
    %c0_i32 = arith.constant 0 : i32
    %c0_i32_0 = arith.constant 0 : i32
    return %c0_i32, %arg1 : i32, i32
  }
  func.func @transform_3(%arg0: i32, %arg1: i32, %arg2: i32) -> (i32, i32) {
    %c0_i32 = arith.constant 0 : i32
    return %arg0, %arg1 : i32, i32
  }
}

module attributes {stable_mosaic.version = 11 : i64} {
  func.func @_mm_bias_act_kernel(%arg0: i32, %arg1: i32, %arg2: i32, %arg3: memref<128x256xbf16, #tpu.memory_space<vmem>>, %arg4: memref<256x128xbf16, #tpu.memory_space<vmem>>, %arg5: memref<1x128xf32, #tpu.memory_space<vmem>>, %arg6: memref<128x128xf32, #tpu.memory_space<vmem>>, %arg7: memref<128x128xf32, #tpu.memory_space<vmem>>) attributes {dimension_semantics = [#tpu.dimension_semantics<parallel>, #tpu.dimension_semantics<parallel>, #tpu.dimension_semantics<arbitrary>], iteration_bounds = array<i64: 1, 1, 2>, scalar_prefetch = 0 : i64, scratch_operands = 1 : i64, tpu.core_type = #tpu.core_type<tc>, window_params = [{transform_indices = @transform_0, window_bounds = array<i64: 128, 256>}, {transform_indices = @transform_1, window_bounds = array<i64: 256, 128>}, {transform_indices = @transform_2, window_bounds = array<i64: 1, 128>}, {transform_indices = @transform_3, window_bounds = array<i64: 128, 128>}]} {
    %c0_i32 = arith.constant 0 : i32
    %0 = arith.cmpi eq, %arg2, %c0_i32 : i32
    %1 = arith.extui %0 : i1 to i32
    %c0_i32_0 = arith.constant 0 : i32
    %2 = arith.cmpi ne, %1, %c0_i32_0 : i32
    scf.if %2 {
      %cst_9 = arith.constant 0.000000e+00 : f32
      %12 = vector.broadcast %cst_9 : f32 to vector<128x128xf32>
      %c0_10 = arith.constant 0 : index
      %c0_11 = arith.constant 0 : index
      %13 = vector.load %arg7[%c0_10, %c0_11] : memref<128x128xf32, #tpu.memory_space<vmem>>, vector<128x128xf32>
      tpu.vector_store %arg7[%c0_10, %c0_11], %12 {strides = array<i32>} : memref<128x128xf32, #tpu.memory_space<vmem>>, vector<128x128xf32>,
    } else {
    }
    %c0 = arith.constant 0 : index
    %c0_1 = arith.constant 0 : index
    %3 = vector.load %arg7[%c0, %c0_1] : memref<128x128xf32, #tpu.memory_space<vmem>>, vector<128x128xf32>
    %c0_2 = arith.constant 0 : index
    %c0_3 = arith.constant 0 : index
    %4 = vector.load %arg3[%c0_2, %c0_3] : memref<128x256xbf16, #tpu.memory_space<vmem>>, vector<128x256xbf16>
    %c0_4 = arith.constant 0 : index
    %c0_5 = arith.constant 0 : index
    %5 = vector.load %arg4[%c0_4, %c0_5] : memref<256x128xbf16, #tpu.memory_space<vmem>>, vector<256x128xbf16>
    %cst = arith.constant dense<0.000000e+00> : vector<128x128xf32>
    %6 = tpu.matmul %4, %5, %cst {dimension_numbers = #tpu.dot_dimension_numbers<[1], [0], [0], [1], [0, 0, 1, 1], [], []>} : vector<128x256xbf16>, vector<256x128xbf16>, vector<128x128xf32> -> vector<128x128xf32>
    %7 = arith.addf %3, %6 : vector<128x128xf32>
    %c0_6 = arith.constant 0 : index
    %c0_7 = arith.constant 0 : index
    %8 = vector.load %arg7[%c0_6, %c0_7] : memref<128x128xf32, #tpu.memory_space<vmem>>, vector<128x128xf32>
    tpu.vector_store %arg7[%c0_6, %c0_7], %7 {strides = array<i32>} : memref<128x128xf32, #tpu.memory_space<vmem>>, vector<128x128xf32>,
    %c1_i32 = arith.constant 1 : i32
    %9 = arith.cmpi eq, %arg2, %c1_i32 : i32
    %10 = arith.extui %9 : i1 to i32
    %c0_i32_8 = arith.constant 0 : i32
    %11 = arith.cmpi ne, %10, %c0_i32_8 : i32
    scf.if %11 {
      %c0_9 = arith.constant 0 : index
      %c0_10 = arith.constant 0 : index
      %12 = vector.load %arg7[%c0_9, %c0_10] : memref<128x128xf32, #tpu.memory_space<vmem>>, vector<128x128xf32>
      %c0_11 = arith.constant 0 : index
      %c0_12 = arith.constant 0 : index
      %13 = vector.load %arg5[%c0_11, %c0_12] : memref<1x128xf32, #tpu.memory_space<vmem>>, vector<1x128xf32>
      %14 = vector.broadcast %13 : vector<1x128xf32> to vector<128x128xf32>
      %15 = arith.addf %12, %14 : vector<128x128xf32>
      %cst_13 = arith.constant 0.000000e+00 : f32
      %16 = vector.broadcast %cst_13 : f32 to vector<128x128xf32>
      %17 = arith.cmpf oge, %15, %16 : vector<128x128xf32>
      %cst_14 = arith.constant 0.00999999977 : f32
      %18 = vector.broadcast %cst_14 : f32 to vector<128x128xf32>
      %19 = arith.mulf %18, %15 : vector<128x128xf32>
      %20 = arith.select %17, %15, %19 : vector<128x128xi1>, vector<128x128xf32>
      %c0_15 = arith.constant 0 : index
      %c0_16 = arith.constant 0 : index
      %21 = vector.load %arg6[%c0_15, %c0_16] : memref<128x128xf32, #tpu.memory_space<vmem>>, vector<128x128xf32>
      tpu.vector_store %arg6[%c0_15, %c0_16], %20 {strides = array<i32>} : memref<128x128xf32, #tpu.memory_space<vmem>>, vector<128x128xf32>,
    } else {
    }
    return
  }
  func.func @transform_0(%arg0: i32, %arg1: i32, %arg2: i32) -> (i32, i32) {
    %c0_i32 = arith.constant 0 : i32
    return %arg0, %arg2 : i32, i32
  }
  func.func @transform_1(%arg0: i32, %arg1: i32, %arg2: i32) -> (i32, i32) {
    %c0_i32 = arith.constant 0 : i32
    return %arg2, %arg1 : i32, i32
  }
  func.func @transform_2(%arg0: i32, %arg1: i32, %arg2: i32) -> (i32, i32) {
    %c0_i32 = arith.constant 0 : i32
    %c0_i32_0 = arith.constant 0 : i32
    return %c0_i32, %arg1 : i32, i32
  }
  func.func @transform_3(%arg0: i32, %arg1: i32, %arg2: i32) -> (i32, i32) {
    %c0_i32 = arith.constant 0 : i32
    return %arg0, %arg1 : i32, i32
  }
}

module attributes {stable_mosaic.version = 11 : i64} {
  func.func @_mm_bias_act_kernel(%arg0: i32, %arg1: i32, %arg2: i32, %arg3: memref<128x256xbf16, #tpu.memory_space<vmem>>, %arg4: memref<256x128xbf16, #tpu.memory_space<vmem>>, %arg5: memref<1x128xf32, #tpu.memory_space<vmem>>, %arg6: memref<128x128xf32, #tpu.memory_space<vmem>>, %arg7: memref<128x128xf32, #tpu.memory_space<vmem>>) attributes {dimension_semantics = [#tpu.dimension_semantics<parallel>, #tpu.dimension_semantics<parallel>, #tpu.dimension_semantics<arbitrary>], iteration_bounds = array<i64: 1, 1, 4>, scalar_prefetch = 0 : i64, scratch_operands = 1 : i64, tpu.core_type = #tpu.core_type<tc>, window_params = [{transform_indices = @transform_0, window_bounds = array<i64: 128, 256>}, {transform_indices = @transform_1, window_bounds = array<i64: 256, 128>}, {transform_indices = @transform_2, window_bounds = array<i64: 1, 128>}, {transform_indices = @transform_3, window_bounds = array<i64: 128, 128>}]} {
    %c0_i32 = arith.constant 0 : i32
    %0 = arith.cmpi eq, %arg2, %c0_i32 : i32
    %1 = arith.extui %0 : i1 to i32
    %c0_i32_0 = arith.constant 0 : i32
    %2 = arith.cmpi ne, %1, %c0_i32_0 : i32
    scf.if %2 {
      %cst_9 = arith.constant 0.000000e+00 : f32
      %12 = vector.broadcast %cst_9 : f32 to vector<128x128xf32>
      %c0_10 = arith.constant 0 : index
      %c0_11 = arith.constant 0 : index
      %13 = vector.load %arg7[%c0_10, %c0_11] : memref<128x128xf32, #tpu.memory_space<vmem>>, vector<128x128xf32>
      tpu.vector_store %arg7[%c0_10, %c0_11], %12 {strides = array<i32>} : memref<128x128xf32, #tpu.memory_space<vmem>>, vector<128x128xf32>,
    } else {
    }
    %c0 = arith.constant 0 : index
    %c0_1 = arith.constant 0 : index
    %3 = vector.load %arg7[%c0, %c0_1] : memref<128x128xf32, #tpu.memory_space<vmem>>, vector<128x128xf32>
    %c0_2 = arith.constant 0 : index
    %c0_3 = arith.constant 0 : index
    %4 = vector.load %arg3[%c0_2, %c0_3] : memref<128x256xbf16, #tpu.memory_space<vmem>>, vector<128x256xbf16>
    %c0_4 = arith.constant 0 : index
    %c0_5 = arith.constant 0 : index
    %5 = vector.load %arg4[%c0_4, %c0_5] : memref<256x128xbf16, #tpu.memory_space<vmem>>, vector<256x128xbf16>
    %cst = arith.constant dense<0.000000e+00> : vector<128x128xf32>
    %6 = tpu.matmul %4, %5, %cst {dimension_numbers = #tpu.dot_dimension_numbers<[1], [0], [0], [1], [0, 0, 1, 1], [], []>} : vector<128x256xbf16>, vector<256x128xbf16>, vector<128x128xf32> -> vector<128x128xf32>
    %7 = arith.addf %3, %6 : vector<128x128xf32>
    %c0_6 = arith.constant 0 : index
    %c0_7 = arith.constant 0 : index
    %8 = vector.load %arg7[%c0_6, %c0_7] : memref<128x128xf32, #tpu.memory_space<vmem>>, vector<128x128xf32>
    tpu.vector_store %arg7[%c0_6, %c0_7], %7 {strides = array<i32>} : memref<128x128xf32, #tpu.memory_space<vmem>>, vector<128x128xf32>,
    %c3_i32 = arith.constant 3 : i32
    %9 = arith.cmpi eq, %arg2, %c3_i32 : i32
    %10 = arith.extui %9 : i1 to i32
    %c0_i32_8 = arith.constant 0 : i32
    %11 = arith.cmpi ne, %10, %c0_i32_8 : i32
    scf.if %11 {
      %c0_9 = arith.constant 0 : index
      %c0_10 = arith.constant 0 : index
      %12 = vector.load %arg7[%c0_9, %c0_10] : memref<128x128xf32, #tpu.memory_space<vmem>>, vector<128x128xf32>
      %c0_11 = arith.constant 0 : index
      %c0_12 = arith.constant 0 : index
      %13 = vector.load %arg5[%c0_11, %c0_12] : memref<1x128xf32, #tpu.memory_space<vmem>>, vector<1x128xf32>
      %14 = vector.broadcast %13 : vector<1x128xf32> to vector<128x128xf32>
      %15 = arith.addf %12, %14 : vector<128x128xf32>
      %c0_13 = arith.constant 0 : index
      %c0_14 = arith.constant 0 : index
      %16 = vector.load %arg6[%c0_13, %c0_14] : memref<128x128xf32, #tpu.memory_space<vmem>>, vector<128x128xf32>
      tpu.vector_store %arg6[%c0_13, %c0_14], %15 {strides = array<i32>} : memref<128x128xf32, #tpu.memory_space<vmem>>, vector<128x128xf32>,
    } else {
    }
    return
  }
  func.func @transform_0(%arg0: i32, %arg1: i32, %arg2: i32) -> (i32, i32) {
    %c0_i32 = arith.constant 0 : i32
    return %arg0, %arg2 : i32, i32
  }
  func.func @transform_1(%arg0: i32, %arg1: i32, %arg2: i32) -> (i32, i32) {
    %c0_i32 = arith.constant 0 : i32
    return %arg2, %arg1 : i32, i32
  }
  func.func @transform_2(%arg0: i32, %arg1: i32, %arg2: i32) -> (i32, i32) {
    %c0_i32 = arith.constant 0 : i32
    %c0_i32_0 = arith.constant 0 : i32
    return %c0_i32, %arg1 : i32, i32
  }
  func.func @transform_3(%arg0: i32, %arg1: i32, %arg2: i32) -> (i32, i32) {
    %c0_i32 = arith.constant 0 : i32
    return %arg0, %arg1 : i32, i32
  }
}

module attributes {stable_mosaic.version = 11 : i64} {
  func.func @_mm_bias_act_kernel(%arg0: i32, %arg1: i32, %arg2: i32, %arg3: memref<128x128xbf16, #tpu.memory_space<vmem>>, %arg4: memref<128x128xbf16, #tpu.memory_space<vmem>>, %arg5: memref<1x128xf32, #tpu.memory_space<vmem>>, %arg6: memref<128x128xf32, #tpu.memory_space<vmem>>, %arg7: memref<128x128xf32, #tpu.memory_space<vmem>>) attributes {dimension_semantics = [#tpu.dimension_semantics<parallel>, #tpu.dimension_semantics<parallel>, #tpu.dimension_semantics<arbitrary>], iteration_bounds = array<i64: 1, 8, 1>, scalar_prefetch = 0 : i64, scratch_operands = 1 : i64, tpu.core_type = #tpu.core_type<tc>, window_params = [{transform_indices = @transform_0, window_bounds = array<i64: 128, 128>}, {transform_indices = @transform_1, window_bounds = array<i64: 128, 128>}, {transform_indices = @transform_2, window_bounds = array<i64: 1, 128>}, {transform_indices = @transform_3, window_bounds = array<i64: 128, 128>}]} {
    %c0_i32 = arith.constant 0 : i32
    %0 = arith.cmpi eq, %arg2, %c0_i32 : i32
    %1 = arith.extui %0 : i1 to i32
    %c0_i32_0 = arith.constant 0 : i32
    %2 = arith.cmpi ne, %1, %c0_i32_0 : i32
    scf.if %2 {
      %cst_10 = arith.constant 0.000000e+00 : f32
      %12 = vector.broadcast %cst_10 : f32 to vector<128x128xf32>
      %c0_11 = arith.constant 0 : index
      %c0_12 = arith.constant 0 : index
      %13 = vector.load %arg7[%c0_11, %c0_12] : memref<128x128xf32, #tpu.memory_space<vmem>>, vector<128x128xf32>
      tpu.vector_store %arg7[%c0_11, %c0_12], %12 {strides = array<i32>} : memref<128x128xf32, #tpu.memory_space<vmem>>, vector<128x128xf32>,
    } else {
    }
    %c0 = arith.constant 0 : index
    %c0_1 = arith.constant 0 : index
    %3 = vector.load %arg7[%c0, %c0_1] : memref<128x128xf32, #tpu.memory_space<vmem>>, vector<128x128xf32>
    %c0_2 = arith.constant 0 : index
    %c0_3 = arith.constant 0 : index
    %4 = vector.load %arg3[%c0_2, %c0_3] : memref<128x128xbf16, #tpu.memory_space<vmem>>, vector<128x128xbf16>
    %c0_4 = arith.constant 0 : index
    %c0_5 = arith.constant 0 : index
    %5 = vector.load %arg4[%c0_4, %c0_5] : memref<128x128xbf16, #tpu.memory_space<vmem>>, vector<128x128xbf16>
    %cst = arith.constant dense<0.000000e+00> : vector<128x128xf32>
    %6 = tpu.matmul %4, %5, %cst {dimension_numbers = #tpu.dot_dimension_numbers<[1], [0], [0], [1], [0, 0, 1, 1], [], []>} : vector<128x128xbf16>, vector<128x128xbf16>, vector<128x128xf32> -> vector<128x128xf32>
    %7 = arith.addf %3, %6 : vector<128x128xf32>
    %c0_6 = arith.constant 0 : index
    %c0_7 = arith.constant 0 : index
    %8 = vector.load %arg7[%c0_6, %c0_7] : memref<128x128xf32, #tpu.memory_space<vmem>>, vector<128x128xf32>
    tpu.vector_store %arg7[%c0_6, %c0_7], %7 {strides = array<i32>} : memref<128x128xf32, #tpu.memory_space<vmem>>, vector<128x128xf32>,
    %c0_i32_8 = arith.constant 0 : i32
    %9 = arith.cmpi eq, %arg2, %c0_i32_8 : i32
    %10 = arith.extui %9 : i1 to i32
    %c0_i32_9 = arith.constant 0 : i32
    %11 = arith.cmpi ne, %10, %c0_i32_9 : i32
    scf.if %11 {
      %c0_10 = arith.constant 0 : index
      %c0_11 = arith.constant 0 : index
      %12 = vector.load %arg7[%c0_10, %c0_11] : memref<128x128xf32, #tpu.memory_space<vmem>>, vector<128x128xf32>
      %c0_12 = arith.constant 0 : index
      %c0_13 = arith.constant 0 : index
      %13 = vector.load %arg5[%c0_12, %c0_13] : memref<1x128xf32, #tpu.memory_space<vmem>>, vector<1x128xf32>
      %14 = vector.broadcast %13 : vector<1x128xf32> to vector<128x128xf32>
      %15 = arith.addf %12, %14 : vector<128x128xf32>
      %c0_14 = arith.constant 0 : index
      %c0_15 = arith.constant 0 : index
      %16 = vector.load %arg6[%c0_14, %c0_15] : memref<128x128xf32, #tpu.memory_space<vmem>>, vector<128x128xf32>
      tpu.vector_store %arg6[%c0_14, %c0_15], %15 {strides = array<i32>} : memref<128x128xf32, #tpu.memory_space<vmem>>, vector<128x128xf32>,
    } else {
    }
    return
  }
  func.func @transform_0(%arg0: i32, %arg1: i32, %arg2: i32) -> (i32, i32) {
    %c0_i32 = arith.constant 0 : i32
    return %arg0, %arg2 : i32, i32
  }
  func.func @transform_1(%arg0: i32, %arg1: i32, %arg2: i32) -> (i32, i32) {
    %c0_i32 = arith.constant 0 : i32
    return %arg2, %arg1 : i32, i32
  }
  func.func @transform_2(%arg0: i32, %arg1: i32, %arg2: i32) -> (i32, i32) {
    %c0_i32 = arith.constant 0 : i32
    %c0_i32_0 = arith.constant 0 : i32
    return %c0_i32, %arg1 : i32, i32
  }
  func.func @transform_3(%arg0: i32, %arg1: i32, %arg2: i32) -> (i32, i32) {
    %c0_i32 = arith.constant 0 : i32
    return %arg0, %arg1 : i32, i32
  }
}

module attributes {stable_mosaic.version = 11 : i64} {
  func.func @_mm_bias_act_kernel(%arg0: i32, %arg1: i32, %arg2: i32, %arg3: memref<128x256xbf16, #tpu.memory_space<vmem>>, %arg4: memref<256x128xbf16, #tpu.memory_space<vmem>>, %arg5: memref<1x128xf32, #tpu.memory_space<vmem>>, %arg6: memref<128x128xf32, #tpu.memory_space<vmem>>, %arg7: memref<128x128xf32, #tpu.memory_space<vmem>>) attributes {dimension_semantics = [#tpu.dimension_semantics<parallel>, #tpu.dimension_semantics<parallel>, #tpu.dimension_semantics<arbitrary>], iteration_bounds = array<i64: 1, 1, 4>, scalar_prefetch = 0 : i64, scratch_operands = 1 : i64, tpu.core_type = #tpu.core_type<tc>, window_params = [{transform_indices = @transform_0, window_bounds = array<i64: 128, 256>}, {transform_indices = @transform_1, window_bounds = array<i64: 256, 128>}, {transform_indices = @transform_2, window_bounds = array<i64: 1, 128>}, {transform_indices = @transform_3, window_bounds = array<i64: 128, 128>}]} {
    %c0_i32 = arith.constant 0 : i32
    %0 = arith.cmpi eq, %arg2, %c0_i32 : i32
    %1 = arith.extui %0 : i1 to i32
    %c0_i32_0 = arith.constant 0 : i32
    %2 = arith.cmpi ne, %1, %c0_i32_0 : i32
    scf.if %2 {
      %cst_9 = arith.constant 0.000000e+00 : f32
      %12 = vector.broadcast %cst_9 : f32 to vector<128x128xf32>
      %c0_10 = arith.constant 0 : index
      %c0_11 = arith.constant 0 : index
      %13 = vector.load %arg7[%c0_10, %c0_11] : memref<128x128xf32, #tpu.memory_space<vmem>>, vector<128x128xf32>
      tpu.vector_store %arg7[%c0_10, %c0_11], %12 {strides = array<i32>} : memref<128x128xf32, #tpu.memory_space<vmem>>, vector<128x128xf32>,
    } else {
    }
    %c0 = arith.constant 0 : index
    %c0_1 = arith.constant 0 : index
    %3 = vector.load %arg7[%c0, %c0_1] : memref<128x128xf32, #tpu.memory_space<vmem>>, vector<128x128xf32>
    %c0_2 = arith.constant 0 : index
    %c0_3 = arith.constant 0 : index
    %4 = vector.load %arg3[%c0_2, %c0_3] : memref<128x256xbf16, #tpu.memory_space<vmem>>, vector<128x256xbf16>
    %c0_4 = arith.constant 0 : index
    %c0_5 = arith.constant 0 : index
    %5 = vector.load %arg4[%c0_4, %c0_5] : memref<256x128xbf16, #tpu.memory_space<vmem>>, vector<256x128xbf16>
    %cst = arith.constant dense<0.000000e+00> : vector<128x128xf32>
    %6 = tpu.matmul %4, %5, %cst {dimension_numbers = #tpu.dot_dimension_numbers<[1], [0], [0], [1], [0, 0, 1, 1], [], []>} : vector<128x256xbf16>, vector<256x128xbf16>, vector<128x128xf32> -> vector<128x128xf32>
    %7 = arith.addf %3, %6 : vector<128x128xf32>
    %c0_6 = arith.constant 0 : index
    %c0_7 = arith.constant 0 : index
    %8 = vector.load %arg7[%c0_6, %c0_7] : memref<128x128xf32, #tpu.memory_space<vmem>>, vector<128x128xf32>
    tpu.vector_store %arg7[%c0_6, %c0_7], %7 {strides = array<i32>} : memref<128x128xf32, #tpu.memory_space<vmem>>, vector<128x128xf32>,
    %c3_i32 = arith.constant 3 : i32
    %9 = arith.cmpi eq, %arg2, %c3_i32 : i32
    %10 = arith.extui %9 : i1 to i32
    %c0_i32_8 = arith.constant 0 : i32
    %11 = arith.cmpi ne, %10, %c0_i32_8 : i32
    scf.if %11 {
      %c0_9 = arith.constant 0 : index
      %c0_10 = arith.constant 0 : index
      %12 = vector.load %arg7[%c0_9, %c0_10] : memref<128x128xf32, #tpu.memory_space<vmem>>, vector<128x128xf32>
      %c0_11 = arith.constant 0 : index
      %c0_12 = arith.constant 0 : index
      %13 = vector.load %arg5[%c0_11, %c0_12] : memref<1x128xf32, #tpu.memory_space<vmem>>, vector<1x128xf32>
      %14 = vector.broadcast %13 : vector<1x128xf32> to vector<128x128xf32>
      %15 = arith.addf %12, %14 : vector<128x128xf32>
      %cst_13 = arith.constant 0.000000e+00 : f32
      %16 = vector.broadcast %cst_13 : f32 to vector<128x128xf32>
      %17 = arith.cmpf oge, %15, %16 : vector<128x128xf32>
      %cst_14 = arith.constant 0.00999999977 : f32
      %18 = vector.broadcast %cst_14 : f32 to vector<128x128xf32>
      %19 = arith.mulf %18, %15 : vector<128x128xf32>
      %20 = arith.select %17, %15, %19 : vector<128x128xi1>, vector<128x128xf32>
      %c0_15 = arith.constant 0 : index
      %c0_16 = arith.constant 0 : index
      %21 = vector.load %arg6[%c0_15, %c0_16] : memref<128x128xf32, #tpu.memory_space<vmem>>, vector<128x128xf32>
      tpu.vector_store %arg6[%c0_15, %c0_16], %20 {strides = array<i32>} : memref<128x128xf32, #tpu.memory_space<vmem>>, vector<128x128xf32>,
    } else {
    }
    return
  }
  func.func @transform_0(%arg0: i32, %arg1: i32, %arg2: i32) -> (i32, i32) {
    %c0_i32 = arith.constant 0 : i32
    return %arg0, %arg2 : i32, i32
  }
  func.func @transform_1(%arg0: i32, %arg1: i32, %arg2: i32) -> (i32, i32) {
    %c0_i32 = arith.constant 0 : i32
    return %arg2, %arg1 : i32, i32
  }
  func.func @transform_2(%arg0: i32, %arg1: i32, %arg2: i32) -> (i32, i32) {
    %c0_i32 = arith.constant 0 : i32
    %c0_i32_0 = arith.constant 0 : i32
    return %c0_i32, %arg1 : i32, i32
  }
  func.func @transform_3(%arg0: i32, %arg1: i32, %arg2: i32) -> (i32, i32) {
    %c0_i32 = arith.constant 0 : i32
    return %arg0, %arg1 : i32, i32
  }
}

module attributes {stable_mosaic.version = 11 : i64} {
  func.func @_mm_bias_act_kernel(%arg0: i32, %arg1: i32, %arg2: i32, %arg3: memref<128x256xbf16, #tpu.memory_space<vmem>>, %arg4: memref<256x128xbf16, #tpu.memory_space<vmem>>, %arg5: memref<1x128xf32, #tpu.memory_space<vmem>>, %arg6: memref<128x128xf32, #tpu.memory_space<vmem>>, %arg7: memref<128x128xf32, #tpu.memory_space<vmem>>) attributes {dimension_semantics = [#tpu.dimension_semantics<parallel>, #tpu.dimension_semantics<parallel>, #tpu.dimension_semantics<arbitrary>], iteration_bounds = array<i64: 5, 1, 2>, scalar_prefetch = 0 : i64, scratch_operands = 1 : i64, tpu.core_type = #tpu.core_type<tc>, window_params = [{transform_indices = @transform_0, window_bounds = array<i64: 128, 256>}, {transform_indices = @transform_1, window_bounds = array<i64: 256, 128>}, {transform_indices = @transform_2, window_bounds = array<i64: 1, 128>}, {transform_indices = @transform_3, window_bounds = array<i64: 128, 128>}]} {
    %c0_i32 = arith.constant 0 : i32
    %0 = arith.cmpi eq, %arg2, %c0_i32 : i32
    %1 = arith.extui %0 : i1 to i32
    %c0_i32_0 = arith.constant 0 : i32
    %2 = arith.cmpi ne, %1, %c0_i32_0 : i32
    scf.if %2 {
      %cst_9 = arith.constant 0.000000e+00 : f32
      %12 = vector.broadcast %cst_9 : f32 to vector<128x128xf32>
      %c0_10 = arith.constant 0 : index
      %c0_11 = arith.constant 0 : index
      %13 = vector.load %arg7[%c0_10, %c0_11] : memref<128x128xf32, #tpu.memory_space<vmem>>, vector<128x128xf32>
      tpu.vector_store %arg7[%c0_10, %c0_11], %12 {strides = array<i32>} : memref<128x128xf32, #tpu.memory_space<vmem>>, vector<128x128xf32>,
    } else {
    }
    %c0 = arith.constant 0 : index
    %c0_1 = arith.constant 0 : index
    %3 = vector.load %arg7[%c0, %c0_1] : memref<128x128xf32, #tpu.memory_space<vmem>>, vector<128x128xf32>
    %c0_2 = arith.constant 0 : index
    %c0_3 = arith.constant 0 : index
    %4 = vector.load %arg3[%c0_2, %c0_3] : memref<128x256xbf16, #tpu.memory_space<vmem>>, vector<128x256xbf16>
    %c0_4 = arith.constant 0 : index
    %c0_5 = arith.constant 0 : index
    %5 = vector.load %arg4[%c0_4, %c0_5] : memref<256x128xbf16, #tpu.memory_space<vmem>>, vector<256x128xbf16>
    %cst = arith.constant dense<0.000000e+00> : vector<128x128xf32>
    %6 = tpu.matmul %4, %5, %cst {dimension_numbers = #tpu.dot_dimension_numbers<[1], [0], [0], [1], [0, 0, 1, 1], [], []>} : vector<128x256xbf16>, vector<256x128xbf16>, vector<128x128xf32> -> vector<128x128xf32>
    %7 = arith.addf %3, %6 : vector<128x128xf32>
    %c0_6 = arith.constant 0 : index
    %c0_7 = arith.constant 0 : index
    %8 = vector.load %arg7[%c0_6, %c0_7] : memref<128x128xf32, #tpu.memory_space<vmem>>, vector<128x128xf32>
    tpu.vector_store %arg7[%c0_6, %c0_7], %7 {strides = array<i32>} : memref<128x128xf32, #tpu.memory_space<vmem>>, vector<128x128xf32>,
    %c1_i32 = arith.constant 1 : i32
    %9 = arith.cmpi eq, %arg2, %c1_i32 : i32
    %10 = arith.extui %9 : i1 to i32
    %c0_i32_8 = arith.constant 0 : i32
    %11 = arith.cmpi ne, %10, %c0_i32_8 : i32
    scf.if %11 {
      %c0_9 = arith.constant 0 : index
      %c0_10 = arith.constant 0 : index
      %12 = vector.load %arg7[%c0_9, %c0_10] : memref<128x128xf32, #tpu.memory_space<vmem>>, vector<128x128xf32>
      %c0_11 = arith.constant 0 : index
      %c0_12 = arith.constant 0 : index
      %13 = vector.load %arg5[%c0_11, %c0_12] : memref<1x128xf32, #tpu.memory_space<vmem>>, vector<1x128xf32>
      %14 = vector.broadcast %13 : vector<1x128xf32> to vector<128x128xf32>
      %15 = arith.addf %12, %14 : vector<128x128xf32>
      %cst_13 = arith.constant 0.000000e+00 : f32
      %16 = vector.broadcast %cst_13 : f32 to vector<128x128xf32>
      %17 = arith.cmpf oge, %15, %16 : vector<128x128xf32>
      %cst_14 = arith.constant 0.00999999977 : f32
      %18 = vector.broadcast %cst_14 : f32 to vector<128x128xf32>
      %19 = arith.mulf %18, %15 : vector<128x128xf32>
      %20 = arith.select %17, %15, %19 : vector<128x128xi1>, vector<128x128xf32>
      %c0_15 = arith.constant 0 : index
      %c0_16 = arith.constant 0 : index
      %21 = vector.load %arg6[%c0_15, %c0_16] : memref<128x128xf32, #tpu.memory_space<vmem>>, vector<128x128xf32>
      tpu.vector_store %arg6[%c0_15, %c0_16], %20 {strides = array<i32>} : memref<128x128xf32, #tpu.memory_space<vmem>>, vector<128x128xf32>,
    } else {
    }
    return
  }
  func.func @transform_0(%arg0: i32, %arg1: i32, %arg2: i32) -> (i32, i32) {
    %c0_i32 = arith.constant 0 : i32
    return %arg0, %arg2 : i32, i32
  }
  func.func @transform_1(%arg0: i32, %arg1: i32, %arg2: i32) -> (i32, i32) {
    %c0_i32 = arith.constant 0 : i32
    return %arg2, %arg1 : i32, i32
  }
  func.func @transform_2(%arg0: i32, %arg1: i32, %arg2: i32) -> (i32, i32) {
    %c0_i32 = arith.constant 0 : i32
    %c0_i32_0 = arith.constant 0 : i32
    return %c0_i32, %arg1 : i32, i32
  }
  func.func @transform_3(%arg0: i32, %arg1: i32, %arg2: i32) -> (i32, i32) {
    %c0_i32 = arith.constant 0 : i32
    return %arg0, %arg1 : i32, i32
  }
}

module attributes {stable_mosaic.version = 11 : i64} {
  func.func @_mm_bias_act_kernel(%arg0: i32, %arg1: i32, %arg2: i32, %arg3: memref<256x256xbf16, #tpu.memory_space<vmem>>, %arg4: memref<256x128xbf16, #tpu.memory_space<vmem>>, %arg5: memref<1x128xf32, #tpu.memory_space<vmem>>, %arg6: memref<256x128xf32, #tpu.memory_space<vmem>>, %arg7: memref<256x128xf32, #tpu.memory_space<vmem>>) attributes {dimension_semantics = [#tpu.dimension_semantics<parallel>, #tpu.dimension_semantics<parallel>, #tpu.dimension_semantics<arbitrary>], iteration_bounds = array<i64: 2, 1, 2>, scalar_prefetch = 0 : i64, scratch_operands = 1 : i64, tpu.core_type = #tpu.core_type<tc>, window_params = [{transform_indices = @transform_0, window_bounds = array<i64: 256, 256>}, {transform_indices = @transform_1, window_bounds = array<i64: 256, 128>}, {transform_indices = @transform_2, window_bounds = array<i64: 1, 128>}, {transform_indices = @transform_3, window_bounds = array<i64: 256, 128>}]} {
    %c0_i32 = arith.constant 0 : i32
    %0 = arith.cmpi eq, %arg2, %c0_i32 : i32
    %1 = arith.extui %0 : i1 to i32
    %c0_i32_0 = arith.constant 0 : i32
    %2 = arith.cmpi ne, %1, %c0_i32_0 : i32
    scf.if %2 {
      %cst_9 = arith.constant 0.000000e+00 : f32
      %12 = vector.broadcast %cst_9 : f32 to vector<256x128xf32>
      %c0_10 = arith.constant 0 : index
      %c0_11 = arith.constant 0 : index
      %13 = vector.load %arg7[%c0_10, %c0_11] : memref<256x128xf32, #tpu.memory_space<vmem>>, vector<256x128xf32>
      tpu.vector_store %arg7[%c0_10, %c0_11], %12 {strides = array<i32>} : memref<256x128xf32, #tpu.memory_space<vmem>>, vector<256x128xf32>,
    } else {
    }
    %c0 = arith.constant 0 : index
    %c0_1 = arith.constant 0 : index
    %3 = vector.load %arg7[%c0, %c0_1] : memref<256x128xf32, #tpu.memory_space<vmem>>, vector<256x128xf32>
    %c0_2 = arith.constant 0 : index
    %c0_3 = arith.constant 0 : index
    %4 = vector.load %arg3[%c0_2, %c0_3] : memref<256x256xbf16, #tpu.memory_space<vmem>>, vector<256x256xbf16>
    %c0_4 = arith.constant 0 : index
    %c0_5 = arith.constant 0 : index
    %5 = vector.load %arg4[%c0_4, %c0_5] : memref<256x128xbf16, #tpu.memory_space<vmem>>, vector<256x128xbf16>
    %cst = arith.constant dense<0.000000e+00> : vector<256x128xf32>
    %6 = tpu.matmul %4, %5, %cst {dimension_numbers = #tpu.dot_dimension_numbers<[1], [0], [0], [1], [0, 0, 1, 1], [], []>} : vector<256x256xbf16>, vector<256x128xbf16>, vector<256x128xf32> -> vector<256x128xf32>
    %7 = arith.addf %3, %6 : vector<256x128xf32>
    %c0_6 = arith.constant 0 : index
    %c0_7 = arith.constant 0 : index
    %8 = vector.load %arg7[%c0_6, %c0_7] : memref<256x128xf32, #tpu.memory_space<vmem>>, vector<256x128xf32>
    tpu.vector_store %arg7[%c0_6, %c0_7], %7 {strides = array<i32>} : memref<256x128xf32, #tpu.memory_space<vmem>>, vector<256x128xf32>,
    %c1_i32 = arith.constant 1 : i32
    %9 = arith.cmpi eq, %arg2, %c1_i32 : i32
    %10 = arith.extui %9 : i1 to i32
    %c0_i32_8 = arith.constant 0 : i32
    %11 = arith.cmpi ne, %10, %c0_i32_8 : i32
    scf.if %11 {
      %c0_9 = arith.constant 0 : index
      %c0_10 = arith.constant 0 : index
      %12 = vector.load %arg7[%c0_9, %c0_10] : memref<256x128xf32, #tpu.memory_space<vmem>>, vector<256x128xf32>
      %c0_11 = arith.constant 0 : index
      %c0_12 = arith.constant 0 : index
      %13 = vector.load %arg5[%c0_11, %c0_12] : memref<1x128xf32, #tpu.memory_space<vmem>>, vector<1x128xf32>
      %14 = vector.broadcast %13 : vector<1x128xf32> to vector<256x128xf32>
      %15 = arith.addf %12, %14 : vector<256x128xf32>
      %c0_13 = arith.constant 0 : index
      %c0_14 = arith.constant 0 : index
      %16 = vector.load %arg6[%c0_13, %c0_14] : memref<256x128xf32, #tpu.memory_space<vmem>>, vector<256x128xf32>
      tpu.vector_store %arg6[%c0_13, %c0_14], %15 {strides = array<i32>} : memref<256x128xf32, #tpu.memory_space<vmem>>, vector<256x128xf32>,
    } else {
    }
    return
  }
  func.func @transform_0(%arg0: i32, %arg1: i32, %arg2: i32) -> (i32, i32) {
    %c0_i32 = arith.constant 0 : i32
    return %arg0, %arg2 : i32, i32
  }
  func.func @transform_1(%arg0: i32, %arg1: i32, %arg2: i32) -> (i32, i32) {
    %c0_i32 = arith.constant 0 : i32
    return %arg2, %arg1 : i32, i32
  }
  func.func @transform_2(%arg0: i32, %arg1: i32, %arg2: i32) -> (i32, i32) {
    %c0_i32 = arith.constant 0 : i32
    %c0_i32_0 = arith.constant 0 : i32
    return %c0_i32, %arg1 : i32, i32
  }
  func.func @transform_3(%arg0: i32, %arg1: i32, %arg2: i32) -> (i32, i32) {
    %c0_i32 = arith.constant 0 : i32
    return %arg0, %arg1 : i32, i32
  }
}

</mosaic_0001>

<bundles_post_ra>
// kernel: _lambda_.8
= control target key start
LH: loop header
LB: loop body
LE: loop exit
PB: predicated region body
PF: predicated region fallthrough
CT: control target
= control target key end

     0   :  { %s948_s12 = smov 0   ;;  %s950_s13 = smov 0   ;;  %s1058_s0 = inlined_call_operand.vmem [shape: bf16[640,128], index: 0, kind: input, shape index: {}]   ;;  %s1059_s1 = inlined_call_operand.vmem [shape: bf16[128,128], index: 1, kind: input, shape index: {}]   ;;  %s1060_s2 = inlined_call_operand.vmem [shape: f32[1,128], index: 2, kind: input, shape index: {}]   ;;  %s1061_s3 = inlined_call_operand.vmem [shape: f32[640,128], index: 3, kind: output, shape index: {}]  }
   0x1   :  { %s952_s14 = smov 0  }
   0x2 LB: > { %s32_s15 = sadd.s32 1, %s922_s13  ;;  %p776_p0 = scmp.ge.s32.totalorder %s926_s14, 1  ;;  %s926_s14 = sphi %s952_s14, %s13_s14   ;;  %s922_s13 = sphi %s950_s13, %s1063_s13   ;;  %s918_s12 = sphi %s948_s12, %s1062_s12  }
   0x3   : > { %p34_p1 = scmp.ge.s32.totalorder %s32_s15, 5  ;;  %p188_p2 = scmp.lt.s32.totalorder %s926_s14, 6 }
   0x5   : > { %s1065_s15 = smov (%p34_p1, %s32_s15), 0  ;;  %p189_p3 = pnand %p776_p0, %p188_p2 }
   0x6   : > { %v888_v0 = vld [vmem:[%s1059_s1] sm:$0xff] (!%p189_p3)   ;;  %s777_s18 = sshll.u32 (!%p189_p3), %s918_s12, 4  ;;  %v889_v1 = vld [vmem:[%s1059_s1 + $0x8] sm:$0xff] (!%p189_p3)   ;;  %v890_v2 = vld [vmem:[%s1059_s1 + $0x10] sm:$0xff] (!%p189_p3)  }
   0x7   : > { %192 = sbr.rel (%p189_p3) target bundleno = 271 (0x10f), region = 32  ;;  %p230_p4 = scmp.lt.s32.totalorder (!%p189_p3), %s777_s18, 79  ;;  %816 = vmatprep.subr.bf16.mxu0 (!%p189_p3), %v888_v0  ;;  %848 = vmatprep.subr.bf16.mxu1 (!%p189_p3), %v888_v0  ;;  %v891_v3 = vld [vmem:[%s1059_s1 + $0x18] sm:$0xff] (!%p189_p3)   ;;  %v892_v6 = vld [vmem:[%s1059_s1 + $0x20] sm:$0xff] (!%p189_p3)   ;;  %v893_v7 = vld [vmem:[%s1059_s1 + $0x28] sm:$0xff] (!%p189_p3)  }
   0x8   : > { %817 = vmatpush3.bf16.msra.mxu0 (!%p189_p3), %v888_v0  ;;  %856 = vmatpush3.bf16.msra.mxu1 (!%p189_p3), %v888_v0  ;;  %v894_v8 = vld [vmem:[%s1059_s1 + $0x30] sm:$0xff] (!%p189_p3)   ;;  %v895_v9 = vld [vmem:[%s1059_s1 + $0x38] sm:$0xff] (!%p189_p3)   ;;  %v1009_v16 = vld [vmem:[%s1060_s2] ss:$0 sm:$0xff] (!%p189_p3) }
   0x9   : > { %818 = vmatprep.subr.bf16.mxu0 (!%p189_p3), %v889_v1  ;;  %849 = vmatprep.subr.bf16.mxu1 (!%p189_p3), %v889_v1 }
   0xc   : > { %819 = vmatpush3.bf16.msra.mxu0 (!%p189_p3), %v889_v1  ;;  %857 = vmatpush3.bf16.msra.mxu1 (!%p189_p3), %v889_v1 }
   0xd   : > { %820 = vmatprep.subr.bf16.mxu0 (!%p189_p3), %v890_v2  ;;  %850 = vmatprep.subr.bf16.mxu1 (!%p189_p3), %v890_v2 }
   0xe   : > { %s1067_s18 = smov (!%p230_p4, %s777_s18), 79 }
   0xf   : > { %s778_s23 = sshll.u32 %s1067_s18, 2  ;;  %s780_s12 = sshll.u32 %s1067_s18, 3 }
  0x10   : > { %s981_s26 = scalar_lea.vmem %s1058_s0, %s778_s23  ;;  %821 = vmatpush3.bf16.msra.mxu0 %v890_v2  ;;  %858 = vmatpush3.bf16.msra.mxu1 %v890_v2  ;;  %s1019_s19 = scalar_lea.vmem %s1061_s3, %s780_s12 }
  0x11   : > { %v896_v4 = vld [vmem:[%s981_s26] sm:$0xff]   ;;  %822 = vmatprep.subr.bf16.mxu0 %v891_v3  ;;  %851 = vmatprep.subr.bf16.mxu1 %v891_v3  ;;  %v898_v10 = vld [vmem:[%s981_s26 + $0x8] sm:$0xff]   ;;  %v900_v12 = vld [vmem:[%s981_s26 + $0x10] sm:$0xff]  }
  0x12   : > { %v897_v5 = vld [vmem:[%s981_s26 + $0x20] sm:$0xff]   ;;  %832 = vmatprep.mubr.bf16.mxu0 %v896_v4  ;;  %v899_v11 = vld [vmem:[%s981_s26 + $0x28] sm:$0xff]   ;;  %v901_v13 = vld [vmem:[%s981_s26 + $0x30] sm:$0xff]  }
  0x13   : > { %840 = vmatprep.mubr.bf16.mxu1 %v897_v5  ;;  %v902_v14 = vld [vmem:[%s981_s26 + $0x18] sm:$0xff]  }
  0x14   : > { %823 = vmatpush3.bf16.msra.mxu0 %v891_v3  ;;  %859 = vmatpush3.bf16.msra.mxu1 %v891_v3  ;;  %v903_v15 = vld [vmem:[%s981_s26 + $0x38] sm:$0xff]  }
  0x15   : > { %824 = vmatprep.subr.bf16.mxu0 %v892_v6  ;;  %852 = vmatprep.subr.bf16.mxu1 %v892_v6 }
  0x18   : > { %825 = vmatpush3.bf16.msra.mxu0 %v892_v6  ;;  %860 = vmatpush3.bf16.msra.mxu1 %v892_v6 }
  0x19   : > { %826 = vmatprep.subr.bf16.mxu0 %v893_v7  ;;  %853 = vmatprep.subr.bf16.mxu1 %v893_v7 }
  0x1c   : > { %827 = vmatpush3.bf16.msra.mxu0 %v893_v7  ;;  %861 = vmatpush3.bf16.msra.mxu1 %v893_v7 }
  0x1d   : > { %828 = vmatprep.subr.bf16.mxu0 %v894_v8  ;;  %854 = vmatprep.subr.bf16.mxu1 %v894_v8 }
  0x20   : > { %829 = vmatpush3.bf16.msra.mxu0 %v894_v8  ;;  %862 = vmatpush3.bf16.msra.mxu1 %v894_v8 }
  0x21   : > { %830 = vmatprep.subr.bf16.mxu0 %v895_v9  ;;  %855 = vmatprep.subr.bf16.mxu1 %v895_v9 }
  0x24   : > { %831 = vmatpush3.bf16.msra.mxu0 %v895_v9  ;;  %863 = vmatpush3.bf16.msra.mxu1 %v895_v9 }
  0x27   : > { %833 = vmatmul.mubr.bf16.vlgmr.msra.gmra.mrb[0].mxu0 %v898_v10  ;;  %841 = vmatmul.mubr.bf16.vlgmr.msra.gmra.mrb[0].mxu1 %v899_v11 }
  0x28   : > { %836 = vmatprep.mubr.bf16.mxu0 %v900_v12  ;;  %844 = vmatprep.mubr.bf16.mxu1 %v901_v13 }
  0x2f   : > { %837 = vmatmul.mubr.bf16.gmra.mrb[4].mxu0 %v902_v14  ;;  %845 = vmatmul.mubr.bf16.gmra.mrb[4].mxu1 %v903_v15 }
  0xfa   : > { %v834_v17 = vpop.f32.mrb[0].mxu0  ;;  %v842_v18 = vpop.f32.mrb[0].mxu1 }
  0xfb   : > { %v581_v19 = vadd.f32 %v834_v17, %v1009_v16  ;;  %v589_v20 = vadd.f32 %v842_v18, %v1009_v16  ;;  %v458_v21 = vpop.f32.mrb[1].mxu0  ;;  %v490_v22 = vpop.f32.mrb[1].mxu1 }
  0xfc   : > { %v579_v23 = vadd.f32 %v1009_v16, %v458_v21  ;;  %v587_v24 = vadd.f32 %v1009_v16, %v490_v22  ;;  %v835_v25 = vpop.f32.mrb[2].mxu0  ;;  %v843_v26 = vpop.f32.mrb[2].mxu1 }
  0xfd   : > { %vm597_vm0 = vcmp.ge.f32.partialorder %v581_v19, 0.0  ;;  %v613_v27 = vmul.f32 0.01, %v581_v19  ;;  %vm605_vm1 = vcmp.ge.f32.partialorder %v589_v20, 0.0  ;;  %v621_v28 = vmul.f32 0.01, %v589_v20 }
  0xfe   : > { %vm595_vm2 = vcmp.ge.f32.partialorder %v579_v23, 0.0  ;;  %v611_v29 = vmul.f32 0.01, %v579_v23  ;;  %vm603_vm3 = vcmp.ge.f32.partialorder %v587_v24, 0.0  ;;  %v619_v30 = vmul.f32 0.01, %v587_v24 }
  0xff   : > { %v629_v31 = vsel %vm597_vm0, %v581_v19, %v613_v27  ;;  %v637_v32 = vsel %vm605_vm1, %v589_v20, %v621_v28  ;;  %v582_v33 = vadd.f32 %v835_v25, %v1009_v16  ;;  %v590_v34 = vadd.f32 %v843_v26, %v1009_v16  ;;  %v461_v35 = vpop.f32.mrb[3].mxu0  ;;  %v493_v36 = vpop.f32.mrb[3].mxu1 }
 0x100   : > { %645 = vst [vmem:[%s1019_s19 + $0x10] sm:$0xff] %v629_v31  ;;  %653 = vst [vmem:[%s1019_s19 + $0x50] sm:$0xff] %v637_v32  ;;  %v627_v37 = vsel %vm595_vm2, %v579_v23, %v611_v29  ;;  %v635_v38 = vsel %vm603_vm3, %v587_v24, %v619_v30  ;;  %v580_v39 = vadd.f32 %v1009_v16, %v461_v35 }
 0x101   : > { %v588_v40 = vadd.f32 %v1009_v16, %v493_v36  ;;  %643 = vst [vmem:[%s1019_s19] sm:$0xff] %v627_v37  ;;  %651 = vst [vmem:[%s1019_s19 + $0x40] sm:$0xff] %v635_v38  ;;  %vm598_vm4 = vcmp.ge.f32.partialorder %v582_v33, 0.0  ;;  %v614_v41 = vmul.f32 0.01, %v582_v33  ;;  %vm606_vm5 = vcmp.ge.f32.partialorder %v590_v34, 0.0 }
 0x102   : > { %v622_v42 = vmul.f32 0.01, %v590_v34  ;;  %vm596_vm6 = vcmp.ge.f32.partialorder %v580_v39, 0.0  ;;  %v612_v43 = vmul.f32 0.01, %v580_v39  ;;  %v838_v47 = vpop.f32.mrb[4].mxu0 }
 0x103   : > { %vm604_vm7 = vcmp.ge.f32.partialorder %v588_v40, 0.0  ;;  %v620_v44 = vmul.f32 0.01, %v588_v40  ;;  %v630_v45 = vsel %vm598_vm4, %v582_v33, %v614_v41  ;;  %v846_v48 = vpop.f32.mrb[4].mxu1  ;;  %v585_v51 = vadd.f32 %v838_v47, %v1009_v16  ;;  %v474_v53 = vpop.f32.mrb[5].mxu0 }
 0x104   : > { %v638_v46 = vsel %vm606_vm5, %v590_v34, %v622_v42  ;;  %646 = vst [vmem:[%s1019_s19 + $0x18] sm:$0xff] %v630_v45  ;;  %v628_v49 = vsel %vm596_vm6, %v580_v39, %v612_v43  ;;  %v593_v52 = vadd.f32 %v846_v48, %v1009_v16  ;;  %v506_v54 = vpop.f32.mrb[5].mxu1  ;;  %v583_v55 = vadd.f32 %v1009_v16, %v474_v53  ;;  %v839_v57 = vpop.f32.mrb[6].mxu0 }
 0x105   : > { %654 = vst [vmem:[%s1019_s19 + $0x58] sm:$0xff] %v638_v46  ;;  %v636_v50 = vsel %vm604_vm7, %v588_v40, %v620_v44  ;;  %644 = vst [vmem:[%s1019_s19 + $0x8] sm:$0xff] %v628_v49  ;;  %v591_v56 = vadd.f32 %v1009_v16, %v506_v54  ;;  %v847_v58 = vpop.f32.mrb[6].mxu1  ;;  %vm601_vm8 = vcmp.ge.f32.partialorder %v585_v51, 0.0  ;;  %v617_v59 = vmul.f32 0.01, %v585_v51 }
 0x106   : > { %652 = vst [vmem:[%s1019_s19 + $0x48] sm:$0xff] %v636_v50  ;;  %vm609_vm9 = vcmp.ge.f32.partialorder %v593_v52, 0.0  ;;  %v625_v60 = vmul.f32 0.01, %v593_v52  ;;  %vm599_vm10 = vcmp.ge.f32.partialorder %v583_v55, 0.0  ;;  %v586_v1 = vadd.f32 %v839_v57, %v1009_v16  ;;  %v477_v3 = vpop.f32.mrb[7].mxu0 }
 0x107   : > { %v615_v61 = vmul.f32 0.01, %v583_v55  ;;  %vm607_vm11 = vcmp.ge.f32.partialorder %v591_v56, 0.0  ;;  %v623_v62 = vmul.f32 0.01, %v591_v56  ;;  %v633_v63 = vsel %vm601_vm8, %v585_v51, %v617_v59  ;;  %v509_v4 = vpop.f32.mrb[7].mxu1 }
 0x108   : > { %v641_v0 = vsel %vm609_vm9, %v593_v52, %v625_v60  ;;  %v594_v2 = vadd.f32 %v847_v58, %v1009_v16  ;;  %649 = vst [vmem:[%s1019_s19 + $0x30] sm:$0xff] %v633_v63  ;;  %v584_v7 = vadd.f32 %v1009_v16, %v477_v3  ;;  %v592_v8 = vadd.f32 %v1009_v16, %v509_v4 }
 0x109   : > { %657 = vst [vmem:[%s1019_s19 + $0x70] sm:$0xff] %v641_v0  ;;  %v631_v5 = vsel %vm599_vm10, %v583_v55, %v615_v61  ;;  %v639_v6 = vsel %vm607_vm11, %v591_v56, %v623_v62  ;;  %vm602_vm12 = vcmp.ge.f32.partialorder %v586_v1, 0.0  ;;  %v618_v9 = vmul.f32 0.01, %v586_v1 }
 0x10a   : > { %647 = vst [vmem:[%s1019_s19 + $0x20] sm:$0xff] %v631_v5  ;;  %655 = vst [vmem:[%s1019_s19 + $0x60] sm:$0xff] %v639_v6  ;;  %vm610_vm13 = vcmp.ge.f32.partialorder %v594_v2, 0.0  ;;  %v626_v10 = vmul.f32 0.01, %v594_v2  ;;  %vm600_vm14 = vcmp.ge.f32.partialorder %v584_v7, 0.0 }
 0x10b   : > { %v616_v11 = vmul.f32 0.01, %v584_v7  ;;  %vm608_vm15 = vcmp.ge.f32.partialorder %v592_v8, 0.0  ;;  %v624_v12 = vmul.f32 0.01, %v592_v8  ;;  %v634_v13 = vsel %vm602_vm12, %v586_v1, %v618_v9 }
 0x10c   : > { %v642_v14 = vsel %vm610_vm13, %v594_v2, %v626_v10  ;;  %650 = vst [vmem:[%s1019_s19 + $0x38] sm:$0xff] %v634_v13 }
 0x10d   : > { %658 = vst [vmem:[%s1019_s19 + $0x78] sm:$0xff] %v642_v14  ;;  %v632_v15 = vsel %vm600_vm14, %v584_v7, %v616_v11  ;;  %v640_v17 = vsel %vm608_vm15, %v592_v8, %v624_v12 }
 0x10e   : > { %648 = vst [vmem:[%s1019_s19 + $0x28] sm:$0xff] %v632_v15  ;;  %656 = vst [vmem:[%s1019_s19 + $0x68] sm:$0xff] %v640_v17 }
 0x10f PF: > { %s13_s14 = sadd.s32 1, %s926_s14   ;;  %s1062_s12 = smov %s922_s13 }
 0x110   : > { %p10_p5 = scmp.ge.s32.totalorder %s13_s14, 7   ;;  %s1063_s13 = smov %s1065_s15 }
 0x112   :  { %12 = sbr.rel (!%p10_p5) target bundleno = 2 (0x2), region = 76 }

// kernel: _lambda_.9
= control target key start
LH: loop header
LB: loop body
LE: loop exit
PB: predicated region body
PF: predicated region fallthrough
CT: control target
= control target key end

     0   :  { %s1229_s12 = smov 0   ;;  %s1231_s13 = smov 0   ;;  %s1419_s0 = inlined_call_operand.vmem [shape: bf16[128,512], index: 0, kind: input, shape index: {}]   ;;  %s1420_s1 = inlined_call_operand.vmem [shape: bf16[512,128], index: 1, kind: input, shape index: {}]   ;;  %s1421_s2 = inlined_call_operand.vmem [shape: f32[1,128], index: 2, kind: input, shape index: {}]   ;;  %s1422_s3 = inlined_call_operand.vmem [shape: f32[128,128], index: 3, kind: output, shape index: {}]  }
   0x1   :  { %s1233_s14 = smov 0   ;;  %s1235_s15 = smov 0  }
   0x2   :  { %s1237_s16 = smov 0  }
   0x3 LB: > { %s25_s17 = sadd.s32 1, %s1202_s15  ;;  %p48_p1 = scmp.ne.s32.totalorder %s1194_s13, %s1190_s12  ;;  %s1206_s16 = sphi %s1237_s16, %s13_s16   ;;  %s1202_s15 = sphi %s1235_s15, %s1426_s15   ;;  %s1198_s14 = sphi %s1233_s14, %s1425_s14   ;;  %s1194_s13 = sphi %s1231_s13, %s1424_s13   ;;  %s1190_s12 = sphi %s1229_s12, %s1423_s12  }
   0x4   : > { %p26_p0 = scmp.ge.s32.totalorder %s25_s17, 2  ;;  %p49_p2 = scmp.eq.s32.totalorder %s1206_s16, 0 }
   0x5   : > { %s41_s19 = sadd.s32 1, %s1194_s13  ;;  %p959_p5 = scmp.ge.s32.totalorder %s1206_s16, 2 }
   0x6   : > { %s1428_s17 = smov (%p26_p0, %s25_s17), 0  ;;  %p50_p3 = por %p49_p2, %p48_p1 }
   0x7   : > { %s37_s18 = ssub.s32 %s1202_s15, %s1428_s17  ;;  %162 = sbr.rel (%p959_p5) target bundleno = 26 (0x1a), region = 20 }
   0x8   : > { %p39_p4 = scmp.eq.s32.totalorder %s37_s18, 0 }
   0xa   : > { %s1264_s20 = scalar_select %p39_p4, %s1194_s13, %s41_s19  }
   0xe   : > { %165 = sbr.rel (!%p50_p3) target bundleno = 26 (0x1a), region = 24  ;;  %s167_s21 = sand.u32 (%p50_p3), 1, %s1194_s13  }
   0xf   : > { %s1006_s22 = sshll.u32 (%p50_p3), %s1202_s15, 3  ;;  %s960_s23 = sshll.u32 (%p50_p3), %s167_s21, 7 }
  0x10   : > { %s1272_s26 = scalar_lea.vmem (%p50_p3), %s1419_s0, %s1006_s22  ;;  %s169_s27 = scalar_lea.vmem (%p50_p3), [#allocation3], %s960_s23 }
  0x11   : > { %v233_v0 = vld [vmem:[%s1272_s26] sm:$0xff] (%p50_p3)  ;;  %v235_v1 = vld [vmem:[%s1272_s26 + $0x10] sm:$0xff] (%p50_p3) }
  0x12   : > { %v237_v2 = vld [vmem:[%s1272_s26 + $0x20] sm:$0xff] (%p50_p3)  ;;  %234 = vst [vmem:[%s169_s27] sm:$0xff] (%p50_p3), %v233_v0  ;;  %236 = vst [vmem:[%s169_s27 + $0x8] sm:$0xff] (%p50_p3), %v235_v1  ;;  %v239_v3 = vld [vmem:[%s1272_s26 + $0x30] sm:$0xff] (%p50_p3) }
  0x13   : > { %238 = vst [vmem:[%s169_s27 + $0x10] sm:$0xff] (%p50_p3), %v237_v2  ;;  %v241_v4 = vld [vmem:[%s1272_s26 + $0x40] sm:$0xff] (%p50_p3)  ;;  %v243_v5 = vld [vmem:[%s1272_s26 + $0x50] sm:$0xff] (%p50_p3)  ;;  %240 = vst [vmem:[%s169_s27 + $0x18] sm:$0xff] (%p50_p3), %v239_v3 }
  0x14   : > { %242 = vst [vmem:[%s169_s27 + $0x20] sm:$0xff] (%p50_p3), %v241_v4  ;;  %244 = vst [vmem:[%s169_s27 + $0x28] sm:$0xff] (%p50_p3), %v243_v5  ;;  %v245_v6 = vld [vmem:[%s1272_s26 + $0x60] sm:$0xff] (%p50_p3)  ;;  %v247_v7 = vld [vmem:[%s1272_s26 + $0x70] sm:$0xff] (%p50_p3) }
  0x15   : > { %v249_v8 = vld [vmem:[%s1272_s26 + $0x80] sm:$0xff]  ;;  %246 = vst [vmem:[%s169_s27 + $0x30] sm:$0xff] %v245_v6  ;;  %248 = vst [vmem:[%s169_s27 + $0x38] sm:$0xff] %v247_v7  ;;  %v251_v9 = vld [vmem:[%s1272_s26 + $0x90] sm:$0xff] }
  0x16   : > { %250 = vst [vmem:[%s169_s27 + $0x40] sm:$0xff] %v249_v8  ;;  %v253_v10 = vld [vmem:[%s1272_s26 + $0xa0] sm:$0xff]  ;;  %v255_v11 = vld [vmem:[%s1272_s26 + $0xb0] sm:$0xff]  ;;  %252 = vst [vmem:[%s169_s27 + $0x48] sm:$0xff] %v251_v9 }
  0x17   : > { %254 = vst [vmem:[%s169_s27 + $0x50] sm:$0xff] %v253_v10  ;;  %256 = vst [vmem:[%s169_s27 + $0x58] sm:$0xff] %v255_v11  ;;  %v257_v12 = vld [vmem:[%s1272_s26 + $0xc0] sm:$0xff]  ;;  %v259_v13 = vld [vmem:[%s1272_s26 + $0xd0] sm:$0xff] }
  0x18   : > { %v261_v14 = vld [vmem:[%s1272_s26 + $0xe0] sm:$0xff]  ;;  %258 = vst [vmem:[%s169_s27 + $0x60] sm:$0xff] %v257_v12  ;;  %260 = vst [vmem:[%s169_s27 + $0x68] sm:$0xff] %v259_v13  ;;  %v263_v15 = vld [vmem:[%s1272_s26 + $0xf0] sm:$0xff] }
  0x19   : > { %262 = vst [vmem:[%s169_s27 + $0x70] sm:$0xff] %v261_v14  ;;  %264 = vst [vmem:[%s169_s27 + $0x78] sm:$0xff] %v263_v15 }
  0x1a PF: > { %p963_p6 = scmp.ge.s32.totalorder %s1206_s16, 1  ;;  %p281_p7 = scmp.lt.s32.totalorder %s1206_s16, 3 }
  0x1c   : > { %p282_p8 = pnand %p963_p6, %p281_p7 }
  0x1d   : > { %s288_s28 = sand.u32 (!%p282_p8), 1, %s1190_s12   ;;  %s965_s29 = sshll.u32 (!%p282_p8), %s1198_s14, 5 }
  0x1e   : > { %285 = sbr.rel (%p282_p8) target bundleno = 338 (0x152), region = 66  ;;  %s964_s30 = sshll.u32 (!%p282_p8), %s288_s28, 7 }
  0x1f   : > { %p328_p9 = scmp.lt.s32.totalorder (!%p282_p8), %s965_s29, 63  ;;  %s1299_s8 = scalar_lea.vmem (!%p282_p8), [#allocation3], %s964_s30 }
  0x20   : > { %p967_p10 = scmp.ne.s32.totalorder (!%p282_p8), %s1198_s14, 0 }
  0x25   : > { %s1430_s29 = smov (!%p328_p9, %s965_s29), 63  ;;  %352 = sbr.rel (%p967_p10) target bundleno = 47 (0x2f), region = 74 }
  0x26   : > { %s966_s4 = sshll.u32 %s1430_s29, 2  ;;  %v1208_v16 = vmov (!%p967_p10), 0.0  }
  0x27   : > { %s1297_s7 = scalar_lea.vmem %s1420_s1, %s966_s4  ;;  %353 = vst [vmem:[#allocation2] sm:$0xff] (!%p967_p10), %v1208_v16  ;;  %354 = vst [vmem:[#allocation2 + $0x8] sm:$0xff] (!%p967_p10), %v1208_v16 }
  0x28   : > { %355 = vst [vmem:[#allocation2 + $0x10] sm:$0xff] (!%p967_p10), %v1208_v16  ;;  %356 = vst [vmem:[#allocation2 + $0x18] sm:$0xff] (!%p967_p10), %v1208_v16 }
  0x29   : > { %357 = vst [vmem:[#allocation2 + $0x20] sm:$0xff] (!%p967_p10), %v1208_v16  ;;  %358 = vst [vmem:[#allocation2 + $0x28] sm:$0xff] (!%p967_p10), %v1208_v16 }
  0x2a   : > { %359 = vst [vmem:[#allocation2 + $0x30] sm:$0xff] (!%p967_p10), %v1208_v16  ;;  %360 = vst [vmem:[#allocation2 + $0x38] sm:$0xff] (!%p967_p10), %v1208_v16 }
  0x2b   : > { %361 = vst [vmem:[#allocation2 + $0x40] sm:$0xff] (!%p967_p10), %v1208_v16  ;;  %362 = vst [vmem:[#allocation2 + $0x48] sm:$0xff] (!%p967_p10), %v1208_v16 }
  0x2c   : > { %363 = vst [vmem:[#allocation2 + $0x50] sm:$0xff] %v1208_v16  ;;  %364 = vst [vmem:[#allocation2 + $0x58] sm:$0xff] %v1208_v16 }
  0x2d   : > { %365 = vst [vmem:[#allocation2 + $0x60] sm:$0xff] %v1208_v16  ;;  %366 = vst [vmem:[#allocation2 + $0x68] sm:$0xff] %v1208_v16 }
  0x2e   : > { %367 = vst [vmem:[#allocation2 + $0x70] sm:$0xff] %v1208_v16  ;;  %368 = vst [vmem:[#allocation2 + $0x78] sm:$0xff] %v1208_v16 }
  0x2f PF: > { %v1128_v17 = vld [vmem:[%s1297_s7 + $0x40] sm:$0xff]   ;;  %v1130_v19 = vld [vmem:[%s1297_s7 + $0x48] sm:$0xff]   ;;  %v1132_v21 = vld [vmem:[%s1297_s7 + $0x50] sm:$0xff]   ;;  %p1000_p11 = scmp.ne.s32.totalorder %s1198_s14, 1 }
  0x30   : > { %v1129_v18 = vld [vmem:[%s1297_s7] sm:$0xff]   ;;  %1007 = vmatprep.subr.bf16.mxu0 %v1128_v17  ;;  %1071 = vmatprep.subr.bf16.mxu1 %v1128_v17  ;;  %v1131_v20 = vld [vmem:[%s1297_s7 + $0x8] sm:$0xff]   ;;  %v1133_v22 = vld [vmem:[%s1297_s7 + $0x10] sm:$0xff]  }
  0x31   : > { %1008 = vmatpush3.bf16.msra.mxu0 %v1129_v18  ;;  %1079 = vmatpush3.bf16.msra.mxu1 %v1129_v18  ;;  %v1134_v23 = vld [vmem:[%s1297_s7 + $0x58] sm:$0xff]   ;;  %v1136_v25 = vld [vmem:[%s1297_s7 + $0x60] sm:$0xff]   ;;  %v1138_v27 = vld [vmem:[%s1297_s7 + $0x68] sm:$0xff]  }
  0x32   : > { %1009 = vmatprep.subr.bf16.mxu0 %v1130_v19  ;;  %1072 = vmatprep.subr.bf16.mxu1 %v1130_v19  ;;  %v1135_v24 = vld [vmem:[%s1297_s7 + $0x18] sm:$0xff]   ;;  %v1137_v26 = vld [vmem:[%s1297_s7 + $0x20] sm:$0xff]   ;;  %v1139_v30 = vld [vmem:[%s1297_s7 + $0x28] sm:$0xff]  }
  0x33   : > { %v1146_v28 = vld [vmem:[%s1299_s8 + $0x4] ss:$8 sps:$4 sm:$0xff]   ;;  %v1140_v31 = vld [vmem:[%s1297_s7 + $0x70] sm:$0xff]   ;;  %v1142_v33 = vld [vmem:[%s1297_s7 + $0x78] sm:$0xff]  }
  0x34   : > { %v1149_v29 = vld [vmem:[%s1299_s8 + $0x44] ss:$8 sps:$4 sm:$0xff]   ;;  %641 = vmatprep.mubr.bf16.mxu0 %v1146_v28  ;;  %v1141_v32 = vld [vmem:[%s1297_s7 + $0x30] sm:$0xff]   ;;  %v1143_v34 = vld [vmem:[%s1297_s7 + $0x38] sm:$0xff]  }
  0x35   : > { %1010 = vmatpush3.bf16.msra.mxu0 %v1131_v20  ;;  %1080 = vmatpush3.bf16.msra.mxu1 %v1131_v20  ;;  %v1144_v35 = vld [vmem:[%s1299_s8] ss:$8 sps:$4 sm:$0xff]   ;;  %v1150_v37 = vld [vmem:[%s1299_s8 + $0x14] ss:$8 sps:$4 sm:$0xff]   ;;  %v1154_v39 = vld [vmem:[%s1299_s8 + $0x10] ss:$8 sps:$4 sm:$0xff]  }
  0x36   : > { %1011 = vmatprep.subr.bf16.mxu0 %v1132_v21  ;;  %1073 = vmatprep.subr.bf16.mxu1 %v1132_v21  ;;  %v1147_v36 = vld [vmem:[%s1299_s8 + $0x40] ss:$8 sps:$4 sm:$0xff]   ;;  %v1152_v38 = vld [vmem:[%s1299_s8 + $0x54] ss:$8 sps:$4 sm:$0xff]   ;;  %v1155_v40 = vld [vmem:[%s1299_s8 + $0x50] ss:$8 sps:$4 sm:$0xff]  }
  0x37   : > { %673 = vmatprep.mubr.bf16.mxu1 %v1149_v29  ;;  %v1156_v41 = vld [vmem:[%s1299_s8 + $0x24] ss:$8 sps:$4 sm:$0xff]   ;;  %v1160_v43 = vld [vmem:[%s1299_s8 + $0x20] ss:$8 sps:$4 sm:$0xff]   ;;  %v1162_v45 = vld [vmem:[%s1299_s8 + $0x34] ss:$8 sps:$4 sm:$0xff]  }
  0x38   : > { %v1158_v42 = vld [vmem:[%s1299_s8 + $0x64] ss:$8 sps:$4 sm:$0xff]   ;;  %v1161_v44 = vld [vmem:[%s1299_s8 + $0x60] ss:$8 sps:$4 sm:$0xff]   ;;  %v1164_v46 = vld [vmem:[%s1299_s8 + $0x74] ss:$8 sps:$4 sm:$0xff]  }
  0x39   : > { %1012 = vmatpush3.bf16.msra.mxu0 %v1133_v22  ;;  %1081 = vmatpush3.bf16.msra.mxu1 %v1133_v22  ;;  %v1166_v47 = vld [vmem:[%s1299_s8 + $0x30] ss:$8 sps:$4 sm:$0xff]   ;;  %v369_v51 = vld [vmem:[#allocation2] sm:$0xff]  ;;  %v370_v59 = vld [vmem:[#allocation2 + $0x8] sm:$0xff] }
  0x3a   : > { %1013 = vmatprep.subr.bf16.mxu0 %v1134_v23  ;;  %1074 = vmatprep.subr.bf16.mxu1 %v1134_v23  ;;  %v1167_v48 = vld [vmem:[%s1299_s8 + $0x70] ss:$8 sps:$4 sm:$0xff]   ;;  %v377_v53 = vld [vmem:[#allocation2 + $0x40] sm:$0xff]  ;;  %v378_v61 = vld [vmem:[#allocation2 + $0x48] sm:$0xff] }
  0x3b   : > { %v371_v7 = vld [vmem:[#allocation2 + $0x10] sm:$0xff]  ;;  %v372_v15 = vld [vmem:[#allocation2 + $0x18] sm:$0xff]  ;;  %v381_v29 = vld [vmem:[#allocation2 + $0x60] sm:$0xff] }
  0x3c   : > { %v379_v9 = vld [vmem:[#allocation2 + $0x50] sm:$0xff]  ;;  %v380_v17 = vld [vmem:[#allocation2 + $0x58] sm:$0xff] }
  0x3d   : > { %1014 = vmatpush3.bf16.msra.mxu0 %v1135_v24  ;;  %1082 = vmatpush3.bf16.msra.mxu1 %v1135_v24 }
  0x3e   : > { %1015 = vmatprep.subr.bf16.mxu0 %v1136_v25  ;;  %1075 = vmatprep.subr.bf16.mxu1 %v1136_v25 }
  0x41   : > { %1016 = vmatpush3.bf16.msra.mxu0 %v1137_v26  ;;  %1083 = vmatpush3.bf16.msra.mxu1 %v1137_v26 }
  0x42   : > { %1017 = vmatprep.subr.bf16.mxu0 %v1138_v27  ;;  %1076 = vmatprep.subr.bf16.mxu1 %v1138_v27  ;;  %v373_v27 = vld [vmem:[#allocation2 + $0x20] sm:$0xff] }
  0x45   : > { %1018 = vmatpush3.bf16.msra.mxu0 %v1139_v30  ;;  %1084 = vmatpush3.bf16.msra.mxu1 %v1139_v30 }
  0x46   : > { %1019 = vmatprep.subr.bf16.mxu0 %v1140_v31  ;;  %1077 = vmatprep.subr.bf16.mxu1 %v1140_v31 }
  0x49   : > { %1020 = vmatpush3.bf16.msra.mxu0 %v1141_v32  ;;  %1085 = vmatpush3.bf16.msra.mxu1 %v1141_v32 }
  0x4a   : > { %1021 = vmatprep.subr.bf16.mxu0 %v1142_v33  ;;  %1078 = vmatprep.subr.bf16.mxu1 %v1142_v33 }
  0x4d   : > { %1022 = vmatpush3.bf16.msra.mxu0 %v1143_v34  ;;  %1086 = vmatpush3.bf16.msra.mxu1 %v1143_v34 }
  0x50   : > { %642 = vmatmul.mubr.bf16.vlgmr.msra.gmra.mrb[0].mxu0 %v1144_v35  ;;  %674 = vmatmul.mubr.bf16.vlgmr.msra.gmra.mrb[0].mxu1 %v1147_v36  ;;  %v374_v35 = vld [vmem:[#allocation2 + $0x28] sm:$0xff] }
  0x51   : > { %649 = vmatprep.mubr.bf16.mxu0 %v1150_v37  ;;  %681 = vmatprep.mubr.bf16.mxu1 %v1152_v38  ;;  %v382_v37 = vld [vmem:[#allocation2 + $0x68] sm:$0xff] }
  0x58   : > { %650 = vmatmul.mubr.bf16.gmra.mrb[4].mxu0 %v1154_v39  ;;  %682 = vmatmul.mubr.bf16.gmra.mrb[4].mxu1 %v1155_v40 }
  0x59   : > { %657 = vmatprep.mubr.bf16.mxu0 %v1156_v41  ;;  %689 = vmatprep.mubr.bf16.mxu1 %v1158_v42 }
  0x60   : > { %658 = vmatmul.mubr.bf16.gmra.mrb[8].mxu0 %v1160_v43  ;;  %690 = vmatmul.mubr.bf16.gmra.mrb[8].mxu1 %v1161_v44 }
  0x61   : > { %665 = vmatprep.mubr.bf16.mxu0 %v1162_v45  ;;  %697 = vmatprep.mubr.bf16.mxu1 %v1164_v46 }
  0x68   : > { %666 = vmatmul.mubr.bf16.gmra.mrb[12].mxu0 %v1166_v47  ;;  %698 = vmatmul.mubr.bf16.gmra.mrb[12].mxu1 %v1167_v48  ;;  %v375_v47 = vld [vmem:[#allocation2 + $0x30] sm:$0xff] }
 0x123   : > { %v1023_v49 = vpop.f32.mrb[0].mxu0  ;;  %v1047_v50 = vpop.f32.mrb[0].mxu1 }
 0x124   : > { %v1024_v52 = vpop.f32.mrb[1].mxu0  ;;  %v1048_v54 = vpop.f32.mrb[1].mxu1 }
 0x125   : > { %v1025_v55 = vadd.f32 %v1024_v52, %v1023_v49  ;;  %v1049_v56 = vadd.f32 %v1048_v54, %v1047_v50  ;;  %v1026_v57 = vpop.f32.mrb[2].mxu0  ;;  %v1050_v58 = vpop.f32.mrb[2].mxu1  ;;  %v383_v49 = vld [vmem:[#allocation2 + $0x70] sm:$0xff] }
 0x126   : > { %v1027_v60 = vpop.f32.mrb[3].mxu0  ;;  %v1051_v62 = vpop.f32.mrb[3].mxu1 }
 0x127   : > { %v706_v63 = vadd.f32 %v1025_v55, %v369_v51  ;;  %v714_v0 = vadd.f32 %v1049_v56, %v377_v53  ;;  %v1028_v1 = vadd.f32 %v1027_v60, %v1026_v57  ;;  %v1052_v2 = vadd.f32 %v1051_v62, %v1050_v58  ;;  %v376_v55 = vld [vmem:[#allocation2 + $0x38] sm:$0xff] }
 0x128   : > { %v384_v57 = vld [vmem:[#allocation2 + $0x78] sm:$0xff] }
 0x129   : > { %722 = vst [vmem:[#allocation2] sm:$0xff] %v706_v63  ;;  %730 = vst [vmem:[#allocation2 + $0x40] sm:$0xff] %v714_v0  ;;  %v707_v3 = vadd.f32 %v1028_v1, %v370_v59  ;;  %v715_v4 = vadd.f32 %v1052_v2, %v378_v61  ;;  %v1338_v2 = vld [vmem:[%s1421_s2] ss:$0 sm:$0xff] (!%p1000_p11) }
 0x12b   : > { %723 = vst [vmem:[#allocation2 + $0x8] sm:$0xff] %v707_v3  ;;  %731 = vst [vmem:[#allocation2 + $0x48] sm:$0xff] %v715_v4  ;;  %v1029_v5 = vpop.f32.mrb[4].mxu0  ;;  %v1053_v6 = vpop.f32.mrb[4].mxu1 }
 0x12c   : > { %v1030_v8 = vpop.f32.mrb[5].mxu0  ;;  %v1054_v10 = vpop.f32.mrb[5].mxu1 }
 0x12d   : > { %v1031_v11 = vadd.f32 %v1030_v8, %v1029_v5  ;;  %v1055_v12 = vadd.f32 %v1054_v10, %v1053_v6  ;;  %v1032_v13 = vpop.f32.mrb[6].mxu0  ;;  %v1056_v14 = vpop.f32.mrb[6].mxu1 }
 0x12e   : > { %v1033_v16 = vpop.f32.mrb[7].mxu0  ;;  %v1057_v18 = vpop.f32.mrb[7].mxu1 }
 0x12f   : > { %v708_v19 = vadd.f32 %v1031_v11, %v371_v7  ;;  %v716_v20 = vadd.f32 %v1055_v12, %v379_v9  ;;  %v1034_v21 = vadd.f32 %v1033_v16, %v1032_v13  ;;  %v1058_v22 = vadd.f32 %v1057_v18, %v1056_v14 }
 0x130   : > { %v742_v1 = vld [vmem:[#allocation2] sm:$0xff] (!%p1000_p11) }
 0x131   : > { %724 = vst [vmem:[#allocation2 + $0x10] sm:$0xff] %v708_v19  ;;  %732 = vst [vmem:[#allocation2 + $0x50] sm:$0xff] %v716_v20  ;;  %v709_v23 = vadd.f32 %v1034_v21, %v372_v15  ;;  %v717_v24 = vadd.f32 %v1058_v22, %v380_v17  ;;  %v765_v4 = vadd.f32 (!%p1000_p11), %v1338_v2, %v742_v1  ;;  %v750_v22 = vld [vmem:[#allocation2 + $0x40] sm:$0xff] (!%p1000_p11) }
 0x132   : > { %v743_v3 = vld [vmem:[#allocation2 + $0x8] sm:$0xff] (!%p1000_p11) }
 0x133   : > { %725 = vst [vmem:[#allocation2 + $0x18] sm:$0xff] %v709_v23  ;;  %733 = vst [vmem:[#allocation2 + $0x58] sm:$0xff] %v717_v24  ;;  %v1035_v25 = vpop.f32.mrb[8].mxu0  ;;  %v1059_v26 = vpop.f32.mrb[8].mxu1  ;;  %v766_v5 = vadd.f32 (!%p1000_p11), %v1338_v2, %v743_v3  ;;  %vm781_vm0 = vcmp.ge.f32.partialorder (!%p1000_p11), %v765_v4, 0.0  ;;  %v751_v23 = vld [vmem:[#allocation2 + $0x48] sm:$0xff] (!%p1000_p11) }
 0x134   : > { %v1036_v28 = vpop.f32.mrb[9].mxu0  ;;  %v1060_v30 = vpop.f32.mrb[9].mxu1  ;;  %v797_v15 = vmul.f32 (!%p1000_p11), 0.01, %v765_v4 }
 0x135   : > { %v1037_v31 = vadd.f32 %v1036_v28, %v1035_v25  ;;  %v1061_v32 = vadd.f32 %v1060_v30, %v1059_v26  ;;  %v1038_v33 = vpop.f32.mrb[10].mxu0  ;;  %v1062_v34 = vpop.f32.mrb[10].mxu1  ;;  %vm782_vm1 = vcmp.ge.f32.partialorder (!%p1000_p11), %v766_v5, 0.0  ;;  %v798_v16 = vmul.f32 (!%p1000_p11), 0.01, %v766_v5 }
 0x136   : > { %v1039_v36 = vpop.f32.mrb[11].mxu0  ;;  %v1063_v38 = vpop.f32.mrb[11].mxu1  ;;  %v813_v19 = vsel (!%p1000_p11), %vm781_vm0, %v765_v4, %v797_v15 }
 0x137   : > { %v710_v39 = vadd.f32 %v1037_v31, %v373_v27  ;;  %v718_v40 = vadd.f32 %v1061_v32, %v381_v29  ;;  %v1040_v41 = vadd.f32 %v1039_v36, %v1038_v33  ;;  %v1064_v42 = vadd.f32 %v1063_v38, %v1062_v34  ;;  %829 = vst [vmem:[%s1422_s3] sm:$0xff] (!%p1000_p11), %v813_v19 }
 0x138   : > { %v744_v6 = vld [vmem:[#allocation2 + $0x10] sm:$0xff] (!%p1000_p11)  ;;  %v814_v20 = vsel (!%p1000_p11), %vm782_vm1, %v766_v5, %v798_v16  ;;  %v773_v32 = vadd.f32 (!%p1000_p11), %v1338_v2, %v750_v22  ;;  %v774_v33 = vadd.f32 (!%p1000_p11), %v1338_v2, %v751_v23 }
 0x139   : > { %726 = vst [vmem:[#allocation2 + $0x20] sm:$0xff] %v710_v39  ;;  %734 = vst [vmem:[#allocation2 + $0x60] sm:$0xff] %v718_v40  ;;  %v711_v43 = vadd.f32 %v1040_v41, %v374_v35  ;;  %v719_v44 = vadd.f32 %v1064_v42, %v382_v37  ;;  %v767_v9 = vadd.f32 (!%p1000_p11), %v1338_v2, %v744_v6  ;;  %v752_v28 = vld [vmem:[#allocation2 + $0x50] sm:$0xff] (!%p1000_p11) }
 0x13a   : > { %v745_v7 = vld [vmem:[#allocation2 + $0x18] sm:$0xff] (!%p1000_p11)  ;;  %830 = vst [vmem:[%s1422_s3 + $0x8] sm:$0xff] (!%p1000_p11), %v814_v20  ;;  %vm789_vm8 = vcmp.ge.f32.partialorder (!%p1000_p11), %v773_v32, 0.0  ;;  %v805_v40 = vmul.f32 (!%p1000_p11), 0.01, %v773_v32  ;;  %vm790_vm9 = vcmp.ge.f32.partialorder (!%p1000_p11), %v774_v33, 0.0 }
 0x13b   : > { %727 = vst [vmem:[#allocation2 + $0x28] sm:$0xff] %v711_v43  ;;  %735 = vst [vmem:[#allocation2 + $0x68] sm:$0xff] %v719_v44  ;;  %v1041_v45 = vpop.f32.mrb[12].mxu0  ;;  %v1065_v46 = vpop.f32.mrb[12].mxu1  ;;  %v768_v10 = vadd.f32 (!%p1000_p11), %v1338_v2, %v745_v7  ;;  %vm783_vm2 = vcmp.ge.f32.partialorder (!%p1000_p11), %v767_v9, 0.0  ;;  %v753_v29 = vld [vmem:[#allocation2 + $0x58] sm:$0xff] (!%p1000_p11) }
 0x13c   : > { %v1042_v48 = vpop.f32.mrb[13].mxu0  ;;  %v1066_v50 = vpop.f32.mrb[13].mxu1  ;;  %v799_v17 = vmul.f32 (!%p1000_p11), 0.01, %v767_v9  ;;  %v806_v43 = vmul.f32 (!%p1000_p11), 0.01, %v774_v33 }
 0x13d   : > { %v1043_v51 = vadd.f32 %v1042_v48, %v1041_v45  ;;  %v1067_v52 = vadd.f32 %v1066_v50, %v1065_v46  ;;  %v1044_v53 = vpop.f32.mrb[14].mxu0  ;;  %v1068_v54 = vpop.f32.mrb[14].mxu1  ;;  %741 = sbr.rel (%p1000_p11) target bundleno = 338 (0x152), region = 78  ;;  %vm784_vm3 = vcmp.ge.f32.partialorder (!%p1000_p11), %v768_v10, 0.0  ;;  %v800_v18 = vmul.f32 (!%p1000_p11), 0.01, %v768_v10 }
 0x13e   : > { %v1045_v56 = vpop.f32.mrb[15].mxu0  ;;  %v1069_v58 = vpop.f32.mrb[15].mxu1  ;;  %v815_v24 = vsel (!%p1000_p11), %vm783_vm2, %v767_v9, %v799_v17  ;;  %v821_v45 = vsel (!%p1000_p11), %vm789_vm8, %v773_v32, %v805_v40  ;;  %v775_v46 = vadd.f32 (!%p1000_p11), %v1338_v2, %v752_v28  ;;  %v822_v48 = vsel (!%p1000_p11), %vm790_vm9, %v774_v33, %v806_v43 }
 0x13f   : > { %v712_v59 = vadd.f32 %v1043_v51, %v375_v47  ;;  %v720_v60 = vadd.f32 %v1067_v52, %v383_v49  ;;  %v1046_v61 = vadd.f32 %v1045_v56, %v1044_v53  ;;  %v1070_v62 = vadd.f32 %v1069_v58, %v1068_v54  ;;  %831 = vst [vmem:[%s1422_s3 + $0x10] sm:$0xff] (!%p1000_p11), %v815_v24 }
 0x140   : > { %v746_v8 = vld [vmem:[#allocation2 + $0x20] sm:$0xff] (!%p1000_p11)  ;;  %v816_v25 = vsel (!%p1000_p11), %vm784_vm3, %v768_v10, %v800_v18  ;;  %v776_v47 = vadd.f32 (!%p1000_p11), %v1338_v2, %v753_v29  ;;  %837 = vst [vmem:[%s1422_s3 + $0x40] sm:$0xff] (!%p1000_p11), %v821_v45  ;;  %838 = vst [vmem:[%s1422_s3 + $0x48] sm:$0xff] (!%p1000_p11), %v822_v48  ;;  %vm791_vm10 = vcmp.ge.f32.partialorder (!%p1000_p11), %v775_v46, 0.0  ;;  %v807_v53 = vmul.f32 (!%p1000_p11), 0.01, %v775_v46 }
 0x141   : > { %728 = vst [vmem:[#allocation2 + $0x30] sm:$0xff] %v712_v59  ;;  %736 = vst [vmem:[#allocation2 + $0x70] sm:$0xff] %v720_v60  ;;  %v713_v63 = vadd.f32 %v1046_v61, %v376_v55  ;;  %v721_v0 = vadd.f32 %v1070_v62, %v384_v57  ;;  %v769_v11 = vadd.f32 (!%p1000_p11), %v1338_v2, %v746_v8  ;;  %v754_v34 = vld [vmem:[#allocation2 + $0x60] sm:$0xff] (!%p1000_p11) }
 0x142   : > { %v747_v12 = vld [vmem:[#allocation2 + $0x28] sm:$0xff] (!%p1000_p11)  ;;  %832 = vst [vmem:[%s1422_s3 + $0x18] sm:$0xff] (!%p1000_p11), %v816_v25  ;;  %v777_v49 = vadd.f32 (!%p1000_p11), %v1338_v2, %v754_v34  ;;  %vm792_vm11 = vcmp.ge.f32.partialorder (!%p1000_p11), %v776_v47, 0.0  ;;  %v808_v54 = vmul.f32 (!%p1000_p11), 0.01, %v776_v47  ;;  %v823_v57 = vsel (!%p1000_p11), %vm791_vm10, %v775_v46, %v807_v53 }
 0x143   : > { %729 = vst [vmem:[#allocation2 + $0x38] sm:$0xff] %v713_v63  ;;  %737 = vst [vmem:[#allocation2 + $0x78] sm:$0xff] %v721_v0  ;;  %vm785_vm4 = vcmp.ge.f32.partialorder (!%p1000_p11), %v769_v11, 0.0  ;;  %v801_v21 = vmul.f32 (!%p1000_p11), 0.01, %v769_v11  ;;  %v770_v26 = vadd.f32 (!%p1000_p11), %v1338_v2, %v747_v12  ;;  %v755_v35 = vld [vmem:[#allocation2 + $0x68] sm:$0xff] (!%p1000_p11) }
 0x144   : > { %v778_v50 = vadd.f32 %v1338_v2, %v755_v35  ;;  %vm793_vm12 = vcmp.ge.f32.partialorder %v777_v49, 0.0  ;;  %v809_v55 = vmul.f32 0.01, %v777_v49  ;;  %v824_v58 = vsel %vm792_vm11, %v776_v47, %v808_v54  ;;  %839 = vst [vmem:[%s1422_s3 + $0x50] sm:$0xff] %v823_v57 }
 0x145   : > { %v817_v30 = vsel %vm785_vm4, %v769_v11, %v801_v21  ;;  %vm786_vm5 = vcmp.ge.f32.partialorder %v770_v26, 0.0  ;;  %v802_v37 = vmul.f32 0.01, %v770_v26  ;;  %840 = vst [vmem:[%s1422_s3 + $0x58] sm:$0xff] %v824_v58 }
 0x146   : > { %833 = vst [vmem:[%s1422_s3 + $0x20] sm:$0xff] %v817_v30  ;;  %vm794_vm13 = vcmp.ge.f32.partialorder %v778_v50, 0.0  ;;  %v810_v56 = vmul.f32 0.01, %v778_v50  ;;  %v825_v60 = vsel %vm793_vm12, %v777_v49, %v809_v55 }
 0x147   : > { %v818_v41 = vsel %vm786_vm5, %v770_v26, %v802_v37  ;;  %841 = vst [vmem:[%s1422_s3 + $0x60] sm:$0xff] %v825_v60 }
 0x148   : > { %v748_v13 = vld [vmem:[#allocation2 + $0x30] sm:$0xff]  ;;  %834 = vst [vmem:[%s1422_s3 + $0x28] sm:$0xff] %v818_v41  ;;  %v826_v61 = vsel %vm794_vm13, %v778_v50, %v810_v56 }
 0x149   : > { %v771_v27 = vadd.f32 %v1338_v2, %v748_v13  ;;  %v756_v36 = vld [vmem:[#allocation2 + $0x70] sm:$0xff]  ;;  %842 = vst [vmem:[%s1422_s3 + $0x68] sm:$0xff] %v826_v61 }
 0x14a   : > { %v749_v14 = vld [vmem:[#allocation2 + $0x38] sm:$0xff]  ;;  %v779_v51 = vadd.f32 %v1338_v2, %v756_v36 }
 0x14b   : > { %v772_v31 = vadd.f32 %v1338_v2, %v749_v14  ;;  %vm787_vm6 = vcmp.ge.f32.partialorder %v771_v27, 0.0  ;;  %v803_v38 = vmul.f32 0.01, %v771_v27  ;;  %v757_v52 = vld [vmem:[#allocation2 + $0x78] sm:$0xff] }
 0x14c   : > { %vm795_vm14 = vcmp.ge.f32.partialorder %v779_v51, 0.0  ;;  %v811_v59 = vmul.f32 0.01, %v779_v51  ;;  %v780_v62 = vadd.f32 %v1338_v2, %v757_v52 }
 0x14d   : > { %vm788_vm7 = vcmp.ge.f32.partialorder %v772_v31, 0.0  ;;  %v804_v39 = vmul.f32 0.01, %v772_v31  ;;  %v819_v42 = vsel %vm787_vm6, %v771_v27, %v803_v38 }
 0x14e   : > { %835 = vst [vmem:[%s1422_s3 + $0x30] sm:$0xff] %v819_v42  ;;  %v827_v63 = vsel %vm795_vm14, %v779_v51, %v811_v59  ;;  %vm796_vm15 = vcmp.ge.f32.partialorder %v780_v62, 0.0  ;;  %v812_v0 = vmul.f32 0.01, %v780_v62 }
 0x14f   : > { %v820_v44 = vsel %vm788_vm7, %v772_v31, %v804_v39  ;;  %843 = vst [vmem:[%s1422_s3 + $0x70] sm:$0xff] %v827_v63 }
 0x150   : > { %836 = vst [vmem:[%s1422_s3 + $0x38] sm:$0xff] %v820_v44  ;;  %v828_v1 = vsel %vm796_vm15, %v780_v62, %v812_v0 }
 0x151   : > { %844 = vst [vmem:[%s1422_s3 + $0x78] sm:$0xff] %v828_v1 }
 0x152 PF: > { %s13_s16 = sadd.s32 1, %s1206_s16   ;;  %s1423_s12 = smov %s1194_s13 }
 0x153   : > { %p10_p12 = scmp.ge.s32.totalorder %s13_s16, 4   ;;  %s1424_s13 = smov %s1264_s20 }
 0x154   : > { %s1425_s14 = smov %s1202_s15  ;;  %s1426_s15 = smov %s1428_s17 }
 0x155   :  { %12 = sbr.rel (!%p10_p12) target bundleno = 3 (0x3), region = 119 }

// kernel: _lambda_.11
= control target key start
LH: loop header
LB: loop body
LE: loop exit
PB: predicated region body
PF: predicated region fallthrough
CT: control target
= control target key end

     0   :  { %s1181_s12 = smov 0   ;;  %s1183_s13 = smov 0   ;;  %s1353_s0 = inlined_call_operand.vmem [shape: bf16[128,1024], index: 0, kind: input, shape index: {}]   ;;  %s1354_s1 = inlined_call_operand.vmem [shape: bf16[1024,128], index: 1, kind: input, shape index: {}]   ;;  %s1355_s2 = inlined_call_operand.vmem [shape: f32[1,128], index: 2, kind: input, shape index: {}]   ;;  %s1356_s3 = inlined_call_operand.vmem [shape: f32[128,128], index: 3, kind: output, shape index: {}]  }
   0x1   :  { %s1185_s14 = smov 0   ;;  %s1187_s15 = smov 0  }
   0x2   :  { %s1189_s16 = smov 0  }
   0x3 LB: > { %s25_s17 = sadd.s32 1, %s1154_s15  ;;  %p48_p1 = scmp.ne.s32.totalorder %s1146_s13, %s1142_s12  ;;  %s1158_s16 = sphi %s1189_s16, %s13_s16   ;;  %s1154_s15 = sphi %s1187_s15, %s1360_s15   ;;  %s1150_s14 = sphi %s1185_s14, %s1359_s14   ;;  %s1146_s13 = sphi %s1183_s13, %s1358_s13   ;;  %s1142_s12 = sphi %s1181_s12, %s1357_s12  }
   0x4   : > { %p26_p0 = scmp.ge.s32.totalorder %s25_s17, 4  ;;  %p49_p2 = scmp.eq.s32.totalorder %s1158_s16, 0 }
   0x5   : > { %s41_s19 = sadd.s32 1, %s1146_s13  ;;  %p911_p5 = scmp.ge.s32.totalorder %s1158_s16, 4 }
   0x6   : > { %s1362_s17 = smov (%p26_p0, %s25_s17), 0  ;;  %p50_p3 = por %p49_p2, %p48_p1 }
   0x7   : > { %s37_s18 = ssub.s32 %s1154_s15, %s1362_s17  ;;  %162 = sbr.rel (%p911_p5) target bundleno = 34 (0x22), region = 20 }
   0x8   : > { %p39_p4 = scmp.eq.s32.totalorder %s37_s18, 0 }
   0xa   : > { %s1216_s20 = scalar_select %p39_p4, %s1146_s13, %s41_s19  }
   0xe   : > { %165 = sbr.rel (!%p50_p3) target bundleno = 34 (0x22), region = 24  ;;  %s167_s21 = sand.u32 (%p50_p3), 1, %s1146_s13  }
   0xf   : > { %s958_s22 = sshll.u32 (%p50_p3), %s1154_s15, 3  ;;  %s912_s23 = sshll.u32 (%p50_p3), %s167_s21, 7 }
  0x10   : > { %s1224_s26 = scalar_lea.vmem (%p50_p3), %s1353_s0, %s958_s22  ;;  %s169_s27 = scalar_lea.vmem (%p50_p3), [#allocation3], %s912_s23 }
  0x11   : > { %v233_v0 = vld [vmem:[%s1224_s26] sm:$0xff] (%p50_p3) }
  0x12   : > { %v235_v1 = vld [vmem:[%s1224_s26 + $0x20] sm:$0xff] (%p50_p3)  ;;  %234 = vst [vmem:[%s169_s27] sm:$0xff] (%p50_p3), %v233_v0 }
  0x13   : > { %v237_v2 = vld [vmem:[%s1224_s26 + $0x40] sm:$0xff] (%p50_p3)  ;;  %236 = vst [vmem:[%s169_s27 + $0x8] sm:$0xff] (%p50_p3), %v235_v1 }
  0x14   : > { %238 = vst [vmem:[%s169_s27 + $0x10] sm:$0xff] (%p50_p3), %v237_v2  ;;  %v239_v3 = vld [vmem:[%s1224_s26 + $0x60] sm:$0xff] (%p50_p3) }
  0x15   : > { %v241_v4 = vld [vmem:[%s1224_s26 + $0x80] sm:$0xff]  ;;  %240 = vst [vmem:[%s169_s27 + $0x18] sm:$0xff] %v239_v3 }
  0x16   : > { %v243_v5 = vld [vmem:[%s1224_s26 + $0xa0] sm:$0xff]  ;;  %242 = vst [vmem:[%s169_s27 + $0x20] sm:$0xff] %v241_v4 }
  0x17   : > { %244 = vst [vmem:[%s169_s27 + $0x28] sm:$0xff] %v243_v5  ;;  %v245_v6 = vld [vmem:[%s1224_s26 + $0xc0] sm:$0xff] }
  0x18   : > { %v247_v7 = vld [vmem:[%s1224_s26 + $0xe0] sm:$0xff]  ;;  %246 = vst [vmem:[%s169_s27 + $0x30] sm:$0xff] %v245_v6 }
  0x19   : > { %v249_v8 = vld [vmem:[%s1224_s26 + $0x100] sm:$0xff]  ;;  %248 = vst [vmem:[%s169_s27 + $0x38] sm:$0xff] %v247_v7 }
  0x1a   : > { %250 = vst [vmem:[%s169_s27 + $0x40] sm:$0xff] %v249_v8  ;;  %v251_v9 = vld [vmem:[%s1224_s26 + $0x120] sm:$0xff] }
  0x1b   : > { %v253_v10 = vld [vmem:[%s1224_s26 + $0x140] sm:$0xff]  ;;  %252 = vst [vmem:[%s169_s27 + $0x48] sm:$0xff] %v251_v9 }
  0x1c   : > { %v255_v11 = vld [vmem:[%s1224_s26 + $0x160] sm:$0xff]  ;;  %254 = vst [vmem:[%s169_s27 + $0x50] sm:$0xff] %v253_v10 }
  0x1d   : > { %256 = vst [vmem:[%s169_s27 + $0x58] sm:$0xff] %v255_v11  ;;  %v257_v12 = vld [vmem:[%s1224_s26 + $0x180] sm:$0xff] }
  0x1e   : > { %v259_v13 = vld [vmem:[%s1224_s26 + $0x1a0] sm:$0xff]  ;;  %258 = vst [vmem:[%s169_s27 + $0x60] sm:$0xff] %v257_v12 }
  0x1f   : > { %v261_v14 = vld [vmem:[%s1224_s26 + $0x1c0] sm:$0xff]  ;;  %260 = vst [vmem:[%s169_s27 + $0x68] sm:$0xff] %v259_v13 }
  0x20   : > { %262 = vst [vmem:[%s169_s27 + $0x70] sm:$0xff] %v261_v14  ;;  %v263_v15 = vld [vmem:[%s1224_s26 + $0x1e0] sm:$0xff] }
  0x21   : > { %264 = vst [vmem:[%s169_s27 + $0x78] sm:$0xff] %v263_v15 }
  0x22 PF: > { %p915_p6 = scmp.ge.s32.totalorder %s1158_s16, 1  ;;  %p281_p7 = scmp.lt.s32.totalorder %s1158_s16, 5 }
  0x24   : > { %p282_p8 = pnand %p915_p6, %p281_p7 }
  0x25   : > { %s288_s28 = sand.u32 (!%p282_p8), 1, %s1142_s12   ;;  %s917_s29 = sshll.u32 (!%p282_p8), %s1150_s14, 5 }
  0x26   : > { %285 = sbr.rel (%p282_p8) target bundleno = 343 (0x157), region = 66  ;;  %s916_s30 = sshll.u32 (!%p282_p8), %s288_s28, 7 }
  0x27   : > { %p328_p9 = scmp.lt.s32.totalorder (!%p282_p8), %s917_s29, 127  ;;  %s1251_s8 = scalar_lea.vmem (!%p282_p8), [#allocation3], %s916_s30 }
  0x28   : > { %p919_p10 = scmp.ne.s32.totalorder (!%p282_p8), %s1150_s14, 0 }
  0x2d   : > { %s1364_s29 = smov (!%p328_p9, %s917_s29), 127  ;;  %352 = sbr.rel (%p919_p10) target bundleno = 55 (0x37), region = 74 }
  0x2e   : > { %s918_s4 = sshll.u32 %s1364_s29, 2  ;;  %v1160_v16 = vmov (!%p919_p10), 0.0  }
  0x2f   : > { %s1249_s7 = scalar_lea.vmem %s1354_s1, %s918_s4  ;;  %353 = vst [vmem:[#allocation2] sm:$0xff] (!%p919_p10), %v1160_v16  ;;  %354 = vst [vmem:[#allocation2 + $0x8] sm:$0xff] (!%p919_p10), %v1160_v16 }
  0x30   : > { %355 = vst [vmem:[#allocation2 + $0x10] sm:$0xff] (!%p919_p10), %v1160_v16  ;;  %356 = vst [vmem:[#allocation2 + $0x18] sm:$0xff] (!%p919_p10), %v1160_v16 }
  0x31   : > { %357 = vst [vmem:[#allocation2 + $0x20] sm:$0xff] (!%p919_p10), %v1160_v16  ;;  %358 = vst [vmem:[#allocation2 + $0x28] sm:$0xff] (!%p919_p10), %v1160_v16 }
  0x32   : > { %359 = vst [vmem:[#allocation2 + $0x30] sm:$0xff] (!%p919_p10), %v1160_v16  ;;  %360 = vst [vmem:[#allocation2 + $0x38] sm:$0xff] (!%p919_p10), %v1160_v16 }
  0x33   : > { %361 = vst [vmem:[#allocation2 + $0x40] sm:$0xff] (!%p919_p10), %v1160_v16  ;;  %362 = vst [vmem:[#allocation2 + $0x48] sm:$0xff] (!%p919_p10), %v1160_v16 }
  0x34   : > { %363 = vst [vmem:[#allocation2 + $0x50] sm:$0xff] %v1160_v16  ;;  %364 = vst [vmem:[#allocation2 + $0x58] sm:$0xff] %v1160_v16 }
  0x35   : > { %365 = vst [vmem:[#allocation2 + $0x60] sm:$0xff] %v1160_v16  ;;  %366 = vst [vmem:[#allocation2 + $0x68] sm:$0xff] %v1160_v16 }
  0x36   : > { %367 = vst [vmem:[#allocation2 + $0x70] sm:$0xff] %v1160_v16  ;;  %368 = vst [vmem:[#allocation2 + $0x78] sm:$0xff] %v1160_v16 }
  0x37 PF: > { %v1080_v17 = vld [vmem:[%s1249_s7 + $0x40] sm:$0xff]   ;;  %v1082_v19 = vld [vmem:[%s1249_s7 + $0x48] sm:$0xff]   ;;  %v1084_v21 = vld [vmem:[%s1249_s7 + $0x50] sm:$0xff]   ;;  %p952_p11 = scmp.ne.s32.totalorder %s1150_s14, 3 }
  0x38   : > { %v1081_v18 = vld [vmem:[%s1249_s7] sm:$0xff]   ;;  %959 = vmatprep.subr.bf16.mxu0 %v1080_v17  ;;  %1023 = vmatprep.subr.bf16.mxu1 %v1080_v17  ;;  %v1083_v20 = vld [vmem:[%s1249_s7 + $0x8] sm:$0xff]   ;;  %v1085_v22 = vld [vmem:[%s1249_s7 + $0x10] sm:$0xff]  }
  0x39   : > { %960 = vmatpush3.bf16.msra.mxu0 %v1081_v18  ;;  %1031 = vmatpush3.bf16.msra.mxu1 %v1081_v18  ;;  %v1086_v23 = vld [vmem:[%s1249_s7 + $0x58] sm:$0xff]   ;;  %v1088_v25 = vld [vmem:[%s1249_s7 + $0x60] sm:$0xff]   ;;  %v1090_v27 = vld [vmem:[%s1249_s7 + $0x68] sm:$0xff]  }
  0x3a   : > { %961 = vmatprep.subr.bf16.mxu0 %v1082_v19  ;;  %1024 = vmatprep.subr.bf16.mxu1 %v1082_v19  ;;  %v1087_v24 = vld [vmem:[%s1249_s7 + $0x18] sm:$0xff]   ;;  %v1089_v26 = vld [vmem:[%s1249_s7 + $0x20] sm:$0xff]   ;;  %v1091_v30 = vld [vmem:[%s1249_s7 + $0x28] sm:$0xff]  }
  0x3b   : > { %v1098_v28 = vld [vmem:[%s1251_s8 + $0x4] ss:$8 sps:$4 sm:$0xff]   ;;  %v1092_v31 = vld [vmem:[%s1249_s7 + $0x70] sm:$0xff]   ;;  %v1094_v33 = vld [vmem:[%s1249_s7 + $0x78] sm:$0xff]  }
  0x3c   : > { %v1101_v29 = vld [vmem:[%s1251_s8 + $0x44] ss:$8 sps:$4 sm:$0xff]   ;;  %641 = vmatprep.mubr.bf16.mxu0 %v1098_v28  ;;  %v1093_v32 = vld [vmem:[%s1249_s7 + $0x30] sm:$0xff]   ;;  %v1095_v34 = vld [vmem:[%s1249_s7 + $0x38] sm:$0xff]  }
  0x3d   : > { %962 = vmatpush3.bf16.msra.mxu0 %v1083_v20  ;;  %1032 = vmatpush3.bf16.msra.mxu1 %v1083_v20  ;;  %v1096_v35 = vld [vmem:[%s1251_s8] ss:$8 sps:$4 sm:$0xff]   ;;  %v1102_v37 = vld [vmem:[%s1251_s8 + $0x14] ss:$8 sps:$4 sm:$0xff]   ;;  %v1106_v39 = vld [vmem:[%s1251_s8 + $0x10] ss:$8 sps:$4 sm:$0xff]  }
  0x3e   : > { %963 = vmatprep.subr.bf16.mxu0 %v1084_v21  ;;  %1025 = vmatprep.subr.bf16.mxu1 %v1084_v21  ;;  %v1099_v36 = vld [vmem:[%s1251_s8 + $0x40] ss:$8 sps:$4 sm:$0xff]   ;;  %v1104_v38 = vld [vmem:[%s1251_s8 + $0x54] ss:$8 sps:$4 sm:$0xff]   ;;  %v1107_v40 = vld [vmem:[%s1251_s8 + $0x50] ss:$8 sps:$4 sm:$0xff]  }
  0x3f   : > { %673 = vmatprep.mubr.bf16.mxu1 %v1101_v29  ;;  %v1108_v41 = vld [vmem:[%s1251_s8 + $0x24] ss:$8 sps:$4 sm:$0xff]   ;;  %v1112_v43 = vld [vmem:[%s1251_s8 + $0x20] ss:$8 sps:$4 sm:$0xff]   ;;  %v1114_v45 = vld [vmem:[%s1251_s8 + $0x34] ss:$8 sps:$4 sm:$0xff]  }
  0x40   : > { %v1110_v42 = vld [vmem:[%s1251_s8 + $0x64] ss:$8 sps:$4 sm:$0xff]   ;;  %v1113_v44 = vld [vmem:[%s1251_s8 + $0x60] ss:$8 sps:$4 sm:$0xff]   ;;  %v1116_v46 = vld [vmem:[%s1251_s8 + $0x74] ss:$8 sps:$4 sm:$0xff]  }
  0x41   : > { %964 = vmatpush3.bf16.msra.mxu0 %v1085_v22  ;;  %1033 = vmatpush3.bf16.msra.mxu1 %v1085_v22  ;;  %v1118_v47 = vld [vmem:[%s1251_s8 + $0x30] ss:$8 sps:$4 sm:$0xff]   ;;  %v369_v51 = vld [vmem:[#allocation2] sm:$0xff]  ;;  %v370_v59 = vld [vmem:[#allocation2 + $0x8] sm:$0xff] }
  0x42   : > { %965 = vmatprep.subr.bf16.mxu0 %v1086_v23  ;;  %1026 = vmatprep.subr.bf16.mxu1 %v1086_v23  ;;  %v1119_v48 = vld [vmem:[%s1251_s8 + $0x70] ss:$8 sps:$4 sm:$0xff]   ;;  %v377_v53 = vld [vmem:[#allocation2 + $0x40] sm:$0xff]  ;;  %v378_v61 = vld [vmem:[#allocation2 + $0x48] sm:$0xff] }
  0x43   : > { %v371_v7 = vld [vmem:[#allocation2 + $0x10] sm:$0xff]  ;;  %v372_v15 = vld [vmem:[#allocation2 + $0x18] sm:$0xff]  ;;  %v381_v29 = vld [vmem:[#allocation2 + $0x60] sm:$0xff] }
  0x44   : > { %v379_v9 = vld [vmem:[#allocation2 + $0x50] sm:$0xff]  ;;  %v380_v17 = vld [vmem:[#allocation2 + $0x58] sm:$0xff] }
  0x45   : > { %966 = vmatpush3.bf16.msra.mxu0 %v1087_v24  ;;  %1034 = vmatpush3.bf16.msra.mxu1 %v1087_v24 }
  0x46   : > { %967 = vmatprep.subr.bf16.mxu0 %v1088_v25  ;;  %1027 = vmatprep.subr.bf16.mxu1 %v1088_v25 }
  0x49   : > { %968 = vmatpush3.bf16.msra.mxu0 %v1089_v26  ;;  %1035 = vmatpush3.bf16.msra.mxu1 %v1089_v26 }
  0x4a   : > { %969 = vmatprep.subr.bf16.mxu0 %v1090_v27  ;;  %1028 = vmatprep.subr.bf16.mxu1 %v1090_v27  ;;  %v373_v27 = vld [vmem:[#allocation2 + $0x20] sm:$0xff] }
  0x4d   : > { %970 = vmatpush3.bf16.msra.mxu0 %v1091_v30  ;;  %1036 = vmatpush3.bf16.msra.mxu1 %v1091_v30 }
  0x4e   : > { %971 = vmatprep.subr.bf16.mxu0 %v1092_v31  ;;  %1029 = vmatprep.subr.bf16.mxu1 %v1092_v31 }
  0x51   : > { %972 = vmatpush3.bf16.msra.mxu0 %v1093_v32  ;;  %1037 = vmatpush3.bf16.msra.mxu1 %v1093_v32 }
  0x52   : > { %973 = vmatprep.subr.bf16.mxu0 %v1094_v33  ;;  %1030 = vmatprep.subr.bf16.mxu1 %v1094_v33 }
  0x55   : > { %974 = vmatpush3.bf16.msra.mxu0 %v1095_v34  ;;  %1038 = vmatpush3.bf16.msra.mxu1 %v1095_v34 }
  0x58   : > { %642 = vmatmul.mubr.bf16.vlgmr.msra.gmra.mrb[0].mxu0 %v1096_v35  ;;  %674 = vmatmul.mubr.bf16.vlgmr.msra.gmra.mrb[0].mxu1 %v1099_v36  ;;  %v374_v35 = vld [vmem:[#allocation2 + $0x28] sm:$0xff] }
  0x59   : > { %649 = vmatprep.mubr.bf16.mxu0 %v1102_v37  ;;  %681 = vmatprep.mubr.bf16.mxu1 %v1104_v38  ;;  %v382_v37 = vld [vmem:[#allocation2 + $0x68] sm:$0xff] }
  0x60   : > { %650 = vmatmul.mubr.bf16.gmra.mrb[4].mxu0 %v1106_v39  ;;  %682 = vmatmul.mubr.bf16.gmra.mrb[4].mxu1 %v1107_v40 }
  0x61   : > { %657 = vmatprep.mubr.bf16.mxu0 %v1108_v41  ;;  %689 = vmatprep.mubr.bf16.mxu1 %v1110_v42 }
  0x68   : > { %658 = vmatmul.mubr.bf16.gmra.mrb[8].mxu0 %v1112_v43  ;;  %690 = vmatmul.mubr.bf16.gmra.mrb[8].mxu1 %v1113_v44 }
  0x69   : > { %665 = vmatprep.mubr.bf16.mxu0 %v1114_v45  ;;  %697 = vmatprep.mubr.bf16.mxu1 %v1116_v46 }
  0x70   : > { %666 = vmatmul.mubr.bf16.gmra.mrb[12].mxu0 %v1118_v47  ;;  %698 = vmatmul.mubr.bf16.gmra.mrb[12].mxu1 %v1119_v48  ;;  %v375_v47 = vld [vmem:[#allocation2 + $0x30] sm:$0xff] }
 0x12b   : > { %v975_v49 = vpop.f32.mrb[0].mxu0  ;;  %v999_v50 = vpop.f32.mrb[0].mxu1 }
 0x12c   : > { %v976_v52 = vpop.f32.mrb[1].mxu0  ;;  %v1000_v54 = vpop.f32.mrb[1].mxu1 }
 0x12d   : > { %v977_v55 = vadd.f32 %v976_v52, %v975_v49  ;;  %v1001_v56 = vadd.f32 %v1000_v54, %v999_v50  ;;  %v978_v57 = vpop.f32.mrb[2].mxu0  ;;  %v1002_v58 = vpop.f32.mrb[2].mxu1  ;;  %v383_v49 = vld [vmem:[#allocation2 + $0x70] sm:$0xff] }
 0x12e   : > { %v979_v60 = vpop.f32.mrb[3].mxu0  ;;  %v1003_v62 = vpop.f32.mrb[3].mxu1 }
 0x12f   : > { %v706_v63 = vadd.f32 %v977_v55, %v369_v51  ;;  %v714_v0 = vadd.f32 %v1001_v56, %v377_v53  ;;  %v980_v1 = vadd.f32 %v979_v60, %v978_v57  ;;  %v1004_v2 = vadd.f32 %v1003_v62, %v1002_v58  ;;  %v376_v55 = vld [vmem:[#allocation2 + $0x38] sm:$0xff] }
 0x130   : > { %v384_v57 = vld [vmem:[#allocation2 + $0x78] sm:$0xff] }
 0x131   : > { %722 = vst [vmem:[#allocation2] sm:$0xff] %v706_v63  ;;  %730 = vst [vmem:[#allocation2 + $0x40] sm:$0xff] %v714_v0  ;;  %v707_v3 = vadd.f32 %v980_v1, %v370_v59  ;;  %v715_v4 = vadd.f32 %v1004_v2, %v378_v61  ;;  %v953_v2 = vld [vmem:[%s1355_s2] ss:$0 sm:$0xff] (!%p952_p11) }
 0x133   : > { %723 = vst [vmem:[#allocation2 + $0x8] sm:$0xff] %v707_v3  ;;  %731 = vst [vmem:[#allocation2 + $0x48] sm:$0xff] %v715_v4  ;;  %v981_v5 = vpop.f32.mrb[4].mxu0  ;;  %v1005_v6 = vpop.f32.mrb[4].mxu1 }
 0x134   : > { %v982_v8 = vpop.f32.mrb[5].mxu0  ;;  %v1006_v10 = vpop.f32.mrb[5].mxu1 }
 0x135   : > { %v983_v11 = vadd.f32 %v982_v8, %v981_v5  ;;  %v1007_v12 = vadd.f32 %v1006_v10, %v1005_v6  ;;  %v984_v13 = vpop.f32.mrb[6].mxu0  ;;  %v1008_v14 = vpop.f32.mrb[6].mxu1 }
 0x136   : > { %v985_v16 = vpop.f32.mrb[7].mxu0  ;;  %v1009_v18 = vpop.f32.mrb[7].mxu1 }
 0x137   : > { %v708_v19 = vadd.f32 %v983_v11, %v371_v7  ;;  %v716_v20 = vadd.f32 %v1007_v12, %v379_v9  ;;  %v986_v21 = vadd.f32 %v985_v16, %v984_v13  ;;  %v1010_v22 = vadd.f32 %v1009_v18, %v1008_v14 }
 0x138   : > { %v742_v1 = vld [vmem:[#allocation2] sm:$0xff] (!%p952_p11) }
 0x139   : > { %724 = vst [vmem:[#allocation2 + $0x10] sm:$0xff] %v708_v19  ;;  %732 = vst [vmem:[#allocation2 + $0x50] sm:$0xff] %v716_v20  ;;  %v709_v23 = vadd.f32 %v986_v21, %v372_v15  ;;  %v717_v24 = vadd.f32 %v1010_v22, %v380_v17  ;;  %v765_v4 = vadd.f32 (!%p952_p11), %v953_v2, %v742_v1  ;;  %v750_v18 = vld [vmem:[#allocation2 + $0x40] sm:$0xff] (!%p952_p11) }
 0x13a   : > { %v743_v3 = vld [vmem:[#allocation2 + $0x8] sm:$0xff] (!%p952_p11)  ;;  %v773_v21 = vadd.f32 (!%p952_p11), %v953_v2, %v750_v18 }
 0x13b   : > { %725 = vst [vmem:[#allocation2 + $0x18] sm:$0xff] %v709_v23  ;;  %733 = vst [vmem:[#allocation2 + $0x58] sm:$0xff] %v717_v24  ;;  %v987_v25 = vpop.f32.mrb[8].mxu0  ;;  %v1011_v26 = vpop.f32.mrb[8].mxu1  ;;  %v766_v5 = vadd.f32 (!%p952_p11), %v953_v2, %v743_v3  ;;  %v751_v19 = vld [vmem:[#allocation2 + $0x48] sm:$0xff] (!%p952_p11) }
 0x13c   : > { %v988_v28 = vpop.f32.mrb[9].mxu0  ;;  %v1012_v30 = vpop.f32.mrb[9].mxu1  ;;  %781 = vst [vmem:[%s1356_s3] sm:$0xff] (!%p952_p11), %v765_v4  ;;  %v774_v22 = vadd.f32 (!%p952_p11), %v953_v2, %v751_v19  ;;  %789 = vst [vmem:[%s1356_s3 + $0x40] sm:$0xff] (!%p952_p11), %v773_v21 }
 0x13d   : > { %v989_v31 = vadd.f32 %v988_v28, %v987_v25  ;;  %v1013_v32 = vadd.f32 %v1012_v30, %v1011_v26  ;;  %v990_v33 = vpop.f32.mrb[10].mxu0  ;;  %v1014_v34 = vpop.f32.mrb[10].mxu1  ;;  %782 = vst [vmem:[%s1356_s3 + $0x8] sm:$0xff] (!%p952_p11), %v766_v5 }
 0x13e   : > { %v991_v36 = vpop.f32.mrb[11].mxu0  ;;  %v1015_v38 = vpop.f32.mrb[11].mxu1  ;;  %790 = vst [vmem:[%s1356_s3 + $0x48] sm:$0xff] (!%p952_p11), %v774_v22 }
 0x13f   : > { %v710_v39 = vadd.f32 %v989_v31, %v373_v27  ;;  %v718_v40 = vadd.f32 %v1013_v32, %v381_v29  ;;  %v992_v41 = vadd.f32 %v991_v36, %v990_v33  ;;  %v1016_v42 = vadd.f32 %v1015_v38, %v1014_v34 }
 0x140   : > { %v744_v6 = vld [vmem:[#allocation2 + $0x10] sm:$0xff] (!%p952_p11) }
 0x141   : > { %726 = vst [vmem:[#allocation2 + $0x20] sm:$0xff] %v710_v39  ;;  %734 = vst [vmem:[#allocation2 + $0x60] sm:$0xff] %v718_v40  ;;  %v711_v43 = vadd.f32 %v992_v41, %v374_v35  ;;  %v719_v44 = vadd.f32 %v1016_v42, %v382_v37  ;;  %v767_v9 = vadd.f32 (!%p952_p11), %v953_v2, %v744_v6  ;;  %v752_v20 = vld [vmem:[#allocation2 + $0x50] sm:$0xff] (!%p952_p11) }
 0x142   : > { %v745_v7 = vld [vmem:[#allocation2 + $0x18] sm:$0xff] (!%p952_p11)  ;;  %v775_v23 = vadd.f32 (!%p952_p11), %v953_v2, %v752_v20 }
 0x143   : > { %727 = vst [vmem:[#allocation2 + $0x28] sm:$0xff] %v711_v43  ;;  %735 = vst [vmem:[#allocation2 + $0x68] sm:$0xff] %v719_v44  ;;  %v993_v45 = vpop.f32.mrb[12].mxu0  ;;  %v1017_v46 = vpop.f32.mrb[12].mxu1  ;;  %v768_v10 = vadd.f32 (!%p952_p11), %v953_v2, %v745_v7  ;;  %v753_v24 = vld [vmem:[#allocation2 + $0x58] sm:$0xff] (!%p952_p11) }
 0x144   : > { %v994_v48 = vpop.f32.mrb[13].mxu0  ;;  %v1018_v50 = vpop.f32.mrb[13].mxu1  ;;  %783 = vst [vmem:[%s1356_s3 + $0x10] sm:$0xff] (!%p952_p11), %v767_v9  ;;  %v776_v27 = vadd.f32 (!%p952_p11), %v953_v2, %v753_v24  ;;  %791 = vst [vmem:[%s1356_s3 + $0x50] sm:$0xff] (!%p952_p11), %v775_v23 }
 0x145   : > { %v995_v51 = vadd.f32 %v994_v48, %v993_v45  ;;  %v1019_v52 = vadd.f32 %v1018_v50, %v1017_v46  ;;  %v996_v53 = vpop.f32.mrb[14].mxu0  ;;  %v1020_v54 = vpop.f32.mrb[14].mxu1  ;;  %741 = sbr.rel (%p952_p11) target bundleno = 343 (0x157), region = 78  ;;  %784 = vst [vmem:[%s1356_s3 + $0x18] sm:$0xff] (!%p952_p11), %v768_v10 }
 0x146   : > { %v997_v56 = vpop.f32.mrb[15].mxu0  ;;  %v1021_v58 = vpop.f32.mrb[15].mxu1  ;;  %792 = vst [vmem:[%s1356_s3 + $0x58] sm:$0xff] (!%p952_p11), %v776_v27 }
 0x147   : > { %v712_v59 = vadd.f32 %v995_v51, %v375_v47  ;;  %v720_v60 = vadd.f32 %v1019_v52, %v383_v49  ;;  %v998_v61 = vadd.f32 %v997_v56, %v996_v53  ;;  %v1022_v62 = vadd.f32 %v1021_v58, %v1020_v54 }
 0x148   : > { %v746_v8 = vld [vmem:[#allocation2 + $0x20] sm:$0xff] (!%p952_p11) }
 0x149   : > { %728 = vst [vmem:[#allocation2 + $0x30] sm:$0xff] %v712_v59  ;;  %736 = vst [vmem:[#allocation2 + $0x70] sm:$0xff] %v720_v60  ;;  %v713_v63 = vadd.f32 %v998_v61, %v376_v55  ;;  %v721_v0 = vadd.f32 %v1022_v62, %v384_v57  ;;  %v769_v11 = vadd.f32 (!%p952_p11), %v953_v2, %v746_v8  ;;  %v754_v25 = vld [vmem:[#allocation2 + $0x60] sm:$0xff] (!%p952_p11) }
 0x14a   : > { %v747_v12 = vld [vmem:[#allocation2 + $0x28] sm:$0xff] (!%p952_p11)  ;;  %v777_v28 = vadd.f32 (!%p952_p11), %v953_v2, %v754_v25 }
 0x14b   : > { %729 = vst [vmem:[#allocation2 + $0x38] sm:$0xff] %v713_v63  ;;  %737 = vst [vmem:[#allocation2 + $0x78] sm:$0xff] %v721_v0  ;;  %v770_v15 = vadd.f32 (!%p952_p11), %v953_v2, %v747_v12  ;;  %v755_v26 = vld [vmem:[#allocation2 + $0x68] sm:$0xff] (!%p952_p11) }
 0x14c   : > { %785 = vst [vmem:[%s1356_s3 + $0x20] sm:$0xff] %v769_v11  ;;  %v778_v29 = vadd.f32 %v953_v2, %v755_v26  ;;  %793 = vst [vmem:[%s1356_s3 + $0x60] sm:$0xff] %v777_v28 }
 0x14d   : > { %786 = vst [vmem:[%s1356_s3 + $0x28] sm:$0xff] %v770_v15 }
 0x14e   : > { %794 = vst [vmem:[%s1356_s3 + $0x68] sm:$0xff] %v778_v29 }
 0x150   : > { %v748_v13 = vld [vmem:[#allocation2 + $0x30] sm:$0xff] }
 0x151   : > { %v771_v16 = vadd.f32 %v953_v2, %v748_v13  ;;  %v756_v30 = vld [vmem:[#allocation2 + $0x70] sm:$0xff] }
 0x152   : > { %v749_v14 = vld [vmem:[#allocation2 + $0x38] sm:$0xff]  ;;  %v779_v32 = vadd.f32 %v953_v2, %v756_v30 }
 0x153   : > { %v772_v17 = vadd.f32 %v953_v2, %v749_v14  ;;  %787 = vst [vmem:[%s1356_s3 + $0x30] sm:$0xff] %v771_v16  ;;  %v757_v31 = vld [vmem:[#allocation2 + $0x78] sm:$0xff] }
 0x154   : > { %v780_v33 = vadd.f32 %v953_v2, %v757_v31  ;;  %795 = vst [vmem:[%s1356_s3 + $0x70] sm:$0xff] %v779_v32 }
 0x155   : > { %788 = vst [vmem:[%s1356_s3 + $0x38] sm:$0xff] %v772_v17 }
 0x156   : > { %796 = vst [vmem:[%s1356_s3 + $0x78] sm:$0xff] %v780_v33 }
 0x157 PF: > { %s13_s16 = sadd.s32 1, %s1158_s16   ;;  %s1357_s12 = smov %s1146_s13 }
 0x158   : > { %p10_p12 = scmp.ge.s32.totalorder %s13_s16, 6   ;;  %s1358_s13 = smov %s1216_s20 }
 0x159   : > { %s1359_s14 = smov %s1154_s15  ;;  %s1360_s15 = smov %s1362_s17 }
 0x15a   :  { %12 = sbr.rel (!%p10_p12) target bundleno = 3 (0x3), region = 119 }

// kernel: _lambda_.12
= control target key start
LH: loop header
LB: loop body
LE: loop exit
PB: predicated region body
PF: predicated region fallthrough
CT: control target
= control target key end

     0   :  { %s1107_s12 = smov 0   ;;  %s1109_s13 = smov 0   ;;  %s1274_s0 = inlined_call_operand.vmem [shape: bf16[128,128], index: 0, kind: input, shape index: {}]   ;;  %s1275_s1 = inlined_call_operand.vmem [shape: bf16[128,1024], index: 1, kind: input, shape index: {}]   ;;  %s1276_s2 = inlined_call_operand.vmem [shape: f32[1,1024], index: 2, kind: input, shape index: {}]   ;;  %s1277_s3 = inlined_call_operand.vmem [shape: f32[128,1024], index: 3, kind: output, shape index: {}]  }
   0x1   :  { %s1111_s14 = smov 0   ;;  %s1113_s15 = smov 0  }
   0x2   :  { %s1115_s16 = smov 0  }
   0x3 LB: > { %s28_s17 = sadd.s32 1, %s1081_s15  ;;  %s896_s18 = sadd.s32 4294967295, %s1085_s16   ;;  %s1085_s16 = sphi %s1115_s16, %s13_s16   ;;  %s1081_s15 = sphi %s1113_s15, %s1282_s15   ;;  %s1077_s14 = sphi %s1111_s14, %s1281_s14   ;;  %s1073_s13 = sphi %s1109_s13, %s1280_s13   ;;  %s1069_s12 = sphi %s1107_s12, %s1279_s12  }
   0x4   : > { %p30_p0 = scmp.ge.s32.totalorder %s28_s17, 8  ;;  %p76_p1 = scmp.ne.s32.totalorder %s1073_s13, %s1069_s12 }
   0x5   : > { %p77_p2 = scmp.eq.s32.totalorder %s1085_s16, 0  ;;  %p134_p4 = scmp.eq.s32.totalorder %s896_s18, 7 }
   0x6   : > { %s1284_s17 = smov (%p30_p0, %s28_s17), 0  ;;  %s69_s20 = sadd.s32 1, %s1073_s13 }
   0x7   : > { %p78_p3 = por %p77_p2, %p76_p1  ;;  %s65_s19 = ssub.s32 %s1081_s15, %s1284_s17 }
   0x8   : > { %p67_p5 = scmp.eq.s32.totalorder %s65_s19, 0  ;;  %p1142_p6 = por %p134_p4, %p76_p1 }
   0x9   : > { %p900_p7 = scmp.ge.s32.totalorder %s1085_s16, 8 }
   0xa   : > { %s1147_s22 = scalar_select %p67_p5, %s1073_s13, %s69_s20  }
   0xb   : > { %168 = sbr.rel (%p900_p7) target bundleno = 38 (0x26), region = 20 }
  0x12   : > { %171 = sbr.rel (!%p78_p3) target bundleno = 38 (0x26), region = 24  ;;  %s173_s23 = sand.u32 (%p78_p3), 1, %s1073_s13  }
  0x13   : > { %s902_s24 = sshll.u32 (%p78_p3), %s1081_s15, 2  ;;  %s901_s25 = sshll.u32 (%p78_p3), %s173_s23, 6 }
  0x14   : > { %s1155_s28 = scalar_lea.vmem (%p78_p3), %s1275_s1, %s902_s24  ;;  %s175_s29 = scalar_lea.vmem (%p78_p3), [#allocation3], %s901_s25 }
  0x15   : > { %v196_v0 = vld [vmem:[%s1155_s28] sm:$0xf] (%p78_p3) }
  0x16   : > { %v198_v1 = vld [vmem:[%s1155_s28 + $0x20] sm:$0xf] (%p78_p3)  ;;  %197 = vst [vmem:[%s175_s29] sm:$0xf] (%p78_p3), %v196_v0 }
  0x17   : > { %199 = vst [vmem:[%s175_s29 + $0x4] sm:$0xf] (%p78_p3), %v198_v1  ;;  %v200_v2 = vld [vmem:[%s1155_s28 + $0x40] sm:$0xf] (%p78_p3) }
  0x18   : > { %v202_v3 = vld [vmem:[%s1155_s28 + $0x60] sm:$0xf] (%p78_p3)  ;;  %201 = vst [vmem:[%s175_s29 + $0x8] sm:$0xf] (%p78_p3), %v200_v2 }
  0x19   : > { %v204_v4 = vld [vmem:[%s1155_s28 + $0x80] sm:$0xf]  ;;  %203 = vst [vmem:[%s175_s29 + $0xc] sm:$0xf] %v202_v3 }
  0x1a   : > { %205 = vst [vmem:[%s175_s29 + $0x10] sm:$0xf] %v204_v4  ;;  %v206_v5 = vld [vmem:[%s1155_s28 + $0xa0] sm:$0xf] }
  0x1b   : > { %v208_v6 = vld [vmem:[%s1155_s28 + $0xc0] sm:$0xf]  ;;  %207 = vst [vmem:[%s175_s29 + $0x14] sm:$0xf] %v206_v5 }
  0x1c   : > { %v210_v7 = vld [vmem:[%s1155_s28 + $0xe0] sm:$0xf]  ;;  %209 = vst [vmem:[%s175_s29 + $0x18] sm:$0xf] %v208_v6 }
  0x1d   : > { %211 = vst [vmem:[%s175_s29 + $0x1c] sm:$0xf] %v210_v7  ;;  %v212_v8 = vld [vmem:[%s1155_s28 + $0x100] sm:$0xf] }
  0x1e   : > { %v214_v9 = vld [vmem:[%s1155_s28 + $0x120] sm:$0xf]  ;;  %213 = vst [vmem:[%s175_s29 + $0x20] sm:$0xf] %v212_v8 }
  0x1f   : > { %v216_v10 = vld [vmem:[%s1155_s28 + $0x140] sm:$0xf]  ;;  %215 = vst [vmem:[%s175_s29 + $0x24] sm:$0xf] %v214_v9 }
  0x20   : > { %217 = vst [vmem:[%s175_s29 + $0x28] sm:$0xf] %v216_v10  ;;  %v218_v11 = vld [vmem:[%s1155_s28 + $0x160] sm:$0xf] }
  0x21   : > { %v220_v12 = vld [vmem:[%s1155_s28 + $0x180] sm:$0xf]  ;;  %219 = vst [vmem:[%s175_s29 + $0x2c] sm:$0xf] %v218_v11 }
  0x22   : > { %v222_v13 = vld [vmem:[%s1155_s28 + $0x1a0] sm:$0xf]  ;;  %221 = vst [vmem:[%s175_s29 + $0x30] sm:$0xf] %v220_v12 }
  0x23   : > { %223 = vst [vmem:[%s175_s29 + $0x34] sm:$0xf] %v222_v13  ;;  %v224_v14 = vld [vmem:[%s1155_s28 + $0x1c0] sm:$0xf] }
  0x24   : > { %v226_v15 = vld [vmem:[%s1155_s28 + $0x1e0] sm:$0xf]  ;;  %225 = vst [vmem:[%s175_s29 + $0x38] sm:$0xf] %v224_v14 }
  0x25   : > { %227 = vst [vmem:[%s175_s29 + $0x3c] sm:$0xf] %v226_v15 }
  0x26 PF: > { %p903_p8 = scmp.ge.s32.totalorder %s1085_s16, 1  ;;  %p287_p9 = scmp.lt.s32.totalorder %s1085_s16, 9 }
  0x28   : > { %p288_p10 = pnand %p903_p8, %p287_p9 }
  0x29   : > { %s294_s30 = sand.u32 (!%p288_p10), 1, %s1069_s12   ;;  %v1039_v16 = vld [vmem:[%s1274_s0] sm:$0xff] (!%p288_p10)   ;;  %v1041_v26 = vld [vmem:[%s1274_s0 + $0x8] sm:$0xff] (!%p288_p10)   ;;  %v1043_v28 = vld [vmem:[%s1274_s0 + $0x10] sm:$0xff] (!%p288_p10)   ;;  %p337_p11 = scmp.lt.s32.totalorder (!%p288_p10), %s1077_s14, 7 }
  0x2a   : > { %291 = sbr.rel (%p288_p10) target bundleno = 312 (0x138), region = 69  ;;  %s904_s6 = sshll.u32 (!%p288_p10), %s294_s30, 6  ;;  %v1040_v17 = vld [vmem:[%s1274_s0 + $0x20] sm:$0xff] (!%p288_p10)   ;;  %959 = vmatprep.mubr.bf16.mxu0 (!%p288_p10), %v1039_v16  ;;  %v1042_v27 = vld [vmem:[%s1274_s0 + $0x28] sm:$0xff] (!%p288_p10)   ;;  %v1044_v29 = vld [vmem:[%s1274_s0 + $0x30] sm:$0xff] (!%p288_p10)  }
  0x2b   : > { %s1184_s9 = scalar_lea.vmem (!%p288_p10), [#allocation3], %s904_s6  ;;  %967 = vmatprep.mubr.bf16.mxu1 (!%p288_p10), %v1040_v17  ;;  %v1045_v30 = vld [vmem:[%s1274_s0 + $0x18] sm:$0xff] (!%p288_p10)   ;;  %s905_s8 = sshll.u32 (!%p288_p10), %s294_s30, 7 }
  0x2c   : > { %v1031_v18 = vld [vmem:[%s1184_s9] sm:$0xff] (!%p288_p10)   ;;  %v1032_v19 = vld [vmem:[%s1184_s9 + $0x8] sm:$0xff] (!%p288_p10)   ;;  %v1033_v20 = vld [vmem:[%s1184_s9 + $0x10] sm:$0xff] (!%p288_p10)  }
  0x2d   : > { %943 = vmatprep.subr.bf16.mxu0 (!%p288_p10), %v1031_v18  ;;  %975 = vmatprep.subr.bf16.mxu1 (!%p288_p10), %v1031_v18  ;;  %v1034_v21 = vld [vmem:[%s1184_s9 + $0x18] sm:$0xff] (!%p288_p10)   ;;  %v1035_v22 = vld [vmem:[%s1184_s9 + $0x20] sm:$0xff] (!%p288_p10)   ;;  %v1036_v23 = vld [vmem:[%s1184_s9 + $0x28] sm:$0xff] (!%p288_p10)  }
  0x2e   : > { %944 = vmatpush3.bf16.msra.mxu0 (!%p288_p10), %v1031_v18  ;;  %983 = vmatpush3.bf16.msra.mxu1 (!%p288_p10), %v1031_v18  ;;  %v1037_v24 = vld [vmem:[%s1184_s9 + $0x30] sm:$0xff] (!%p288_p10)   ;;  %v1038_v25 = vld [vmem:[%s1184_s9 + $0x38] sm:$0xff] (!%p288_p10)   ;;  %s1219_s9 = scalar_lea.vmem (!%p288_p10), [#allocation4], %s905_s8 }
  0x2f   : > { %945 = vmatprep.subr.bf16.mxu0 (!%p288_p10), %v1032_v19  ;;  %976 = vmatprep.subr.bf16.mxu1 (!%p288_p10), %v1032_v19  ;;  %v1046_v31 = vld [vmem:[%s1274_s0 + $0x38] sm:$0xff] (!%p288_p10)  }
  0x31   : > { %s338_s4 = scalar_select %p337_p11, %s1077_s14, 7 }
  0x32   : > { %946 = vmatpush3.bf16.msra.mxu0 %v1032_v19  ;;  %984 = vmatpush3.bf16.msra.mxu1 %v1032_v19  ;;  %s924_s12 = sshll.u32 (%p1142_p6), %s1077_s14, 3 }
  0x33   : > { %947 = vmatprep.subr.bf16.mxu0 %v1033_v20  ;;  %977 = vmatprep.subr.bf16.mxu1 %v1033_v20  ;;  %s339_s7 = scalar_lea.vmem %s1276_s2, %s338_s4  ;;  %s704_s11 = scalar_lea.vmem (%p1142_p6), %s1277_s3, %s924_s12 }
  0x34   : > { %v922_v32 = vld [vmem:[%s339_s7] ss:$0 sm:$0xff] }
  0x36   : > { %948 = vmatpush3.bf16.msra.mxu0 %v1033_v20  ;;  %985 = vmatpush3.bf16.msra.mxu1 %v1033_v20 }
  0x37   : > { %949 = vmatprep.subr.bf16.mxu0 %v1034_v21  ;;  %978 = vmatprep.subr.bf16.mxu1 %v1034_v21 }
  0x3a   : > { %950 = vmatpush3.bf16.msra.mxu0 %v1034_v21  ;;  %986 = vmatpush3.bf16.msra.mxu1 %v1034_v21 }
  0x3b   : > { %951 = vmatprep.subr.bf16.mxu0 %v1035_v22  ;;  %979 = vmatprep.subr.bf16.mxu1 %v1035_v22 }
  0x3e   : > { %952 = vmatpush3.bf16.msra.mxu0 %v1035_v22  ;;  %987 = vmatpush3.bf16.msra.mxu1 %v1035_v22 }
  0x3f   : > { %953 = vmatprep.subr.bf16.mxu0 %v1036_v23  ;;  %980 = vmatprep.subr.bf16.mxu1 %v1036_v23 }
  0x42   : > { %954 = vmatpush3.bf16.msra.mxu0 %v1036_v23  ;;  %988 = vmatpush3.bf16.msra.mxu1 %v1036_v23 }
  0x43   : > { %955 = vmatprep.subr.bf16.mxu0 %v1037_v24  ;;  %981 = vmatprep.subr.bf16.mxu1 %v1037_v24 }
  0x46   : > { %956 = vmatpush3.bf16.msra.mxu0 %v1037_v24  ;;  %989 = vmatpush3.bf16.msra.mxu1 %v1037_v24 }
  0x47   : > { %957 = vmatprep.subr.bf16.mxu0 %v1038_v25  ;;  %982 = vmatprep.subr.bf16.mxu1 %v1038_v25 }
  0x4a   : > { %958 = vmatpush3.bf16.msra.mxu0 %v1038_v25  ;;  %990 = vmatpush3.bf16.msra.mxu1 %v1038_v25 }
  0x4d   : > { %960 = vmatmul.mubr.bf16.vlgmr.msra.gmra.mrb[0].mxu0 %v1041_v26  ;;  %968 = vmatmul.mubr.bf16.vlgmr.msra.gmra.mrb[0].mxu1 %v1042_v27 }
  0x4e   : > { %963 = vmatprep.mubr.bf16.mxu0 %v1043_v28  ;;  %971 = vmatprep.mubr.bf16.mxu1 %v1044_v29 }
  0x55   : > { %964 = vmatmul.mubr.bf16.gmra.mrb[4].mxu0 %v1045_v30  ;;  %972 = vmatmul.mubr.bf16.gmra.mrb[4].mxu1 %v1046_v31 }
 0x120   : > { %v961_v33 = vpop.f32.mrb[0].mxu0  ;;  %v969_v34 = vpop.f32.mrb[0].mxu1 }
 0x121   : > { %v663_v35 = vadd.f32 %v961_v33, %v922_v32  ;;  %v671_v36 = vadd.f32 %v969_v34, %v922_v32  ;;  %v540_v37 = vpop.f32.mrb[1].mxu0  ;;  %v572_v38 = vpop.f32.mrb[1].mxu1 }
 0x122   : > { %v661_v39 = vadd.f32 %v922_v32, %v540_v37  ;;  %v669_v40 = vadd.f32 %v922_v32, %v572_v38  ;;  %v962_v41 = vpop.f32.mrb[2].mxu0  ;;  %v970_v42 = vpop.f32.mrb[2].mxu1 }
 0x123   : > { %679 = vst [vmem:[%s1219_s9 + $0x10] sm:$0xff] %v663_v35  ;;  %687 = vst [vmem:[%s1219_s9 + $0x50] sm:$0xff] %v671_v36  ;;  %v664_v43 = vadd.f32 %v962_v41, %v922_v32  ;;  %v672_v44 = vadd.f32 %v970_v42, %v922_v32  ;;  %v543_v45 = vpop.f32.mrb[3].mxu0  ;;  %v575_v46 = vpop.f32.mrb[3].mxu1 }
 0x124   : > { %677 = vst [vmem:[%s1219_s9] sm:$0xff] %v661_v39  ;;  %685 = vst [vmem:[%s1219_s9 + $0x40] sm:$0xff] %v669_v40  ;;  %v662_v47 = vadd.f32 %v922_v32, %v543_v45  ;;  %v670_v48 = vadd.f32 %v922_v32, %v575_v46 }
 0x125   : > { %680 = vst [vmem:[%s1219_s9 + $0x18] sm:$0xff] %v664_v43  ;;  %688 = vst [vmem:[%s1219_s9 + $0x58] sm:$0xff] %v672_v44 }
 0x126   : > { %678 = vst [vmem:[%s1219_s9 + $0x8] sm:$0xff] %v662_v47  ;;  %686 = vst [vmem:[%s1219_s9 + $0x48] sm:$0xff] %v670_v48 }
 0x128   : > { %v965_v49 = vpop.f32.mrb[4].mxu0  ;;  %v973_v50 = vpop.f32.mrb[4].mxu1  ;;  %699 = sbr.rel (!%p1142_p6) target bundleno = 312 (0x138), region = 85 }
 0x129   : > { %v667_v51 = vadd.f32 %v965_v49, %v922_v32  ;;  %v675_v52 = vadd.f32 %v973_v50, %v922_v32  ;;  %v556_v53 = vpop.f32.mrb[5].mxu0  ;;  %v588_v54 = vpop.f32.mrb[5].mxu1 }
 0x12a   : > { %v665_v55 = vadd.f32 %v922_v32, %v556_v53  ;;  %v673_v56 = vadd.f32 %v922_v32, %v588_v54  ;;  %v966_v57 = vpop.f32.mrb[6].mxu0  ;;  %v974_v58 = vpop.f32.mrb[6].mxu1  ;;  %v766_v3 = vld [vmem:[%s1219_s9 + $0x10] sm:$0xff] (%p1142_p6) }
 0x12b   : > { %683 = vst [vmem:[%s1219_s9 + $0x30] sm:$0xff] %v667_v51  ;;  %691 = vst [vmem:[%s1219_s9 + $0x70] sm:$0xff] %v675_v52  ;;  %v668_v59 = vadd.f32 %v966_v57, %v922_v32  ;;  %v676_v60 = vadd.f32 %v974_v58, %v922_v32  ;;  %v559_v61 = vpop.f32.mrb[7].mxu0  ;;  %v591_v62 = vpop.f32.mrb[7].mxu1  ;;  %v762_v1 = vld [vmem:[%s1219_s9] sm:$0xff] (%p1142_p6)  ;;  %v782_v11 = vld [vmem:[%s1219_s9 + $0x50] sm:$0xff] (%p1142_p6) }
 0x12c   : > { %681 = vst [vmem:[%s1219_s9 + $0x20] sm:$0xff] %v665_v55  ;;  %689 = vst [vmem:[%s1219_s9 + $0x60] sm:$0xff] %v673_v56  ;;  %v666_v63 = vadd.f32 %v922_v32, %v559_v61  ;;  %v674_v0 = vadd.f32 %v922_v32, %v591_v62  ;;  %v768_v4 = vld [vmem:[%s1219_s9 + $0x18] sm:$0xff] (%p1142_p6)  ;;  %v778_v9 = vld [vmem:[%s1219_s9 + $0x40] sm:$0xff] (%p1142_p6) }
 0x12d   : > { %684 = vst [vmem:[%s1219_s9 + $0x38] sm:$0xff] %v668_v59  ;;  %692 = vst [vmem:[%s1219_s9 + $0x78] sm:$0xff] %v676_v60  ;;  %v764_v2 = vld [vmem:[%s1219_s9 + $0x8] sm:$0xff] (%p1142_p6)  ;;  %v784_v12 = vld [vmem:[%s1219_s9 + $0x58] sm:$0xff] (%p1142_p6) }
 0x12e   : > { %682 = vst [vmem:[%s1219_s9 + $0x28] sm:$0xff] %v666_v63  ;;  %690 = vst [vmem:[%s1219_s9 + $0x68] sm:$0xff] %v674_v0  ;;  %v780_v10 = vld [vmem:[%s1219_s9 + $0x48] sm:$0xff] (%p1142_p6) }
 0x12f   : > { %763 = vst [vmem:[%s704_s11] sm:$0xff] %v762_v1  ;;  %765 = vst [vmem:[%s704_s11 + $0x40] sm:$0xff] %v764_v2 }
 0x130   : > { %767 = vst [vmem:[%s704_s11 + $0x80] sm:$0xff] %v766_v3  ;;  %769 = vst [vmem:[%s704_s11 + $0xc0] sm:$0xff] %v768_v4 }
 0x131   : > { %779 = vst [vmem:[%s704_s11 + $0x200] sm:$0xff] %v778_v9  ;;  %781 = vst [vmem:[%s704_s11 + $0x240] sm:$0xff] %v780_v10 }
 0x132   : > { %v774_v7 = vld [vmem:[%s1219_s9 + $0x30] sm:$0xff]  ;;  %783 = vst [vmem:[%s704_s11 + $0x280] sm:$0xff] %v782_v11  ;;  %785 = vst [vmem:[%s704_s11 + $0x2c0] sm:$0xff] %v784_v12 }
 0x133   : > { %v770_v5 = vld [vmem:[%s1219_s9 + $0x20] sm:$0xff]  ;;  %775 = vst [vmem:[%s704_s11 + $0x180] sm:$0xff] %v774_v7  ;;  %v790_v15 = vld [vmem:[%s1219_s9 + $0x70] sm:$0xff] }
 0x134   : > { %771 = vst [vmem:[%s704_s11 + $0x100] sm:$0xff] %v770_v5  ;;  %v776_v8 = vld [vmem:[%s1219_s9 + $0x38] sm:$0xff]  ;;  %v786_v13 = vld [vmem:[%s1219_s9 + $0x60] sm:$0xff]  ;;  %791 = vst [vmem:[%s704_s11 + $0x380] sm:$0xff] %v790_v15 }
 0x135   : > { %v772_v6 = vld [vmem:[%s1219_s9 + $0x28] sm:$0xff]  ;;  %777 = vst [vmem:[%s704_s11 + $0x1c0] sm:$0xff] %v776_v8  ;;  %787 = vst [vmem:[%s704_s11 + $0x300] sm:$0xff] %v786_v13  ;;  %v792_v16 = vld [vmem:[%s1219_s9 + $0x78] sm:$0xff] }
 0x136   : > { %773 = vst [vmem:[%s704_s11 + $0x140] sm:$0xff] %v772_v6  ;;  %v788_v14 = vld [vmem:[%s1219_s9 + $0x68] sm:$0xff]  ;;  %793 = vst [vmem:[%s704_s11 + $0x3c0] sm:$0xff] %v792_v16 }
 0x137   : > { %789 = vst [vmem:[%s704_s11 + $0x340] sm:$0xff] %v788_v14 }
 0x138 PF: > { %s13_s16 = sadd.s32 1, %s1085_s16   ;;  %s1279_s12 = smov %s1073_s13 }
 0x139   : > { %p10_p12 = scmp.ge.s32.totalorder %s13_s16, 10   ;;  %s1280_s13 = smov %s1147_s22 }
 0x13a   : > { %s1281_s14 = smov %s1081_s15  ;;  %s1282_s15 = smov %s1284_s17 }
 0x13b   :  { %12 = sbr.rel (!%p10_p12) target bundleno = 3 (0x3), region = 160 }

// kernel: _lambda_.13
= control target key start
LH: loop header
LB: loop body
LE: loop exit
PB: predicated region body
PF: predicated region fallthrough
CT: control target
= control target key end

     0   :  { %s1229_s12 = smov 0   ;;  %s1231_s13 = smov 0   ;;  %s1419_s0 = inlined_call_operand.vmem [shape: bf16[128,1024], index: 0, kind: input, shape index: {}]   ;;  %s1420_s1 = inlined_call_operand.vmem [shape: bf16[1024,128], index: 1, kind: input, shape index: {}]   ;;  %s1421_s2 = inlined_call_operand.vmem [shape: f32[1,128], index: 2, kind: input, shape index: {}]   ;;  %s1422_s3 = inlined_call_operand.vmem [shape: f32[128,128], index: 3, kind: output, shape index: {}]  }
   0x1   :  { %s1233_s14 = smov 0   ;;  %s1235_s15 = smov 0  }
   0x2   :  { %s1237_s16 = smov 0  }
   0x3 LB: > { %s25_s17 = sadd.s32 1, %s1202_s15  ;;  %p48_p1 = scmp.ne.s32.totalorder %s1194_s13, %s1190_s12  ;;  %s1206_s16 = sphi %s1237_s16, %s13_s16   ;;  %s1202_s15 = sphi %s1235_s15, %s1426_s15   ;;  %s1198_s14 = sphi %s1233_s14, %s1425_s14   ;;  %s1194_s13 = sphi %s1231_s13, %s1424_s13   ;;  %s1190_s12 = sphi %s1229_s12, %s1423_s12  }
   0x4   : > { %p26_p0 = scmp.ge.s32.totalorder %s25_s17, 4  ;;  %p49_p2 = scmp.eq.s32.totalorder %s1206_s16, 0 }
   0x5   : > { %s41_s19 = sadd.s32 1, %s1194_s13  ;;  %p959_p5 = scmp.ge.s32.totalorder %s1206_s16, 4 }
   0x6   : > { %s1428_s17 = smov (%p26_p0, %s25_s17), 0  ;;  %p50_p3 = por %p49_p2, %p48_p1 }
   0x7   : > { %s37_s18 = ssub.s32 %s1202_s15, %s1428_s17  ;;  %162 = sbr.rel (%p959_p5) target bundleno = 34 (0x22), region = 20 }
   0x8   : > { %p39_p4 = scmp.eq.s32.totalorder %s37_s18, 0 }
   0xa   : > { %s1264_s20 = scalar_select %p39_p4, %s1194_s13, %s41_s19  }
   0xe   : > { %165 = sbr.rel (!%p50_p3) target bundleno = 34 (0x22), region = 24  ;;  %s167_s21 = sand.u32 (%p50_p3), 1, %s1194_s13  }
   0xf   : > { %s1006_s22 = sshll.u32 (%p50_p3), %s1202_s15, 3  ;;  %s960_s23 = sshll.u32 (%p50_p3), %s167_s21, 7 }
  0x10   : > { %s1272_s26 = scalar_lea.vmem (%p50_p3), %s1419_s0, %s1006_s22  ;;  %s169_s27 = scalar_lea.vmem (%p50_p3), [#allocation3], %s960_s23 }
  0x11   : > { %v233_v0 = vld [vmem:[%s1272_s26] sm:$0xff] (%p50_p3) }
  0x12   : > { %v235_v1 = vld [vmem:[%s1272_s26 + $0x20] sm:$0xff] (%p50_p3)  ;;  %234 = vst [vmem:[%s169_s27] sm:$0xff] (%p50_p3), %v233_v0 }
  0x13   : > { %v237_v2 = vld [vmem:[%s1272_s26 + $0x40] sm:$0xff] (%p50_p3)  ;;  %236 = vst [vmem:[%s169_s27 + $0x8] sm:$0xff] (%p50_p3), %v235_v1 }
  0x14   : > { %238 = vst [vmem:[%s169_s27 + $0x10] sm:$0xff] (%p50_p3), %v237_v2  ;;  %v239_v3 = vld [vmem:[%s1272_s26 + $0x60] sm:$0xff] (%p50_p3) }
  0x15   : > { %v241_v4 = vld [vmem:[%s1272_s26 + $0x80] sm:$0xff]  ;;  %240 = vst [vmem:[%s169_s27 + $0x18] sm:$0xff] %v239_v3 }
  0x16   : > { %v243_v5 = vld [vmem:[%s1272_s26 + $0xa0] sm:$0xff]  ;;  %242 = vst [vmem:[%s169_s27 + $0x20] sm:$0xff] %v241_v4 }
  0x17   : > { %244 = vst [vmem:[%s169_s27 + $0x28] sm:$0xff] %v243_v5  ;;  %v245_v6 = vld [vmem:[%s1272_s26 + $0xc0] sm:$0xff] }
  0x18   : > { %v247_v7 = vld [vmem:[%s1272_s26 + $0xe0] sm:$0xff]  ;;  %246 = vst [vmem:[%s169_s27 + $0x30] sm:$0xff] %v245_v6 }
  0x19   : > { %v249_v8 = vld [vmem:[%s1272_s26 + $0x100] sm:$0xff]  ;;  %248 = vst [vmem:[%s169_s27 + $0x38] sm:$0xff] %v247_v7 }
  0x1a   : > { %250 = vst [vmem:[%s169_s27 + $0x40] sm:$0xff] %v249_v8  ;;  %v251_v9 = vld [vmem:[%s1272_s26 + $0x120] sm:$0xff] }
  0x1b   : > { %v253_v10 = vld [vmem:[%s1272_s26 + $0x140] sm:$0xff]  ;;  %252 = vst [vmem:[%s169_s27 + $0x48] sm:$0xff] %v251_v9 }
  0x1c   : > { %v255_v11 = vld [vmem:[%s1272_s26 + $0x160] sm:$0xff]  ;;  %254 = vst [vmem:[%s169_s27 + $0x50] sm:$0xff] %v253_v10 }
  0x1d   : > { %256 = vst [vmem:[%s169_s27 + $0x58] sm:$0xff] %v255_v11  ;;  %v257_v12 = vld [vmem:[%s1272_s26 + $0x180] sm:$0xff] }
  0x1e   : > { %v259_v13 = vld [vmem:[%s1272_s26 + $0x1a0] sm:$0xff]  ;;  %258 = vst [vmem:[%s169_s27 + $0x60] sm:$0xff] %v257_v12 }
  0x1f   : > { %v261_v14 = vld [vmem:[%s1272_s26 + $0x1c0] sm:$0xff]  ;;  %260 = vst [vmem:[%s169_s27 + $0x68] sm:$0xff] %v259_v13 }
  0x20   : > { %262 = vst [vmem:[%s169_s27 + $0x70] sm:$0xff] %v261_v14  ;;  %v263_v15 = vld [vmem:[%s1272_s26 + $0x1e0] sm:$0xff] }
  0x21   : > { %264 = vst [vmem:[%s169_s27 + $0x78] sm:$0xff] %v263_v15 }
  0x22 PF: > { %p963_p6 = scmp.ge.s32.totalorder %s1206_s16, 1  ;;  %p281_p7 = scmp.lt.s32.totalorder %s1206_s16, 5 }
  0x24   : > { %p282_p8 = pnand %p963_p6, %p281_p7 }
  0x25   : > { %s288_s28 = sand.u32 (!%p282_p8), 1, %s1190_s12   ;;  %s965_s29 = sshll.u32 (!%p282_p8), %s1198_s14, 5 }
  0x26   : > { %285 = sbr.rel (%p282_p8) target bundleno = 346 (0x15a), region = 66  ;;  %s964_s30 = sshll.u32 (!%p282_p8), %s288_s28, 7 }
  0x27   : > { %p328_p9 = scmp.lt.s32.totalorder (!%p282_p8), %s965_s29, 127  ;;  %s1299_s8 = scalar_lea.vmem (!%p282_p8), [#allocation3], %s964_s30 }
  0x28   : > { %p967_p10 = scmp.ne.s32.totalorder (!%p282_p8), %s1198_s14, 0 }
  0x2d   : > { %s1430_s29 = smov (!%p328_p9, %s965_s29), 127  ;;  %352 = sbr.rel (%p967_p10) target bundleno = 55 (0x37), region = 74 }
  0x2e   : > { %s966_s4 = sshll.u32 %s1430_s29, 2  ;;  %v1208_v16 = vmov (!%p967_p10), 0.0  }
  0x2f   : > { %s1297_s7 = scalar_lea.vmem %s1420_s1, %s966_s4  ;;  %353 = vst [vmem:[#allocation2] sm:$0xff] (!%p967_p10), %v1208_v16  ;;  %354 = vst [vmem:[#allocation2 + $0x8] sm:$0xff] (!%p967_p10), %v1208_v16 }
  0x30   : > { %355 = vst [vmem:[#allocation2 + $0x10] sm:$0xff] (!%p967_p10), %v1208_v16  ;;  %356 = vst [vmem:[#allocation2 + $0x18] sm:$0xff] (!%p967_p10), %v1208_v16 }
  0x31   : > { %357 = vst [vmem:[#allocation2 + $0x20] sm:$0xff] (!%p967_p10), %v1208_v16  ;;  %358 = vst [vmem:[#allocation2 + $0x28] sm:$0xff] (!%p967_p10), %v1208_v16 }
  0x32   : > { %359 = vst [vmem:[#allocation2 + $0x30] sm:$0xff] (!%p967_p10), %v1208_v16  ;;  %360 = vst [vmem:[#allocation2 + $0x38] sm:$0xff] (!%p967_p10), %v1208_v16 }
  0x33   : > { %361 = vst [vmem:[#allocation2 + $0x40] sm:$0xff] (!%p967_p10), %v1208_v16  ;;  %362 = vst [vmem:[#allocation2 + $0x48] sm:$0xff] (!%p967_p10), %v1208_v16 }
  0x34   : > { %363 = vst [vmem:[#allocation2 + $0x50] sm:$0xff] %v1208_v16  ;;  %364 = vst [vmem:[#allocation2 + $0x58] sm:$0xff] %v1208_v16 }
  0x35   : > { %365 = vst [vmem:[#allocation2 + $0x60] sm:$0xff] %v1208_v16  ;;  %366 = vst [vmem:[#allocation2 + $0x68] sm:$0xff] %v1208_v16 }
  0x36   : > { %367 = vst [vmem:[#allocation2 + $0x70] sm:$0xff] %v1208_v16  ;;  %368 = vst [vmem:[#allocation2 + $0x78] sm:$0xff] %v1208_v16 }
  0x37 PF: > { %v1128_v17 = vld [vmem:[%s1297_s7 + $0x40] sm:$0xff]   ;;  %v1130_v19 = vld [vmem:[%s1297_s7 + $0x48] sm:$0xff]   ;;  %v1132_v21 = vld [vmem:[%s1297_s7 + $0x50] sm:$0xff]   ;;  %p1000_p11 = scmp.ne.s32.totalorder %s1198_s14, 3 }
  0x38   : > { %v1129_v18 = vld [vmem:[%s1297_s7] sm:$0xff]   ;;  %1007 = vmatprep.subr.bf16.mxu0 %v1128_v17  ;;  %1071 = vmatprep.subr.bf16.mxu1 %v1128_v17  ;;  %v1131_v20 = vld [vmem:[%s1297_s7 + $0x8] sm:$0xff]   ;;  %v1133_v22 = vld [vmem:[%s1297_s7 + $0x10] sm:$0xff]  }
  0x39   : > { %1008 = vmatpush3.bf16.msra.mxu0 %v1129_v18  ;;  %1079 = vmatpush3.bf16.msra.mxu1 %v1129_v18  ;;  %v1134_v23 = vld [vmem:[%s1297_s7 + $0x58] sm:$0xff]   ;;  %v1136_v25 = vld [vmem:[%s1297_s7 + $0x60] sm:$0xff]   ;;  %v1138_v27 = vld [vmem:[%s1297_s7 + $0x68] sm:$0xff]  }
  0x3a   : > { %1009 = vmatprep.subr.bf16.mxu0 %v1130_v19  ;;  %1072 = vmatprep.subr.bf16.mxu1 %v1130_v19  ;;  %v1135_v24 = vld [vmem:[%s1297_s7 + $0x18] sm:$0xff]   ;;  %v1137_v26 = vld [vmem:[%s1297_s7 + $0x20] sm:$0xff]   ;;  %v1139_v30 = vld [vmem:[%s1297_s7 + $0x28] sm:$0xff]  }
  0x3b   : > { %v1146_v28 = vld [vmem:[%s1299_s8 + $0x4] ss:$8 sps:$4 sm:$0xff]   ;;  %v1140_v31 = vld [vmem:[%s1297_s7 + $0x70] sm:$0xff]   ;;  %v1142_v33 = vld [vmem:[%s1297_s7 + $0x78] sm:$0xff]  }
  0x3c   : > { %v1149_v29 = vld [vmem:[%s1299_s8 + $0x44] ss:$8 sps:$4 sm:$0xff]   ;;  %641 = vmatprep.mubr.bf16.mxu0 %v1146_v28  ;;  %v1141_v32 = vld [vmem:[%s1297_s7 + $0x30] sm:$0xff]   ;;  %v1143_v34 = vld [vmem:[%s1297_s7 + $0x38] sm:$0xff]  }
  0x3d   : > { %1010 = vmatpush3.bf16.msra.mxu0 %v1131_v20  ;;  %1080 = vmatpush3.bf16.msra.mxu1 %v1131_v20  ;;  %v1144_v35 = vld [vmem:[%s1299_s8] ss:$8 sps:$4 sm:$0xff]   ;;  %v1150_v37 = vld [vmem:[%s1299_s8 + $0x14] ss:$8 sps:$4 sm:$0xff]   ;;  %v1154_v39 = vld [vmem:[%s1299_s8 + $0x10] ss:$8 sps:$4 sm:$0xff]  }
  0x3e   : > { %1011 = vmatprep.subr.bf16.mxu0 %v1132_v21  ;;  %1073 = vmatprep.subr.bf16.mxu1 %v1132_v21  ;;  %v1147_v36 = vld [vmem:[%s1299_s8 + $0x40] ss:$8 sps:$4 sm:$0xff]   ;;  %v1152_v38 = vld [vmem:[%s1299_s8 + $0x54] ss:$8 sps:$4 sm:$0xff]   ;;  %v1155_v40 = vld [vmem:[%s1299_s8 + $0x50] ss:$8 sps:$4 sm:$0xff]  }
  0x3f   : > { %673 = vmatprep.mubr.bf16.mxu1 %v1149_v29  ;;  %v1156_v41 = vld [vmem:[%s1299_s8 + $0x24] ss:$8 sps:$4 sm:$0xff]   ;;  %v1160_v43 = vld [vmem:[%s1299_s8 + $0x20] ss:$8 sps:$4 sm:$0xff]   ;;  %v1162_v45 = vld [vmem:[%s1299_s8 + $0x34] ss:$8 sps:$4 sm:$0xff]  }
  0x40   : > { %v1158_v42 = vld [vmem:[%s1299_s8 + $0x64] ss:$8 sps:$4 sm:$0xff]   ;;  %v1161_v44 = vld [vmem:[%s1299_s8 + $0x60] ss:$8 sps:$4 sm:$0xff]   ;;  %v1164_v46 = vld [vmem:[%s1299_s8 + $0x74] ss:$8 sps:$4 sm:$0xff]  }
  0x41   : > { %1012 = vmatpush3.bf16.msra.mxu0 %v1133_v22  ;;  %1081 = vmatpush3.bf16.msra.mxu1 %v1133_v22  ;;  %v1166_v47 = vld [vmem:[%s1299_s8 + $0x30] ss:$8 sps:$4 sm:$0xff]   ;;  %v369_v51 = vld [vmem:[#allocation2] sm:$0xff]  ;;  %v370_v59 = vld [vmem:[#allocation2 + $0x8] sm:$0xff] }
  0x42   : > { %1013 = vmatprep.subr.bf16.mxu0 %v1134_v23  ;;  %1074 = vmatprep.subr.bf16.mxu1 %v1134_v23  ;;  %v1167_v48 = vld [vmem:[%s1299_s8 + $0x70] ss:$8 sps:$4 sm:$0xff]   ;;  %v377_v53 = vld [vmem:[#allocation2 + $0x40] sm:$0xff]  ;;  %v378_v61 = vld [vmem:[#allocation2 + $0x48] sm:$0xff] }
  0x43   : > { %v371_v7 = vld [vmem:[#allocation2 + $0x10] sm:$0xff]  ;;  %v372_v15 = vld [vmem:[#allocation2 + $0x18] sm:$0xff]  ;;  %v381_v29 = vld [vmem:[#allocation2 + $0x60] sm:$0xff] }
  0x44   : > { %v379_v9 = vld [vmem:[#allocation2 + $0x50] sm:$0xff]  ;;  %v380_v17 = vld [vmem:[#allocation2 + $0x58] sm:$0xff] }
  0x45   : > { %1014 = vmatpush3.bf16.msra.mxu0 %v1135_v24  ;;  %1082 = vmatpush3.bf16.msra.mxu1 %v1135_v24 }
  0x46   : > { %1015 = vmatprep.subr.bf16.mxu0 %v1136_v25  ;;  %1075 = vmatprep.subr.bf16.mxu1 %v1136_v25 }
  0x49   : > { %1016 = vmatpush3.bf16.msra.mxu0 %v1137_v26  ;;  %1083 = vmatpush3.bf16.msra.mxu1 %v1137_v26 }
  0x4a   : > { %1017 = vmatprep.subr.bf16.mxu0 %v1138_v27  ;;  %1076 = vmatprep.subr.bf16.mxu1 %v1138_v27  ;;  %v373_v27 = vld [vmem:[#allocation2 + $0x20] sm:$0xff] }
  0x4d   : > { %1018 = vmatpush3.bf16.msra.mxu0 %v1139_v30  ;;  %1084 = vmatpush3.bf16.msra.mxu1 %v1139_v30 }
  0x4e   : > { %1019 = vmatprep.subr.bf16.mxu0 %v1140_v31  ;;  %1077 = vmatprep.subr.bf16.mxu1 %v1140_v31 }
  0x51   : > { %1020 = vmatpush3.bf16.msra.mxu0 %v1141_v32  ;;  %1085 = vmatpush3.bf16.msra.mxu1 %v1141_v32 }
  0x52   : > { %1021 = vmatprep.subr.bf16.mxu0 %v1142_v33  ;;  %1078 = vmatprep.subr.bf16.mxu1 %v1142_v33 }
  0x55   : > { %1022 = vmatpush3.bf16.msra.mxu0 %v1143_v34  ;;  %1086 = vmatpush3.bf16.msra.mxu1 %v1143_v34 }
  0x58   : > { %642 = vmatmul.mubr.bf16.vlgmr.msra.gmra.mrb[0].mxu0 %v1144_v35  ;;  %674 = vmatmul.mubr.bf16.vlgmr.msra.gmra.mrb[0].mxu1 %v1147_v36  ;;  %v374_v35 = vld [vmem:[#allocation2 + $0x28] sm:$0xff] }
  0x59   : > { %649 = vmatprep.mubr.bf16.mxu0 %v1150_v37  ;;  %681 = vmatprep.mubr.bf16.mxu1 %v1152_v38  ;;  %v382_v37 = vld [vmem:[#allocation2 + $0x68] sm:$0xff] }
  0x60   : > { %650 = vmatmul.mubr.bf16.gmra.mrb[4].mxu0 %v1154_v39  ;;  %682 = vmatmul.mubr.bf16.gmra.mrb[4].mxu1 %v1155_v40 }
  0x61   : > { %657 = vmatprep.mubr.bf16.mxu0 %v1156_v41  ;;  %689 = vmatprep.mubr.bf16.mxu1 %v1158_v42 }
  0x68   : > { %658 = vmatmul.mubr.bf16.gmra.mrb[8].mxu0 %v1160_v43  ;;  %690 = vmatmul.mubr.bf16.gmra.mrb[8].mxu1 %v1161_v44 }
  0x69   : > { %665 = vmatprep.mubr.bf16.mxu0 %v1162_v45  ;;  %697 = vmatprep.mubr.bf16.mxu1 %v1164_v46 }
  0x70   : > { %666 = vmatmul.mubr.bf16.gmra.mrb[12].mxu0 %v1166_v47  ;;  %698 = vmatmul.mubr.bf16.gmra.mrb[12].mxu1 %v1167_v48  ;;  %v375_v47 = vld [vmem:[#allocation2 + $0x30] sm:$0xff] }
 0x12b   : > { %v1023_v49 = vpop.f32.mrb[0].mxu0  ;;  %v1047_v50 = vpop.f32.mrb[0].mxu1 }
 0x12c   : > { %v1024_v52 = vpop.f32.mrb[1].mxu0  ;;  %v1048_v54 = vpop.f32.mrb[1].mxu1 }
 0x12d   : > { %v1025_v55 = vadd.f32 %v1024_v52, %v1023_v49  ;;  %v1049_v56 = vadd.f32 %v1048_v54, %v1047_v50  ;;  %v1026_v57 = vpop.f32.mrb[2].mxu0  ;;  %v1050_v58 = vpop.f32.mrb[2].mxu1  ;;  %v383_v49 = vld [vmem:[#allocation2 + $0x70] sm:$0xff] }
 0x12e   : > { %v1027_v60 = vpop.f32.mrb[3].mxu0  ;;  %v1051_v62 = vpop.f32.mrb[3].mxu1 }
 0x12f   : > { %v706_v63 = vadd.f32 %v1025_v55, %v369_v51  ;;  %v714_v0 = vadd.f32 %v1049_v56, %v377_v53  ;;  %v1028_v1 = vadd.f32 %v1027_v60, %v1026_v57  ;;  %v1052_v2 = vadd.f32 %v1051_v62, %v1050_v58  ;;  %v376_v55 = vld [vmem:[#allocation2 + $0x38] sm:$0xff] }
 0x130   : > { %v384_v57 = vld [vmem:[#allocation2 + $0x78] sm:$0xff] }
 0x131   : > { %722 = vst [vmem:[#allocation2] sm:$0xff] %v706_v63  ;;  %730 = vst [vmem:[#allocation2 + $0x40] sm:$0xff] %v714_v0  ;;  %v707_v3 = vadd.f32 %v1028_v1, %v370_v59  ;;  %v715_v4 = vadd.f32 %v1052_v2, %v378_v61  ;;  %v1338_v2 = vld [vmem:[%s1421_s2] ss:$0 sm:$0xff] (!%p1000_p11) }
 0x133   : > { %723 = vst [vmem:[#allocation2 + $0x8] sm:$0xff] %v707_v3  ;;  %731 = vst [vmem:[#allocation2 + $0x48] sm:$0xff] %v715_v4  ;;  %v1029_v5 = vpop.f32.mrb[4].mxu0  ;;  %v1053_v6 = vpop.f32.mrb[4].mxu1 }
 0x134   : > { %v1030_v8 = vpop.f32.mrb[5].mxu0  ;;  %v1054_v10 = vpop.f32.mrb[5].mxu1 }
 0x135   : > { %v1031_v11 = vadd.f32 %v1030_v8, %v1029_v5  ;;  %v1055_v12 = vadd.f32 %v1054_v10, %v1053_v6  ;;  %v1032_v13 = vpop.f32.mrb[6].mxu0  ;;  %v1056_v14 = vpop.f32.mrb[6].mxu1 }
 0x136   : > { %v1033_v16 = vpop.f32.mrb[7].mxu0  ;;  %v1057_v18 = vpop.f32.mrb[7].mxu1 }
 0x137   : > { %v708_v19 = vadd.f32 %v1031_v11, %v371_v7  ;;  %v716_v20 = vadd.f32 %v1055_v12, %v379_v9  ;;  %v1034_v21 = vadd.f32 %v1033_v16, %v1032_v13  ;;  %v1058_v22 = vadd.f32 %v1057_v18, %v1056_v14 }
 0x138   : > { %v742_v1 = vld [vmem:[#allocation2] sm:$0xff] (!%p1000_p11) }
 0x139   : > { %724 = vst [vmem:[#allocation2 + $0x10] sm:$0xff] %v708_v19  ;;  %732 = vst [vmem:[#allocation2 + $0x50] sm:$0xff] %v716_v20  ;;  %v709_v23 = vadd.f32 %v1034_v21, %v372_v15  ;;  %v717_v24 = vadd.f32 %v1058_v22, %v380_v17  ;;  %v765_v4 = vadd.f32 (!%p1000_p11), %v1338_v2, %v742_v1  ;;  %v750_v22 = vld [vmem:[#allocation2 + $0x40] sm:$0xff] (!%p1000_p11) }
 0x13a   : > { %v743_v3 = vld [vmem:[#allocation2 + $0x8] sm:$0xff] (!%p1000_p11) }
 0x13b   : > { %725 = vst [vmem:[#allocation2 + $0x18] sm:$0xff] %v709_v23  ;;  %733 = vst [vmem:[#allocation2 + $0x58] sm:$0xff] %v717_v24  ;;  %v1035_v25 = vpop.f32.mrb[8].mxu0  ;;  %v1059_v26 = vpop.f32.mrb[8].mxu1  ;;  %v766_v5 = vadd.f32 (!%p1000_p11), %v1338_v2, %v743_v3  ;;  %vm781_vm0 = vcmp.ge.f32.partialorder (!%p1000_p11), %v765_v4, 0.0  ;;  %v751_v23 = vld [vmem:[#allocation2 + $0x48] sm:$0xff] (!%p1000_p11) }
 0x13c   : > { %v1036_v28 = vpop.f32.mrb[9].mxu0  ;;  %v1060_v30 = vpop.f32.mrb[9].mxu1  ;;  %v797_v15 = vmul.f32 (!%p1000_p11), 0.01, %v765_v4 }
 0x13d   : > { %v1037_v31 = vadd.f32 %v1036_v28, %v1035_v25  ;;  %v1061_v32 = vadd.f32 %v1060_v30, %v1059_v26  ;;  %v1038_v33 = vpop.f32.mrb[10].mxu0  ;;  %v1062_v34 = vpop.f32.mrb[10].mxu1  ;;  %vm782_vm1 = vcmp.ge.f32.partialorder (!%p1000_p11), %v766_v5, 0.0  ;;  %v798_v16 = vmul.f32 (!%p1000_p11), 0.01, %v766_v5 }
 0x13e   : > { %v1039_v36 = vpop.f32.mrb[11].mxu0  ;;  %v1063_v38 = vpop.f32.mrb[11].mxu1  ;;  %v813_v19 = vsel (!%p1000_p11), %vm781_vm0, %v765_v4, %v797_v15 }
 0x13f   : > { %v710_v39 = vadd.f32 %v1037_v31, %v373_v27  ;;  %v718_v40 = vadd.f32 %v1061_v32, %v381_v29  ;;  %v1040_v41 = vadd.f32 %v1039_v36, %v1038_v33  ;;  %v1064_v42 = vadd.f32 %v1063_v38, %v1062_v34  ;;  %829 = vst [vmem:[%s1422_s3] sm:$0xff] (!%p1000_p11), %v813_v19 }
 0x140   : > { %v744_v6 = vld [vmem:[#allocation2 + $0x10] sm:$0xff] (!%p1000_p11)  ;;  %v814_v20 = vsel (!%p1000_p11), %vm782_vm1, %v766_v5, %v798_v16  ;;  %v773_v32 = vadd.f32 (!%p1000_p11), %v1338_v2, %v750_v22  ;;  %v774_v33 = vadd.f32 (!%p1000_p11), %v1338_v2, %v751_v23 }
 0x141   : > { %726 = vst [vmem:[#allocation2 + $0x20] sm:$0xff] %v710_v39  ;;  %734 = vst [vmem:[#allocation2 + $0x60] sm:$0xff] %v718_v40  ;;  %v711_v43 = vadd.f32 %v1040_v41, %v374_v35  ;;  %v719_v44 = vadd.f32 %v1064_v42, %v382_v37  ;;  %v767_v9 = vadd.f32 (!%p1000_p11), %v1338_v2, %v744_v6  ;;  %v752_v28 = vld [vmem:[#allocation2 + $0x50] sm:$0xff] (!%p1000_p11) }
 0x142   : > { %v745_v7 = vld [vmem:[#allocation2 + $0x18] sm:$0xff] (!%p1000_p11)  ;;  %830 = vst [vmem:[%s1422_s3 + $0x8] sm:$0xff] (!%p1000_p11), %v814_v20  ;;  %vm789_vm8 = vcmp.ge.f32.partialorder (!%p1000_p11), %v773_v32, 0.0  ;;  %v805_v40 = vmul.f32 (!%p1000_p11), 0.01, %v773_v32  ;;  %vm790_vm9 = vcmp.ge.f32.partialorder (!%p1000_p11), %v774_v33, 0.0 }
 0x143   : > { %727 = vst [vmem:[#allocation2 + $0x28] sm:$0xff] %v711_v43  ;;  %735 = vst [vmem:[#allocation2 + $0x68] sm:$0xff] %v719_v44  ;;  %v1041_v45 = vpop.f32.mrb[12].mxu0  ;;  %v1065_v46 = vpop.f32.mrb[12].mxu1  ;;  %v768_v10 = vadd.f32 (!%p1000_p11), %v1338_v2, %v745_v7  ;;  %vm783_vm2 = vcmp.ge.f32.partialorder (!%p1000_p11), %v767_v9, 0.0  ;;  %v753_v29 = vld [vmem:[#allocation2 + $0x58] sm:$0xff] (!%p1000_p11) }
 0x144   : > { %v1042_v48 = vpop.f32.mrb[13].mxu0  ;;  %v1066_v50 = vpop.f32.mrb[13].mxu1  ;;  %v799_v17 = vmul.f32 (!%p1000_p11), 0.01, %v767_v9  ;;  %v806_v43 = vmul.f32 (!%p1000_p11), 0.01, %v774_v33 }
 0x145   : > { %v1043_v51 = vadd.f32 %v1042_v48, %v1041_v45  ;;  %v1067_v52 = vadd.f32 %v1066_v50, %v1065_v46  ;;  %v1044_v53 = vpop.f32.mrb[14].mxu0  ;;  %v1068_v54 = vpop.f32.mrb[14].mxu1  ;;  %741 = sbr.rel (%p1000_p11) target bundleno = 346 (0x15a), region = 78  ;;  %vm784_vm3 = vcmp.ge.f32.partialorder (!%p1000_p11), %v768_v10, 0.0  ;;  %v800_v18 = vmul.f32 (!%p1000_p11), 0.01, %v768_v10 }
 0x146   : > { %v1045_v56 = vpop.f32.mrb[15].mxu0  ;;  %v1069_v58 = vpop.f32.mrb[15].mxu1  ;;  %v815_v24 = vsel (!%p1000_p11), %vm783_vm2, %v767_v9, %v799_v17  ;;  %v821_v45 = vsel (!%p1000_p11), %vm789_vm8, %v773_v32, %v805_v40  ;;  %v775_v46 = vadd.f32 (!%p1000_p11), %v1338_v2, %v752_v28  ;;  %v822_v48 = vsel (!%p1000_p11), %vm790_vm9, %v774_v33, %v806_v43 }
 0x147   : > { %v712_v59 = vadd.f32 %v1043_v51, %v375_v47  ;;  %v720_v60 = vadd.f32 %v1067_v52, %v383_v49  ;;  %v1046_v61 = vadd.f32 %v1045_v56, %v1044_v53  ;;  %v1070_v62 = vadd.f32 %v1069_v58, %v1068_v54  ;;  %831 = vst [vmem:[%s1422_s3 + $0x10] sm:$0xff] (!%p1000_p11), %v815_v24 }
 0x148   : > { %v746_v8 = vld [vmem:[#allocation2 + $0x20] sm:$0xff] (!%p1000_p11)  ;;  %v816_v25 = vsel (!%p1000_p11), %vm784_vm3, %v768_v10, %v800_v18  ;;  %v776_v47 = vadd.f32 (!%p1000_p11), %v1338_v2, %v753_v29  ;;  %837 = vst [vmem:[%s1422_s3 + $0x40] sm:$0xff] (!%p1000_p11), %v821_v45  ;;  %838 = vst [vmem:[%s1422_s3 + $0x48] sm:$0xff] (!%p1000_p11), %v822_v48  ;;  %vm791_vm10 = vcmp.ge.f32.partialorder (!%p1000_p11), %v775_v46, 0.0  ;;  %v807_v53 = vmul.f32 (!%p1000_p11), 0.01, %v775_v46 }
 0x149   : > { %728 = vst [vmem:[#allocation2 + $0x30] sm:$0xff] %v712_v59  ;;  %736 = vst [vmem:[#allocation2 + $0x70] sm:$0xff] %v720_v60  ;;  %v713_v63 = vadd.f32 %v1046_v61, %v376_v55  ;;  %v721_v0 = vadd.f32 %v1070_v62, %v384_v57  ;;  %v769_v11 = vadd.f32 (!%p1000_p11), %v1338_v2, %v746_v8  ;;  %v754_v34 = vld [vmem:[#allocation2 + $0x60] sm:$0xff] (!%p1000_p11) }
 0x14a   : > { %v747_v12 = vld [vmem:[#allocation2 + $0x28] sm:$0xff] (!%p1000_p11)  ;;  %832 = vst [vmem:[%s1422_s3 + $0x18] sm:$0xff] (!%p1000_p11), %v816_v25  ;;  %v777_v49 = vadd.f32 (!%p1000_p11), %v1338_v2, %v754_v34  ;;  %vm792_vm11 = vcmp.ge.f32.partialorder (!%p1000_p11), %v776_v47, 0.0  ;;  %v808_v54 = vmul.f32 (!%p1000_p11), 0.01, %v776_v47  ;;  %v823_v57 = vsel (!%p1000_p11), %vm791_vm10, %v775_v46, %v807_v53 }
 0x14b   : > { %729 = vst [vmem:[#allocation2 + $0x38] sm:$0xff] %v713_v63  ;;  %737 = vst [vmem:[#allocation2 + $0x78] sm:$0xff] %v721_v0  ;;  %vm785_vm4 = vcmp.ge.f32.partialorder (!%p1000_p11), %v769_v11, 0.0  ;;  %v801_v21 = vmul.f32 (!%p1000_p11), 0.01, %v769_v11  ;;  %v770_v26 = vadd.f32 (!%p1000_p11), %v1338_v2, %v747_v12  ;;  %v755_v35 = vld [vmem:[#allocation2 + $0x68] sm:$0xff] (!%p1000_p11) }
 0x14c   : > { %v778_v50 = vadd.f32 %v1338_v2, %v755_v35  ;;  %vm793_vm12 = vcmp.ge.f32.partialorder %v777_v49, 0.0  ;;  %v809_v55 = vmul.f32 0.01, %v777_v49  ;;  %v824_v58 = vsel %vm792_vm11, %v776_v47, %v808_v54  ;;  %839 = vst [vmem:[%s1422_s3 + $0x50] sm:$0xff] %v823_v57 }
 0x14d   : > { %v817_v30 = vsel %vm785_vm4, %v769_v11, %v801_v21  ;;  %vm786_vm5 = vcmp.ge.f32.partialorder %v770_v26, 0.0  ;;  %v802_v37 = vmul.f32 0.01, %v770_v26  ;;  %840 = vst [vmem:[%s1422_s3 + $0x58] sm:$0xff] %v824_v58 }
 0x14e   : > { %833 = vst [vmem:[%s1422_s3 + $0x20] sm:$0xff] %v817_v30  ;;  %vm794_vm13 = vcmp.ge.f32.partialorder %v778_v50, 0.0  ;;  %v810_v56 = vmul.f32 0.01, %v778_v50  ;;  %v825_v60 = vsel %vm793_vm12, %v777_v49, %v809_v55 }
 0x14f   : > { %v818_v41 = vsel %vm786_vm5, %v770_v26, %v802_v37  ;;  %841 = vst [vmem:[%s1422_s3 + $0x60] sm:$0xff] %v825_v60 }
 0x150   : > { %v748_v13 = vld [vmem:[#allocation2 + $0x30] sm:$0xff]  ;;  %834 = vst [vmem:[%s1422_s3 + $0x28] sm:$0xff] %v818_v41  ;;  %v826_v61 = vsel %vm794_vm13, %v778_v50, %v810_v56 }
 0x151   : > { %v771_v27 = vadd.f32 %v1338_v2, %v748_v13  ;;  %v756_v36 = vld [vmem:[#allocation2 + $0x70] sm:$0xff]  ;;  %842 = vst [vmem:[%s1422_s3 + $0x68] sm:$0xff] %v826_v61 }
 0x152   : > { %v749_v14 = vld [vmem:[#allocation2 + $0x38] sm:$0xff]  ;;  %v779_v51 = vadd.f32 %v1338_v2, %v756_v36 }
 0x153   : > { %v772_v31 = vadd.f32 %v1338_v2, %v749_v14  ;;  %vm787_vm6 = vcmp.ge.f32.partialorder %v771_v27, 0.0  ;;  %v803_v38 = vmul.f32 0.01, %v771_v27  ;;  %v757_v52 = vld [vmem:[#allocation2 + $0x78] sm:$0xff] }
 0x154   : > { %vm795_vm14 = vcmp.ge.f32.partialorder %v779_v51, 0.0  ;;  %v811_v59 = vmul.f32 0.01, %v779_v51  ;;  %v780_v62 = vadd.f32 %v1338_v2, %v757_v52 }
 0x155   : > { %vm788_vm7 = vcmp.ge.f32.partialorder %v772_v31, 0.0  ;;  %v804_v39 = vmul.f32 0.01, %v772_v31  ;;  %v819_v42 = vsel %vm787_vm6, %v771_v27, %v803_v38 }
 0x156   : > { %835 = vst [vmem:[%s1422_s3 + $0x30] sm:$0xff] %v819_v42  ;;  %v827_v63 = vsel %vm795_vm14, %v779_v51, %v811_v59  ;;  %vm796_vm15 = vcmp.ge.f32.partialorder %v780_v62, 0.0  ;;  %v812_v0 = vmul.f32 0.01, %v780_v62 }
 0x157   : > { %v820_v44 = vsel %vm788_vm7, %v772_v31, %v804_v39  ;;  %843 = vst [vmem:[%s1422_s3 + $0x70] sm:$0xff] %v827_v63 }
 0x158   : > { %836 = vst [vmem:[%s1422_s3 + $0x38] sm:$0xff] %v820_v44  ;;  %v828_v1 = vsel %vm796_vm15, %v780_v62, %v812_v0 }
 0x159   : > { %844 = vst [vmem:[%s1422_s3 + $0x78] sm:$0xff] %v828_v1 }
 0x15a PF: > { %s13_s16 = sadd.s32 1, %s1206_s16   ;;  %s1423_s12 = smov %s1194_s13 }
 0x15b   : > { %p10_p12 = scmp.ge.s32.totalorder %s13_s16, 6   ;;  %s1424_s13 = smov %s1264_s20 }
 0x15c   : > { %s1425_s14 = smov %s1202_s15  ;;  %s1426_s15 = smov %s1428_s17 }
 0x15d   :  { %12 = sbr.rel (!%p10_p12) target bundleno = 3 (0x3), region = 119 }

// kernel: _lambda_.14
= control target key start
LH: loop header
LB: loop body
LE: loop exit
PB: predicated region body
PF: predicated region fallthrough
CT: control target
= control target key end

     0   :  { %s1270_s12 = smov 0   ;;  %s1272_s13 = smov 0   ;;  %s1457_s0 = inlined_call_operand.vmem [shape: bf16[640,512], index: 0, kind: input, shape index: {}]   ;;  %s1458_s1 = inlined_call_operand.vmem [shape: bf16[512,128], index: 1, kind: input, shape index: {}]   ;;  %s1459_s2 = inlined_call_operand.vmem [shape: f32[1,128], index: 2, kind: input, shape index: {}]   ;;  %s1460_s3 = inlined_call_operand.vmem [shape: f32[640,128], index: 3, kind: output, shape index: {}]  }
   0x1   :  { %s1274_s14 = smov 0   ;;  %s1276_s15 = smov 0  }
   0x2   :  { %s1278_s16 = smov 0   ;;  %s1280_s17 = smov 0  }
   0x3   :  { %s1282_s18 = smov 0  }
   0x4 LB: > { %s25_s19 = sadd.s32 1, %s1239_s16  ;;  %s32_s20 = sadd.s32 1, %s1243_s17  ;;  %s1247_s18 = sphi %s1282_s18, %s13_s18   ;;  %s1243_s17 = sphi %s1280_s17, %s1466_s17   ;;  %s1239_s16 = sphi %s1278_s16, %s1465_s16   ;;  %s1235_s15 = sphi %s1276_s15, %s1464_s15   ;;  %s1231_s14 = sphi %s1274_s14, %s1463_s14   ;;  %s1227_s13 = sphi %s1272_s13, %s1462_s13   ;;  %s1223_s12 = sphi %s1270_s12, %s1461_s12  }
   0x5   : > { %p26_p0 = scmp.ge.s32.totalorder %s25_s19, 2  ;;  %p48_p1 = scmp.ne.s32.totalorder %s1227_s13, %s1223_s12 }
   0x6   : > { %p49_p2 = scmp.eq.s32.totalorder %s1247_s18, 0  ;;  %s41_s24 = sadd.s32 1, %s1227_s13 }
   0x7   : > { %s1468_s19 = smov (%p26_p0, %s25_s19), 0  ;;  %s1470_s20 = smov (!%p26_p0, %s32_s20), %s1243_s17 }
   0x8   : > { %p50_p3 = por %p49_p2, %p48_p1  ;;  %p34_p4 = scmp.ge.s32.totalorder %s1470_s20, 5 }
   0x9   : > { %s37_s21 = ssub.s32 %s1239_s16, %s1468_s19  ;;  %p966_p6 = scmp.ge.s32.totalorder %s1247_s18, 10 }
   0xa   : > { %s1472_s20 = smov (%p34_p4, %s1470_s20), 0 }
   0xb   : > { %s36_s22 = ssub.s32 %s1243_s17, %s1472_s20  ;;  %162 = sbr.rel (%p966_p6) target bundleno = 33 (0x21), region = 20 }
   0xc   : > { %s38_s23 = sor.u32 %s37_s21, %s36_s22 }
   0xd   : > { %p39_p5 = scmp.eq.s32.totalorder %s38_s23, 0 }
   0xf   : > { %s1321_s25 = scalar_select %p39_p5, %s1227_s13, %s41_s24  }
  0x12   : > { %165 = sbr.rel (!%p50_p3) target bundleno = 33 (0x21), region = 24  ;;  %s167_s26 = sand.u32 (%p50_p3), 1, %s1227_s13  }
  0x13   : > { %s969_s27 = sshll.u32 (%p50_p3), %s1239_s16, 1  ;;  %s967_s28 = sshll.u32 (%p50_p3), %s167_s26, 7 }
  0x14   : > { %s1015_s29 = sshll.u32 (%p50_p3), %s1243_s17, 6  ;;  %s169_s8 = scalar_lea.vmem (%p50_p3), [#allocation3], %s967_s28 }
  0x15   : > { %s173_s30 = sadd.s32 (%p50_p3), %s1015_s29, %s969_s27 }
  0x16   : > { %s971_s4 = sshll.u32 (%p50_p3), %s173_s30, 2 }
  0x17   : > { %s1330_s7 = scalar_lea.vmem (%p50_p3), %s1457_s0, %s971_s4 }
  0x18   : > { %v233_v0 = vld [vmem:[%s1330_s7] sm:$0xff] (%p50_p3)  ;;  %v235_v1 = vld [vmem:[%s1330_s7 + $0x10] sm:$0xff] (%p50_p3) }
  0x19   : > { %v237_v2 = vld [vmem:[%s1330_s7 + $0x20] sm:$0xff]  ;;  %234 = vst [vmem:[%s169_s8] sm:$0xff] %v233_v0  ;;  %236 = vst [vmem:[%s169_s8 + $0x8] sm:$0xff] %v235_v1  ;;  %v239_v3 = vld [vmem:[%s1330_s7 + $0x30] sm:$0xff] }
  0x1a   : > { %238 = vst [vmem:[%s169_s8 + $0x10] sm:$0xff] %v237_v2  ;;  %v241_v4 = vld [vmem:[%s1330_s7 + $0x40] sm:$0xff]  ;;  %v243_v5 = vld [vmem:[%s1330_s7 + $0x50] sm:$0xff]  ;;  %240 = vst [vmem:[%s169_s8 + $0x18] sm:$0xff] %v239_v3 }
  0x1b   : > { %242 = vst [vmem:[%s169_s8 + $0x20] sm:$0xff] %v241_v4  ;;  %244 = vst [vmem:[%s169_s8 + $0x28] sm:$0xff] %v243_v5  ;;  %v245_v6 = vld [vmem:[%s1330_s7 + $0x60] sm:$0xff]  ;;  %v247_v7 = vld [vmem:[%s1330_s7 + $0x70] sm:$0xff] }
  0x1c   : > { %v249_v8 = vld [vmem:[%s1330_s7 + $0x80] sm:$0xff]  ;;  %246 = vst [vmem:[%s169_s8 + $0x30] sm:$0xff] %v245_v6  ;;  %248 = vst [vmem:[%s169_s8 + $0x38] sm:$0xff] %v247_v7  ;;  %v251_v9 = vld [vmem:[%s1330_s7 + $0x90] sm:$0xff] }
  0x1d   : > { %250 = vst [vmem:[%s169_s8 + $0x40] sm:$0xff] %v249_v8  ;;  %v253_v10 = vld [vmem:[%s1330_s7 + $0xa0] sm:$0xff]  ;;  %v255_v11 = vld [vmem:[%s1330_s7 + $0xb0] sm:$0xff]  ;;  %252 = vst [vmem:[%s169_s8 + $0x48] sm:$0xff] %v251_v9 }
  0x1e   : > { %254 = vst [vmem:[%s169_s8 + $0x50] sm:$0xff] %v253_v10  ;;  %256 = vst [vmem:[%s169_s8 + $0x58] sm:$0xff] %v255_v11  ;;  %v257_v12 = vld [vmem:[%s1330_s7 + $0xc0] sm:$0xff]  ;;  %v259_v13 = vld [vmem:[%s1330_s7 + $0xd0] sm:$0xff] }
  0x1f   : > { %v261_v14 = vld [vmem:[%s1330_s7 + $0xe0] sm:$0xff]  ;;  %258 = vst [vmem:[%s169_s8 + $0x60] sm:$0xff] %v257_v12  ;;  %260 = vst [vmem:[%s169_s8 + $0x68] sm:$0xff] %v259_v13  ;;  %v263_v15 = vld [vmem:[%s1330_s7 + $0xf0] sm:$0xff] }
  0x20   : > { %262 = vst [vmem:[%s169_s8 + $0x70] sm:$0xff] %v261_v14  ;;  %264 = vst [vmem:[%s169_s8 + $0x78] sm:$0xff] %v263_v15 }
  0x21 PF: > { %p972_p7 = scmp.ge.s32.totalorder %s1247_s18, 1  ;;  %p281_p8 = scmp.lt.s32.totalorder %s1247_s18, 11 }
  0x23   : > { %p282_p9 = pnand %p972_p7, %p281_p8 }
  0x24   : > { %s288_s9 = sand.u32 (!%p282_p9), 1, %s1223_s12   ;;  %s974_s10 = sshll.u32 (!%p282_p9), %s1231_s14, 5 }
  0x25   : > { %285 = sbr.rel (%p282_p9) target bundleno = 345 (0x159), region = 66  ;;  %s973_s11 = sshll.u32 (!%p282_p9), %s288_s9, 7 }
  0x26   : > { %p328_p10 = scmp.lt.s32.totalorder (!%p282_p9), %s974_s10, 63  ;;  %s976_s21 = sshll.u32 (!%p282_p9), %s1235_s15, 4 }
  0x27   : > { %p340_p11 = scmp.lt.s32.totalorder (!%p282_p9), %s976_s21, 79  ;;  %s1363_s12 = scalar_lea.vmem (!%p282_p9), [#allocation3], %s973_s11 }
  0x28   : > { %p978_p12 = scmp.ne.s32.totalorder (!%p282_p9), %s1231_s14, 0 }
  0x2c   : > { %s1474_s10 = smov (!%p328_p10, %s974_s10), 63  ;;  %s1476_s21 = smov (!%p340_p11, %s976_s21), 79 }
  0x2d   : > { %s975_s22 = sshll.u32 %s1474_s10, 2  ;;  %s977_s27 = sshll.u32 %s1476_s21, 3  ;;  %v1249_v16 = vmov (!%p978_p12), 0.0  }
  0x2e   : > { %s1356_s26 = scalar_lea.vmem %s1458_s1, %s975_s22  ;;  %s1361_s30 = scalar_lea.vmem %s1460_s3, %s977_s27  ;;  %353 = vst [vmem:[#allocation2] sm:$0xff] (!%p978_p12), %v1249_v16  ;;  %354 = vst [vmem:[#allocation2 + $0x8] sm:$0xff] (!%p978_p12), %v1249_v16 }
  0x2f   : > { %352 = sbr.rel (%p978_p12) target bundleno = 54 (0x36), region = 74  ;;  %355 = vst [vmem:[#allocation2 + $0x10] sm:$0xff] (!%p978_p12), %v1249_v16  ;;  %356 = vst [vmem:[#allocation2 + $0x18] sm:$0xff] (!%p978_p12), %v1249_v16 }
  0x30   : > { %357 = vst [vmem:[#allocation2 + $0x20] sm:$0xff] (!%p978_p12), %v1249_v16  ;;  %358 = vst [vmem:[#allocation2 + $0x28] sm:$0xff] (!%p978_p12), %v1249_v16 }
  0x31   : > { %359 = vst [vmem:[#allocation2 + $0x30] sm:$0xff] (!%p978_p12), %v1249_v16  ;;  %360 = vst [vmem:[#allocation2 + $0x38] sm:$0xff] (!%p978_p12), %v1249_v16 }
  0x32   : > { %361 = vst [vmem:[#allocation2 + $0x40] sm:$0xff] (!%p978_p12), %v1249_v16  ;;  %362 = vst [vmem:[#allocation2 + $0x48] sm:$0xff] (!%p978_p12), %v1249_v16 }
  0x33   : > { %363 = vst [vmem:[#allocation2 + $0x50] sm:$0xff] (!%p978_p12), %v1249_v16  ;;  %364 = vst [vmem:[#allocation2 + $0x58] sm:$0xff] (!%p978_p12), %v1249_v16 }
  0x34   : > { %365 = vst [vmem:[#allocation2 + $0x60] sm:$0xff] (!%p978_p12), %v1249_v16  ;;  %366 = vst [vmem:[#allocation2 + $0x68] sm:$0xff] (!%p978_p12), %v1249_v16 }
  0x35   : > { %367 = vst [vmem:[#allocation2 + $0x70] sm:$0xff] (!%p978_p12), %v1249_v16  ;;  %368 = vst [vmem:[#allocation2 + $0x78] sm:$0xff] (!%p978_p12), %v1249_v16 }
  0x36 PF: > { %v1153_v17 = vld [vmem:[%s1356_s26 + $0x40] sm:$0xff]   ;;  %v1155_v19 = vld [vmem:[%s1356_s26 + $0x48] sm:$0xff]   ;;  %v1157_v21 = vld [vmem:[%s1356_s26 + $0x50] sm:$0xff]   ;;  %p1011_p13 = scmp.ne.s32.totalorder %s1231_s14, 1 }
  0x37   : > { %v1154_v18 = vld [vmem:[%s1356_s26] sm:$0xff]   ;;  %1016 = vmatprep.subr.bf16.mxu0 %v1153_v17  ;;  %1080 = vmatprep.subr.bf16.mxu1 %v1153_v17  ;;  %v1156_v20 = vld [vmem:[%s1356_s26 + $0x8] sm:$0xff]   ;;  %v1158_v22 = vld [vmem:[%s1356_s26 + $0x10] sm:$0xff]  }
  0x38   : > { %1017 = vmatpush3.bf16.msra.mxu0 %v1154_v18  ;;  %1088 = vmatpush3.bf16.msra.mxu1 %v1154_v18  ;;  %v1159_v23 = vld [vmem:[%s1356_s26 + $0x58] sm:$0xff]   ;;  %v1161_v25 = vld [vmem:[%s1356_s26 + $0x60] sm:$0xff]   ;;  %v1163_v27 = vld [vmem:[%s1356_s26 + $0x68] sm:$0xff]  }
  0x39   : > { %1018 = vmatprep.subr.bf16.mxu0 %v1155_v19  ;;  %1081 = vmatprep.subr.bf16.mxu1 %v1155_v19  ;;  %v1160_v24 = vld [vmem:[%s1356_s26 + $0x18] sm:$0xff]   ;;  %v1162_v26 = vld [vmem:[%s1356_s26 + $0x20] sm:$0xff]   ;;  %v1164_v30 = vld [vmem:[%s1356_s26 + $0x28] sm:$0xff]  }
  0x3a   : > { %v1171_v28 = vld [vmem:[%s1363_s12 + $0x4] ss:$8 sps:$4 sm:$0xff]   ;;  %v1165_v31 = vld [vmem:[%s1356_s26 + $0x70] sm:$0xff]   ;;  %v1167_v33 = vld [vmem:[%s1356_s26 + $0x78] sm:$0xff]  }
  0x3b   : > { %v1174_v29 = vld [vmem:[%s1363_s12 + $0x44] ss:$8 sps:$4 sm:$0xff]   ;;  %641 = vmatprep.mubr.bf16.mxu0 %v1171_v28  ;;  %v1166_v32 = vld [vmem:[%s1356_s26 + $0x30] sm:$0xff]   ;;  %v1168_v34 = vld [vmem:[%s1356_s26 + $0x38] sm:$0xff]  }
  0x3c   : > { %1019 = vmatpush3.bf16.msra.mxu0 %v1156_v20  ;;  %1089 = vmatpush3.bf16.msra.mxu1 %v1156_v20  ;;  %v1169_v35 = vld [vmem:[%s1363_s12] ss:$8 sps:$4 sm:$0xff]   ;;  %v1175_v37 = vld [vmem:[%s1363_s12 + $0x14] ss:$8 sps:$4 sm:$0xff]   ;;  %v1179_v39 = vld [vmem:[%s1363_s12 + $0x10] ss:$8 sps:$4 sm:$0xff]  }
  0x3d   : > { %1020 = vmatprep.subr.bf16.mxu0 %v1157_v21  ;;  %1082 = vmatprep.subr.bf16.mxu1 %v1157_v21  ;;  %v1172_v36 = vld [vmem:[%s1363_s12 + $0x40] ss:$8 sps:$4 sm:$0xff]   ;;  %v1177_v38 = vld [vmem:[%s1363_s12 + $0x54] ss:$8 sps:$4 sm:$0xff]   ;;  %v1180_v40 = vld [vmem:[%s1363_s12 + $0x50] ss:$8 sps:$4 sm:$0xff]  }
  0x3e   : > { %673 = vmatprep.mubr.bf16.mxu1 %v1174_v29  ;;  %v1181_v41 = vld [vmem:[%s1363_s12 + $0x24] ss:$8 sps:$4 sm:$0xff]   ;;  %v1185_v43 = vld [vmem:[%s1363_s12 + $0x20] ss:$8 sps:$4 sm:$0xff]   ;;  %v1187_v45 = vld [vmem:[%s1363_s12 + $0x34] ss:$8 sps:$4 sm:$0xff]  }
  0x3f   : > { %v1183_v42 = vld [vmem:[%s1363_s12 + $0x64] ss:$8 sps:$4 sm:$0xff]   ;;  %v1186_v44 = vld [vmem:[%s1363_s12 + $0x60] ss:$8 sps:$4 sm:$0xff]   ;;  %v1189_v46 = vld [vmem:[%s1363_s12 + $0x74] ss:$8 sps:$4 sm:$0xff]  }
  0x40   : > { %1021 = vmatpush3.bf16.msra.mxu0 %v1158_v22  ;;  %1090 = vmatpush3.bf16.msra.mxu1 %v1158_v22  ;;  %v1191_v47 = vld [vmem:[%s1363_s12 + $0x30] ss:$8 sps:$4 sm:$0xff]   ;;  %v369_v51 = vld [vmem:[#allocation2] sm:$0xff]  ;;  %v370_v59 = vld [vmem:[#allocation2 + $0x8] sm:$0xff] }
  0x41   : > { %1022 = vmatprep.subr.bf16.mxu0 %v1159_v23  ;;  %1083 = vmatprep.subr.bf16.mxu1 %v1159_v23  ;;  %v1192_v48 = vld [vmem:[%s1363_s12 + $0x70] ss:$8 sps:$4 sm:$0xff]   ;;  %v377_v53 = vld [vmem:[#allocation2 + $0x40] sm:$0xff]  ;;  %v378_v61 = vld [vmem:[#allocation2 + $0x48] sm:$0xff] }
  0x42   : > { %v371_v7 = vld [vmem:[#allocation2 + $0x10] sm:$0xff]  ;;  %v372_v15 = vld [vmem:[#allocation2 + $0x18] sm:$0xff]  ;;  %v381_v29 = vld [vmem:[#allocation2 + $0x60] sm:$0xff] }
  0x43   : > { %v379_v9 = vld [vmem:[#allocation2 + $0x50] sm:$0xff]  ;;  %v380_v17 = vld [vmem:[#allocation2 + $0x58] sm:$0xff] }
  0x44   : > { %1023 = vmatpush3.bf16.msra.mxu0 %v1160_v24  ;;  %1091 = vmatpush3.bf16.msra.mxu1 %v1160_v24 }
  0x45   : > { %1024 = vmatprep.subr.bf16.mxu0 %v1161_v25  ;;  %1084 = vmatprep.subr.bf16.mxu1 %v1161_v25 }
  0x48   : > { %1025 = vmatpush3.bf16.msra.mxu0 %v1162_v26  ;;  %1092 = vmatpush3.bf16.msra.mxu1 %v1162_v26 }
  0x49   : > { %1026 = vmatprep.subr.bf16.mxu0 %v1163_v27  ;;  %1085 = vmatprep.subr.bf16.mxu1 %v1163_v27  ;;  %v373_v27 = vld [vmem:[#allocation2 + $0x20] sm:$0xff] }
  0x4c   : > { %1027 = vmatpush3.bf16.msra.mxu0 %v1164_v30  ;;  %1093 = vmatpush3.bf16.msra.mxu1 %v1164_v30 }
  0x4d   : > { %1028 = vmatprep.subr.bf16.mxu0 %v1165_v31  ;;  %1086 = vmatprep.subr.bf16.mxu1 %v1165_v31 }
  0x50   : > { %1029 = vmatpush3.bf16.msra.mxu0 %v1166_v32  ;;  %1094 = vmatpush3.bf16.msra.mxu1 %v1166_v32 }
  0x51   : > { %1030 = vmatprep.subr.bf16.mxu0 %v1167_v33  ;;  %1087 = vmatprep.subr.bf16.mxu1 %v1167_v33 }
  0x54   : > { %1031 = vmatpush3.bf16.msra.mxu0 %v1168_v34  ;;  %1095 = vmatpush3.bf16.msra.mxu1 %v1168_v34 }
  0x57   : > { %642 = vmatmul.mubr.bf16.vlgmr.msra.gmra.mrb[0].mxu0 %v1169_v35  ;;  %674 = vmatmul.mubr.bf16.vlgmr.msra.gmra.mrb[0].mxu1 %v1172_v36  ;;  %v374_v35 = vld [vmem:[#allocation2 + $0x28] sm:$0xff] }
  0x58   : > { %649 = vmatprep.mubr.bf16.mxu0 %v1175_v37  ;;  %681 = vmatprep.mubr.bf16.mxu1 %v1177_v38  ;;  %v382_v37 = vld [vmem:[#allocation2 + $0x68] sm:$0xff] }
  0x5f   : > { %650 = vmatmul.mubr.bf16.gmra.mrb[4].mxu0 %v1179_v39  ;;  %682 = vmatmul.mubr.bf16.gmra.mrb[4].mxu1 %v1180_v40 }
  0x60   : > { %657 = vmatprep.mubr.bf16.mxu0 %v1181_v41  ;;  %689 = vmatprep.mubr.bf16.mxu1 %v1183_v42 }
  0x67   : > { %658 = vmatmul.mubr.bf16.gmra.mrb[8].mxu0 %v1185_v43  ;;  %690 = vmatmul.mubr.bf16.gmra.mrb[8].mxu1 %v1186_v44 }
  0x68   : > { %665 = vmatprep.mubr.bf16.mxu0 %v1187_v45  ;;  %697 = vmatprep.mubr.bf16.mxu1 %v1189_v46 }
  0x6f   : > { %666 = vmatmul.mubr.bf16.gmra.mrb[12].mxu0 %v1191_v47  ;;  %698 = vmatmul.mubr.bf16.gmra.mrb[12].mxu1 %v1192_v48  ;;  %v375_v47 = vld [vmem:[#allocation2 + $0x30] sm:$0xff] }
 0x12a   : > { %v1032_v49 = vpop.f32.mrb[0].mxu0  ;;  %v1056_v50 = vpop.f32.mrb[0].mxu1 }
 0x12b   : > { %v1033_v52 = vpop.f32.mrb[1].mxu0  ;;  %v1057_v54 = vpop.f32.mrb[1].mxu1 }
 0x12c   : > { %v1034_v55 = vadd.f32 %v1033_v52, %v1032_v49  ;;  %v1058_v56 = vadd.f32 %v1057_v54, %v1056_v50  ;;  %v1035_v57 = vpop.f32.mrb[2].mxu0  ;;  %v1059_v58 = vpop.f32.mrb[2].mxu1  ;;  %v383_v49 = vld [vmem:[#allocation2 + $0x70] sm:$0xff] }
 0x12d   : > { %v1036_v60 = vpop.f32.mrb[3].mxu0  ;;  %v1060_v62 = vpop.f32.mrb[3].mxu1 }
 0x12e   : > { %v706_v63 = vadd.f32 %v1034_v55, %v369_v51  ;;  %v714_v0 = vadd.f32 %v1058_v56, %v377_v53  ;;  %v1037_v1 = vadd.f32 %v1036_v60, %v1035_v57  ;;  %v1061_v2 = vadd.f32 %v1060_v62, %v1059_v58  ;;  %v376_v55 = vld [vmem:[#allocation2 + $0x38] sm:$0xff] }
 0x12f   : > { %v384_v57 = vld [vmem:[#allocation2 + $0x78] sm:$0xff] }
 0x130   : > { %722 = vst [vmem:[#allocation2] sm:$0xff] %v706_v63  ;;  %730 = vst [vmem:[#allocation2 + $0x40] sm:$0xff] %v714_v0  ;;  %v707_v3 = vadd.f32 %v1037_v1, %v370_v59  ;;  %v715_v4 = vadd.f32 %v1061_v2, %v378_v61  ;;  %v1402_v2 = vld [vmem:[%s1459_s2] ss:$0 sm:$0xff] (!%p1011_p13) }
 0x132   : > { %723 = vst [vmem:[#allocation2 + $0x8] sm:$0xff] %v707_v3  ;;  %731 = vst [vmem:[#allocation2 + $0x48] sm:$0xff] %v715_v4  ;;  %v1038_v5 = vpop.f32.mrb[4].mxu0  ;;  %v1062_v6 = vpop.f32.mrb[4].mxu1 }
 0x133   : > { %v1039_v8 = vpop.f32.mrb[5].mxu0  ;;  %v1063_v10 = vpop.f32.mrb[5].mxu1 }
 0x134   : > { %v1040_v11 = vadd.f32 %v1039_v8, %v1038_v5  ;;  %v1064_v12 = vadd.f32 %v1063_v10, %v1062_v6  ;;  %v1041_v13 = vpop.f32.mrb[6].mxu0  ;;  %v1065_v14 = vpop.f32.mrb[6].mxu1 }
 0x135   : > { %v1042_v16 = vpop.f32.mrb[7].mxu0  ;;  %v1066_v18 = vpop.f32.mrb[7].mxu1 }
 0x136   : > { %v708_v19 = vadd.f32 %v1040_v11, %v371_v7  ;;  %v716_v20 = vadd.f32 %v1064_v12, %v379_v9  ;;  %v1043_v21 = vadd.f32 %v1042_v16, %v1041_v13  ;;  %v1067_v22 = vadd.f32 %v1066_v18, %v1065_v14 }
 0x137   : > { %v742_v1 = vld [vmem:[#allocation2] sm:$0xff] (!%p1011_p13) }
 0x138   : > { %724 = vst [vmem:[#allocation2 + $0x10] sm:$0xff] %v708_v19  ;;  %732 = vst [vmem:[#allocation2 + $0x50] sm:$0xff] %v716_v20  ;;  %v709_v23 = vadd.f32 %v1043_v21, %v372_v15  ;;  %v717_v24 = vadd.f32 %v1067_v22, %v380_v17  ;;  %v765_v4 = vadd.f32 (!%p1011_p13), %v1402_v2, %v742_v1  ;;  %v750_v22 = vld [vmem:[#allocation2 + $0x40] sm:$0xff] (!%p1011_p13) }
 0x139   : > { %v743_v3 = vld [vmem:[#allocation2 + $0x8] sm:$0xff] (!%p1011_p13) }
 0x13a   : > { %725 = vst [vmem:[#allocation2 + $0x18] sm:$0xff] %v709_v23  ;;  %733 = vst [vmem:[#allocation2 + $0x58] sm:$0xff] %v717_v24  ;;  %v1044_v25 = vpop.f32.mrb[8].mxu0  ;;  %v1068_v26 = vpop.f32.mrb[8].mxu1  ;;  %v766_v5 = vadd.f32 (!%p1011_p13), %v1402_v2, %v743_v3  ;;  %vm781_vm0 = vcmp.ge.f32.partialorder (!%p1011_p13), %v765_v4, 0.0  ;;  %v751_v23 = vld [vmem:[#allocation2 + $0x48] sm:$0xff] (!%p1011_p13) }
 0x13b   : > { %v1045_v28 = vpop.f32.mrb[9].mxu0  ;;  %v1069_v30 = vpop.f32.mrb[9].mxu1  ;;  %v797_v15 = vmul.f32 (!%p1011_p13), 0.01, %v765_v4 }
 0x13c   : > { %v1046_v31 = vadd.f32 %v1045_v28, %v1044_v25  ;;  %v1070_v32 = vadd.f32 %v1069_v30, %v1068_v26  ;;  %v1047_v33 = vpop.f32.mrb[10].mxu0  ;;  %v1071_v34 = vpop.f32.mrb[10].mxu1  ;;  %vm782_vm1 = vcmp.ge.f32.partialorder (!%p1011_p13), %v766_v5, 0.0  ;;  %v798_v16 = vmul.f32 (!%p1011_p13), 0.01, %v766_v5 }
 0x13d   : > { %v1048_v36 = vpop.f32.mrb[11].mxu0  ;;  %v1072_v38 = vpop.f32.mrb[11].mxu1  ;;  %v813_v19 = vsel (!%p1011_p13), %vm781_vm0, %v765_v4, %v797_v15 }
 0x13e   : > { %v710_v39 = vadd.f32 %v1046_v31, %v373_v27  ;;  %v718_v40 = vadd.f32 %v1070_v32, %v381_v29  ;;  %v1049_v41 = vadd.f32 %v1048_v36, %v1047_v33  ;;  %v1073_v42 = vadd.f32 %v1072_v38, %v1071_v34  ;;  %829 = vst [vmem:[%s1361_s30] sm:$0xff] (!%p1011_p13), %v813_v19 }
 0x13f   : > { %v744_v6 = vld [vmem:[#allocation2 + $0x10] sm:$0xff] (!%p1011_p13)  ;;  %v814_v20 = vsel (!%p1011_p13), %vm782_vm1, %v766_v5, %v798_v16  ;;  %v773_v32 = vadd.f32 (!%p1011_p13), %v1402_v2, %v750_v22  ;;  %v774_v33 = vadd.f32 (!%p1011_p13), %v1402_v2, %v751_v23 }
 0x140   : > { %726 = vst [vmem:[#allocation2 + $0x20] sm:$0xff] %v710_v39  ;;  %734 = vst [vmem:[#allocation2 + $0x60] sm:$0xff] %v718_v40  ;;  %v711_v43 = vadd.f32 %v1049_v41, %v374_v35  ;;  %v719_v44 = vadd.f32 %v1073_v42, %v382_v37  ;;  %v767_v9 = vadd.f32 (!%p1011_p13), %v1402_v2, %v744_v6  ;;  %v752_v28 = vld [vmem:[#allocation2 + $0x50] sm:$0xff] (!%p1011_p13) }
 0x141   : > { %v745_v7 = vld [vmem:[#allocation2 + $0x18] sm:$0xff] (!%p1011_p13)  ;;  %830 = vst [vmem:[%s1361_s30 + $0x8] sm:$0xff] (!%p1011_p13), %v814_v20  ;;  %vm789_vm8 = vcmp.ge.f32.partialorder (!%p1011_p13), %v773_v32, 0.0  ;;  %v805_v40 = vmul.f32 (!%p1011_p13), 0.01, %v773_v32  ;;  %vm790_vm9 = vcmp.ge.f32.partialorder (!%p1011_p13), %v774_v33, 0.0 }
 0x142   : > { %727 = vst [vmem:[#allocation2 + $0x28] sm:$0xff] %v711_v43  ;;  %735 = vst [vmem:[#allocation2 + $0x68] sm:$0xff] %v719_v44  ;;  %v1050_v45 = vpop.f32.mrb[12].mxu0  ;;  %v1074_v46 = vpop.f32.mrb[12].mxu1  ;;  %v768_v10 = vadd.f32 (!%p1011_p13), %v1402_v2, %v745_v7  ;;  %vm783_vm2 = vcmp.ge.f32.partialorder (!%p1011_p13), %v767_v9, 0.0  ;;  %v753_v29 = vld [vmem:[#allocation2 + $0x58] sm:$0xff] (!%p1011_p13) }
 0x143   : > { %v1051_v48 = vpop.f32.mrb[13].mxu0  ;;  %v1075_v50 = vpop.f32.mrb[13].mxu1  ;;  %v799_v17 = vmul.f32 (!%p1011_p13), 0.01, %v767_v9  ;;  %v806_v43 = vmul.f32 (!%p1011_p13), 0.01, %v774_v33 }
 0x144   : > { %v1052_v51 = vadd.f32 %v1051_v48, %v1050_v45  ;;  %v1076_v52 = vadd.f32 %v1075_v50, %v1074_v46  ;;  %v1053_v53 = vpop.f32.mrb[14].mxu0  ;;  %v1077_v54 = vpop.f32.mrb[14].mxu1  ;;  %741 = sbr.rel (%p1011_p13) target bundleno = 345 (0x159), region = 78  ;;  %vm784_vm3 = vcmp.ge.f32.partialorder (!%p1011_p13), %v768_v10, 0.0  ;;  %v800_v18 = vmul.f32 (!%p1011_p13), 0.01, %v768_v10 }
 0x145   : > { %v1054_v56 = vpop.f32.mrb[15].mxu0  ;;  %v1078_v58 = vpop.f32.mrb[15].mxu1  ;;  %v815_v24 = vsel (!%p1011_p13), %vm783_vm2, %v767_v9, %v799_v17  ;;  %v821_v45 = vsel (!%p1011_p13), %vm789_vm8, %v773_v32, %v805_v40  ;;  %v775_v46 = vadd.f32 (!%p1011_p13), %v1402_v2, %v752_v28  ;;  %v822_v48 = vsel (!%p1011_p13), %vm790_vm9, %v774_v33, %v806_v43 }
 0x146   : > { %v712_v59 = vadd.f32 %v1052_v51, %v375_v47  ;;  %v720_v60 = vadd.f32 %v1076_v52, %v383_v49  ;;  %v1055_v61 = vadd.f32 %v1054_v56, %v1053_v53  ;;  %v1079_v62 = vadd.f32 %v1078_v58, %v1077_v54  ;;  %831 = vst [vmem:[%s1361_s30 + $0x10] sm:$0xff] (!%p1011_p13), %v815_v24 }
 0x147   : > { %v746_v8 = vld [vmem:[#allocation2 + $0x20] sm:$0xff] (!%p1011_p13)  ;;  %v816_v25 = vsel (!%p1011_p13), %vm784_vm3, %v768_v10, %v800_v18  ;;  %v776_v47 = vadd.f32 (!%p1011_p13), %v1402_v2, %v753_v29  ;;  %837 = vst [vmem:[%s1361_s30 + $0x40] sm:$0xff] (!%p1011_p13), %v821_v45  ;;  %838 = vst [vmem:[%s1361_s30 + $0x48] sm:$0xff] (!%p1011_p13), %v822_v48  ;;  %vm791_vm10 = vcmp.ge.f32.partialorder (!%p1011_p13), %v775_v46, 0.0  ;;  %v807_v53 = vmul.f32 (!%p1011_p13), 0.01, %v775_v46 }
 0x148   : > { %728 = vst [vmem:[#allocation2 + $0x30] sm:$0xff] %v712_v59  ;;  %736 = vst [vmem:[#allocation2 + $0x70] sm:$0xff] %v720_v60  ;;  %v713_v63 = vadd.f32 %v1055_v61, %v376_v55  ;;  %v721_v0 = vadd.f32 %v1079_v62, %v384_v57  ;;  %v769_v11 = vadd.f32 (!%p1011_p13), %v1402_v2, %v746_v8  ;;  %v754_v34 = vld [vmem:[#allocation2 + $0x60] sm:$0xff] (!%p1011_p13) }
 0x149   : > { %v747_v12 = vld [vmem:[#allocation2 + $0x28] sm:$0xff] (!%p1011_p13)  ;;  %832 = vst [vmem:[%s1361_s30 + $0x18] sm:$0xff] (!%p1011_p13), %v816_v25  ;;  %v777_v49 = vadd.f32 (!%p1011_p13), %v1402_v2, %v754_v34  ;;  %vm792_vm11 = vcmp.ge.f32.partialorder (!%p1011_p13), %v776_v47, 0.0  ;;  %v808_v54 = vmul.f32 (!%p1011_p13), 0.01, %v776_v47  ;;  %v823_v57 = vsel (!%p1011_p13), %vm791_vm10, %v775_v46, %v807_v53 }
 0x14a   : > { %729 = vst [vmem:[#allocation2 + $0x38] sm:$0xff] %v713_v63  ;;  %737 = vst [vmem:[#allocation2 + $0x78] sm:$0xff] %v721_v0  ;;  %vm785_vm4 = vcmp.ge.f32.partialorder (!%p1011_p13), %v769_v11, 0.0  ;;  %v801_v21 = vmul.f32 (!%p1011_p13), 0.01, %v769_v11  ;;  %v770_v26 = vadd.f32 (!%p1011_p13), %v1402_v2, %v747_v12  ;;  %v755_v35 = vld [vmem:[#allocation2 + $0x68] sm:$0xff] (!%p1011_p13) }
 0x14b   : > { %v778_v50 = vadd.f32 %v1402_v2, %v755_v35  ;;  %vm793_vm12 = vcmp.ge.f32.partialorder %v777_v49, 0.0  ;;  %v809_v55 = vmul.f32 0.01, %v777_v49  ;;  %v824_v58 = vsel %vm792_vm11, %v776_v47, %v808_v54  ;;  %839 = vst [vmem:[%s1361_s30 + $0x50] sm:$0xff] %v823_v57 }
 0x14c   : > { %v817_v30 = vsel %vm785_vm4, %v769_v11, %v801_v21  ;;  %vm786_vm5 = vcmp.ge.f32.partialorder %v770_v26, 0.0  ;;  %v802_v37 = vmul.f32 0.01, %v770_v26  ;;  %840 = vst [vmem:[%s1361_s30 + $0x58] sm:$0xff] %v824_v58 }
 0x14d   : > { %833 = vst [vmem:[%s1361_s30 + $0x20] sm:$0xff] %v817_v30  ;;  %vm794_vm13 = vcmp.ge.f32.partialorder %v778_v50, 0.0  ;;  %v810_v56 = vmul.f32 0.01, %v778_v50  ;;  %v825_v60 = vsel %vm793_vm12, %v777_v49, %v809_v55 }
 0x14e   : > { %v818_v41 = vsel %vm786_vm5, %v770_v26, %v802_v37  ;;  %841 = vst [vmem:[%s1361_s30 + $0x60] sm:$0xff] %v825_v60 }
 0x14f   : > { %v748_v13 = vld [vmem:[#allocation2 + $0x30] sm:$0xff]  ;;  %834 = vst [vmem:[%s1361_s30 + $0x28] sm:$0xff] %v818_v41  ;;  %v826_v61 = vsel %vm794_vm13, %v778_v50, %v810_v56 }
 0x150   : > { %v771_v27 = vadd.f32 %v1402_v2, %v748_v13  ;;  %v756_v36 = vld [vmem:[#allocation2 + $0x70] sm:$0xff]  ;;  %842 = vst [vmem:[%s1361_s30 + $0x68] sm:$0xff] %v826_v61 }
 0x151   : > { %v749_v14 = vld [vmem:[#allocation2 + $0x38] sm:$0xff]  ;;  %v779_v51 = vadd.f32 %v1402_v2, %v756_v36 }
 0x152   : > { %v772_v31 = vadd.f32 %v1402_v2, %v749_v14  ;;  %vm787_vm6 = vcmp.ge.f32.partialorder %v771_v27, 0.0  ;;  %v803_v38 = vmul.f32 0.01, %v771_v27  ;;  %v757_v52 = vld [vmem:[#allocation2 + $0x78] sm:$0xff] }
 0x153   : > { %vm795_vm14 = vcmp.ge.f32.partialorder %v779_v51, 0.0  ;;  %v811_v59 = vmul.f32 0.01, %v779_v51  ;;  %v780_v62 = vadd.f32 %v1402_v2, %v757_v52 }
 0x154   : > { %vm788_vm7 = vcmp.ge.f32.partialorder %v772_v31, 0.0  ;;  %v804_v39 = vmul.f32 0.01, %v772_v31  ;;  %v819_v42 = vsel %vm787_vm6, %v771_v27, %v803_v38 }
 0x155   : > { %835 = vst [vmem:[%s1361_s30 + $0x30] sm:$0xff] %v819_v42  ;;  %v827_v63 = vsel %vm795_vm14, %v779_v51, %v811_v59  ;;  %vm796_vm15 = vcmp.ge.f32.partialorder %v780_v62, 0.0  ;;  %v812_v0 = vmul.f32 0.01, %v780_v62 }
 0x156   : > { %v820_v44 = vsel %vm788_vm7, %v772_v31, %v804_v39  ;;  %843 = vst [vmem:[%s1361_s30 + $0x70] sm:$0xff] %v827_v63 }
 0x157   : > { %836 = vst [vmem:[%s1361_s30 + $0x38] sm:$0xff] %v820_v44  ;;  %v828_v1 = vsel %vm796_vm15, %v780_v62, %v812_v0 }
 0x158   : > { %844 = vst [vmem:[%s1361_s30 + $0x78] sm:$0xff] %v828_v1 }
 0x159 PF: > { %s13_s18 = sadd.s32 1, %s1247_s18   ;;  %s1461_s12 = smov %s1227_s13 }
 0x15a   : > { %p10_p0 = scmp.ge.s32.totalorder %s13_s18, 12   ;;  %s1462_s13 = smov %s1321_s25 }
 0x15b   : > { %s1463_s14 = smov %s1239_s16  ;;  %s1464_s15 = smov %s1243_s17 }
 0x15c   : > { %s1465_s16 = smov %s1468_s19  ;;  %s1466_s17 = smov %s1472_s20 }
 0x15d   :  { %12 = sbr.rel (!%p10_p0) target bundleno = 4 (0x4), region = 119 }

// kernel: _lambda_.15
= control target key start
LH: loop header
LB: loop body
LE: loop exit
PB: predicated region body
PF: predicated region fallthrough
CT: control target
= control target key end

     0   :  { %s1646_s12 = smov 0   ;;  %s1648_s13 = smov 0   ;;  %s1931_s0 = inlined_call_operand.vmem [shape: bf16[512,512], index: 0, kind: input, shape index: {}]   ;;  %s1932_s1 = inlined_call_operand.vmem [shape: bf16[512,128], index: 1, kind: input, shape index: {}]   ;;  %s1933_s2 = inlined_call_operand.vmem [shape: f32[1,128], index: 2, kind: input, shape index: {}]   ;;  %s1934_s3 = inlined_call_operand.vmem [shape: f32[512,128], index: 3, kind: output, shape index: {}]  }
   0x1   :  { %s1650_s14 = smov 0   ;;  %s1652_s15 = smov 0  }
   0x2   :  { %s1654_s16 = smov 0   ;;  %s1656_s17 = smov 0  }
   0x3   :  { %s1658_s18 = smov 0  }
   0x4 LB: > { %s25_s19 = sadd.s32 1, %s1615_s16  ;;  %s32_s20 = sadd.s32 1, %s1619_s17  ;;  %s1623_s18 = sphi %s1658_s18, %s13_s18   ;;  %s1619_s17 = sphi %s1656_s17, %s1940_s17   ;;  %s1615_s16 = sphi %s1654_s16, %s1939_s16   ;;  %s1611_s15 = sphi %s1652_s15, %s1938_s15   ;;  %s1607_s14 = sphi %s1650_s14, %s1937_s14   ;;  %s1603_s13 = sphi %s1648_s13, %s1936_s13   ;;  %s1599_s12 = sphi %s1646_s12, %s1935_s12  }
   0x5   : > { %p26_p0 = scmp.ge.s32.totalorder %s25_s19, 2  ;;  %p48_p1 = scmp.ne.s32.totalorder %s1603_s13, %s1599_s12 }
   0x6   : > { %p49_p2 = scmp.eq.s32.totalorder %s1623_s18, 0  ;;  %s41_s24 = sadd.s32 1, %s1603_s13 }
   0x7   : > { %s1942_s19 = smov (%p26_p0, %s25_s19), 0  ;;  %s1944_s20 = smov (!%p26_p0, %s32_s20), %s1619_s17 }
   0x8   : > { %p50_p3 = por %p49_p2, %p48_p1  ;;  %p34_p4 = scmp.ge.s32.totalorder %s1944_s20, 2 }
   0x9   : > { %s37_s21 = ssub.s32 %s1615_s16, %s1942_s19  ;;  %p1254_p6 = scmp.ge.s32.totalorder %s1623_s18, 4 }
   0xa   : > { %s1946_s20 = smov (%p34_p4, %s1944_s20), 0 }
   0xb   : > { %s36_s22 = ssub.s32 %s1619_s17, %s1946_s20  ;;  %162 = sbr.rel (%p1254_p6) target bundleno = 41 (0x29), region = 20 }
   0xc   : > { %s38_s23 = sor.u32 %s37_s21, %s36_s22 }
   0xd   : > { %p39_p5 = scmp.eq.s32.totalorder %s38_s23, 0 }
   0xf   : > { %s1697_s25 = scalar_select %p39_p5, %s1603_s13, %s41_s24  }
  0x12   : > { %165 = sbr.rel (!%p50_p3) target bundleno = 41 (0x29), region = 24  ;;  %s167_s26 = sand.u32 (%p50_p3), 1, %s1603_s13  }
  0x13   : > { %s1257_s27 = sshll.u32 (%p50_p3), %s1615_s16, 1  ;;  %s1255_s28 = sshll.u32 (%p50_p3), %s167_s26, 8 }
  0x14   : > { %s1319_s29 = sshll.u32 (%p50_p3), %s1619_s17, 7  ;;  %s1711_s8 = scalar_lea.vmem (%p50_p3), [#allocation3], %s1255_s28 }
  0x15   : > { %s173_s30 = sadd.s32 (%p50_p3), %s1319_s29, %s1257_s27 }
  0x16   : > { %s1259_s4 = sshll.u32 (%p50_p3), %s173_s30, 2 }
  0x17   : > { %s1706_s7 = scalar_lea.vmem (%p50_p3), %s1931_s0, %s1259_s4 }
  0x18   : > { %v265_v0 = vld [vmem:[%s1706_s7] sm:$0xff] (%p50_p3)  ;;  %v267_v1 = vld [vmem:[%s1706_s7 + $0x10] sm:$0xff] (%p50_p3) }
  0x19   : > { %v269_v2 = vld [vmem:[%s1706_s7 + $0x20] sm:$0xff]  ;;  %266 = vst [vmem:[%s1711_s8] sm:$0xff] %v265_v0  ;;  %268 = vst [vmem:[%s1711_s8 + $0x8] sm:$0xff] %v267_v1  ;;  %v271_v3 = vld [vmem:[%s1706_s7 + $0x30] sm:$0xff] }
  0x1a   : > { %270 = vst [vmem:[%s1711_s8 + $0x10] sm:$0xff] %v269_v2  ;;  %v273_v4 = vld [vmem:[%s1706_s7 + $0x40] sm:$0xff]  ;;  %v275_v5 = vld [vmem:[%s1706_s7 + $0x50] sm:$0xff]  ;;  %272 = vst [vmem:[%s1711_s8 + $0x18] sm:$0xff] %v271_v3 }
  0x1b   : > { %274 = vst [vmem:[%s1711_s8 + $0x20] sm:$0xff] %v273_v4  ;;  %276 = vst [vmem:[%s1711_s8 + $0x28] sm:$0xff] %v275_v5  ;;  %v277_v6 = vld [vmem:[%s1706_s7 + $0x60] sm:$0xff]  ;;  %v279_v7 = vld [vmem:[%s1706_s7 + $0x70] sm:$0xff] }
  0x1c   : > { %v281_v8 = vld [vmem:[%s1706_s7 + $0x80] sm:$0xff]  ;;  %278 = vst [vmem:[%s1711_s8 + $0x30] sm:$0xff] %v277_v6  ;;  %280 = vst [vmem:[%s1711_s8 + $0x38] sm:$0xff] %v279_v7  ;;  %v283_v9 = vld [vmem:[%s1706_s7 + $0x90] sm:$0xff] }
  0x1d   : > { %282 = vst [vmem:[%s1711_s8 + $0x40] sm:$0xff] %v281_v8  ;;  %v285_v10 = vld [vmem:[%s1706_s7 + $0xa0] sm:$0xff]  ;;  %v287_v11 = vld [vmem:[%s1706_s7 + $0xb0] sm:$0xff]  ;;  %284 = vst [vmem:[%s1711_s8 + $0x48] sm:$0xff] %v283_v9 }
  0x1e   : > { %286 = vst [vmem:[%s1711_s8 + $0x50] sm:$0xff] %v285_v10  ;;  %288 = vst [vmem:[%s1711_s8 + $0x58] sm:$0xff] %v287_v11  ;;  %v289_v12 = vld [vmem:[%s1706_s7 + $0xc0] sm:$0xff]  ;;  %v291_v13 = vld [vmem:[%s1706_s7 + $0xd0] sm:$0xff] }
  0x1f   : > { %v293_v14 = vld [vmem:[%s1706_s7 + $0xe0] sm:$0xff]  ;;  %290 = vst [vmem:[%s1711_s8 + $0x60] sm:$0xff] %v289_v12  ;;  %292 = vst [vmem:[%s1711_s8 + $0x68] sm:$0xff] %v291_v13  ;;  %v295_v15 = vld [vmem:[%s1706_s7 + $0xf0] sm:$0xff] }
  0x20   : > { %294 = vst [vmem:[%s1711_s8 + $0x70] sm:$0xff] %v293_v14  ;;  %v297_v16 = vld [vmem:[%s1706_s7 + $0x100] sm:$0xff]  ;;  %v299_v17 = vld [vmem:[%s1706_s7 + $0x110] sm:$0xff]  ;;  %296 = vst [vmem:[%s1711_s8 + $0x78] sm:$0xff] %v295_v15 }
  0x21   : > { %298 = vst [vmem:[%s1711_s8 + $0x80] sm:$0xff] %v297_v16  ;;  %300 = vst [vmem:[%s1711_s8 + $0x88] sm:$0xff] %v299_v17  ;;  %v301_v18 = vld [vmem:[%s1706_s7 + $0x120] sm:$0xff]  ;;  %v303_v19 = vld [vmem:[%s1706_s7 + $0x130] sm:$0xff] }
  0x22   : > { %v305_v20 = vld [vmem:[%s1706_s7 + $0x140] sm:$0xff]  ;;  %302 = vst [vmem:[%s1711_s8 + $0x90] sm:$0xff] %v301_v18  ;;  %304 = vst [vmem:[%s1711_s8 + $0x98] sm:$0xff] %v303_v19  ;;  %v307_v21 = vld [vmem:[%s1706_s7 + $0x150] sm:$0xff] }
  0x23   : > { %306 = vst [vmem:[%s1711_s8 + $0xa0] sm:$0xff] %v305_v20  ;;  %v309_v22 = vld [vmem:[%s1706_s7 + $0x160] sm:$0xff]  ;;  %v311_v23 = vld [vmem:[%s1706_s7 + $0x170] sm:$0xff]  ;;  %308 = vst [vmem:[%s1711_s8 + $0xa8] sm:$0xff] %v307_v21 }
  0x24   : > { %310 = vst [vmem:[%s1711_s8 + $0xb0] sm:$0xff] %v309_v22  ;;  %312 = vst [vmem:[%s1711_s8 + $0xb8] sm:$0xff] %v311_v23  ;;  %v313_v24 = vld [vmem:[%s1706_s7 + $0x180] sm:$0xff]  ;;  %v315_v25 = vld [vmem:[%s1706_s7 + $0x190] sm:$0xff] }
  0x25   : > { %v317_v26 = vld [vmem:[%s1706_s7 + $0x1a0] sm:$0xff]  ;;  %314 = vst [vmem:[%s1711_s8 + $0xc0] sm:$0xff] %v313_v24  ;;  %316 = vst [vmem:[%s1711_s8 + $0xc8] sm:$0xff] %v315_v25  ;;  %v319_v27 = vld [vmem:[%s1706_s7 + $0x1b0] sm:$0xff] }
  0x26   : > { %318 = vst [vmem:[%s1711_s8 + $0xd0] sm:$0xff] %v317_v26  ;;  %v321_v28 = vld [vmem:[%s1706_s7 + $0x1c0] sm:$0xff]  ;;  %v323_v29 = vld [vmem:[%s1706_s7 + $0x1d0] sm:$0xff]  ;;  %320 = vst [vmem:[%s1711_s8 + $0xd8] sm:$0xff] %v319_v27 }
  0x27   : > { %322 = vst [vmem:[%s1711_s8 + $0xe0] sm:$0xff] %v321_v28  ;;  %324 = vst [vmem:[%s1711_s8 + $0xe8] sm:$0xff] %v323_v29  ;;  %v325_v30 = vld [vmem:[%s1706_s7 + $0x1e0] sm:$0xff]  ;;  %v327_v31 = vld [vmem:[%s1706_s7 + $0x1f0] sm:$0xff] }
  0x28   : > { %326 = vst [vmem:[%s1711_s8 + $0xf0] sm:$0xff] %v325_v30  ;;  %328 = vst [vmem:[%s1711_s8 + $0xf8] sm:$0xff] %v327_v31 }
  0x29 PF: > { %p1260_p7 = scmp.ge.s32.totalorder %s1623_s18, 1  ;;  %p345_p8 = scmp.lt.s32.totalorder %s1623_s18, 5 }
  0x2b   : > { %p346_p9 = pnand %p1260_p7, %p345_p8 }
  0x2c   : > { %s352_s9 = sand.u32 (!%p346_p9), 1, %s1599_s12   ;;  %s1262_s10 = sshll.u32 (!%p346_p9), %s1607_s14, 5 }
  0x2d   : > { %349 = sbr.rel (%p346_p9) target bundleno = 390 (0x186), region = 66  ;;  %s1261_s11 = sshll.u32 (!%p346_p9), %s352_s9, 8 }
  0x2e   : > { %p392_p10 = scmp.lt.s32.totalorder (!%p346_p9), %s1262_s10, 63  ;;  %s1264_s21 = sshll.u32 (!%p346_p9), %s1611_s15, 5 }
  0x2f   : > { %p404_p11 = scmp.lt.s32.totalorder (!%p346_p9), %s1264_s21, 63  ;;  %s1789_s12 = scalar_lea.vmem (!%p346_p9), [#allocation3], %s1261_s11 }
  0x30   : > { %p1266_p12 = scmp.ne.s32.totalorder (!%p346_p9), %s1607_s14, 0 }
  0x34   : > { %s1948_s10 = smov (!%p392_p10, %s1262_s10), 63  ;;  %s1950_s21 = smov (!%p404_p11, %s1264_s21), 63 }
  0x35   : > { %s1263_s22 = sshll.u32 %s1948_s10, 2  ;;  %s1265_s27 = sshll.u32 %s1950_s21, 3  ;;  %v1625_v32 = vmov (!%p1266_p12), 0.0  }
  0x36   : > { %s1782_s26 = scalar_lea.vmem %s1932_s1, %s1263_s22  ;;  %s1787_s30 = scalar_lea.vmem %s1934_s3, %s1265_s27  ;;  %417 = vst [vmem:[#allocation2] sm:$0xff] (!%p1266_p12), %v1625_v32  ;;  %418 = vst [vmem:[#allocation2 + $0x8] sm:$0xff] (!%p1266_p12), %v1625_v32 }
  0x37   : > { %416 = sbr.rel (%p1266_p12) target bundleno = 70 (0x46), region = 74  ;;  %419 = vst [vmem:[#allocation2 + $0x10] sm:$0xff] (!%p1266_p12), %v1625_v32  ;;  %420 = vst [vmem:[#allocation2 + $0x18] sm:$0xff] (!%p1266_p12), %v1625_v32 }
  0x38   : > { %421 = vst [vmem:[#allocation2 + $0x20] sm:$0xff] (!%p1266_p12), %v1625_v32  ;;  %422 = vst [vmem:[#allocation2 + $0x28] sm:$0xff] (!%p1266_p12), %v1625_v32 }
  0x39   : > { %423 = vst [vmem:[#allocation2 + $0x30] sm:$0xff] (!%p1266_p12), %v1625_v32  ;;  %424 = vst [vmem:[#allocation2 + $0x38] sm:$0xff] (!%p1266_p12), %v1625_v32 }
  0x3a   : > { %425 = vst [vmem:[#allocation2 + $0x40] sm:$0xff] (!%p1266_p12), %v1625_v32  ;;  %426 = vst [vmem:[#allocation2 + $0x48] sm:$0xff] (!%p1266_p12), %v1625_v32 }
  0x3b   : > { %427 = vst [vmem:[#allocation2 + $0x50] sm:$0xff] (!%p1266_p12), %v1625_v32  ;;  %428 = vst [vmem:[#allocation2 + $0x58] sm:$0xff] (!%p1266_p12), %v1625_v32 }
  0x3c   : > { %429 = vst [vmem:[#allocation2 + $0x60] sm:$0xff] (!%p1266_p12), %v1625_v32  ;;  %430 = vst [vmem:[#allocation2 + $0x68] sm:$0xff] (!%p1266_p12), %v1625_v32 }
  0x3d   : > { %431 = vst [vmem:[#allocation2 + $0x70] sm:$0xff] (!%p1266_p12), %v1625_v32  ;;  %432 = vst [vmem:[#allocation2 + $0x78] sm:$0xff] (!%p1266_p12), %v1625_v32 }
  0x3e   : > { %433 = vst [vmem:[#allocation2 + $0x80] sm:$0xff] %v1625_v32  ;;  %434 = vst [vmem:[#allocation2 + $0x88] sm:$0xff] %v1625_v32 }
  0x3f   : > { %435 = vst [vmem:[#allocation2 + $0x90] sm:$0xff] %v1625_v32  ;;  %436 = vst [vmem:[#allocation2 + $0x98] sm:$0xff] %v1625_v32 }
  0x40   : > { %437 = vst [vmem:[#allocation2 + $0xa0] sm:$0xff] %v1625_v32  ;;  %438 = vst [vmem:[#allocation2 + $0xa8] sm:$0xff] %v1625_v32 }
  0x41   : > { %439 = vst [vmem:[#allocation2 + $0xb0] sm:$0xff] %v1625_v32  ;;  %440 = vst [vmem:[#allocation2 + $0xb8] sm:$0xff] %v1625_v32 }
  0x42   : > { %441 = vst [vmem:[#allocation2 + $0xc0] sm:$0xff] %v1625_v32  ;;  %442 = vst [vmem:[#allocation2 + $0xc8] sm:$0xff] %v1625_v32 }
  0x43   : > { %443 = vst [vmem:[#allocation2 + $0xd0] sm:$0xff] %v1625_v32  ;;  %444 = vst [vmem:[#allocation2 + $0xd8] sm:$0xff] %v1625_v32 }
  0x44   : > { %445 = vst [vmem:[#allocation2 + $0xe0] sm:$0xff] %v1625_v32  ;;  %446 = vst [vmem:[#allocation2 + $0xe8] sm:$0xff] %v1625_v32 }
  0x45   : > { %447 = vst [vmem:[#allocation2 + $0xf0] sm:$0xff] %v1625_v32  ;;  %448 = vst [vmem:[#allocation2 + $0xf8] sm:$0xff] %v1625_v32 }
  0x46 PF: > { %v1505_v33 = vld [vmem:[%s1782_s26 + $0x40] sm:$0xff]   ;;  %v1507_v35 = vld [vmem:[%s1782_s26 + $0x48] sm:$0xff]   ;;  %v1509_v37 = vld [vmem:[%s1782_s26 + $0x50] sm:$0xff]   ;;  %p1315_p13 = scmp.ne.s32.totalorder %s1607_s14, 1 }
  0x47   : > { %v1506_v34 = vld [vmem:[%s1782_s26] sm:$0xff]   ;;  %1320 = vmatprep.subr.bf16.mxu0 %v1505_v33  ;;  %1432 = vmatprep.subr.bf16.mxu1 %v1505_v33  ;;  %v1508_v36 = vld [vmem:[%s1782_s26 + $0x8] sm:$0xff]   ;;  %v1510_v38 = vld [vmem:[%s1782_s26 + $0x10] sm:$0xff]  }
  0x48   : > { %1321 = vmatpush3.bf16.msra.mxu0 %v1506_v34  ;;  %1440 = vmatpush3.bf16.msra.mxu1 %v1506_v34  ;;  %v1511_v39 = vld [vmem:[%s1782_s26 + $0x58] sm:$0xff]   ;;  %v1513_v41 = vld [vmem:[%s1782_s26 + $0x60] sm:$0xff]   ;;  %v1515_v43 = vld [vmem:[%s1782_s26 + $0x68] sm:$0xff]  }
  0x49   : > { %1322 = vmatprep.subr.bf16.mxu0 %v1507_v35  ;;  %1433 = vmatprep.subr.bf16.mxu1 %v1507_v35  ;;  %v1512_v40 = vld [vmem:[%s1782_s26 + $0x18] sm:$0xff]   ;;  %v1514_v42 = vld [vmem:[%s1782_s26 + $0x20] sm:$0xff]   ;;  %v1516_v46 = vld [vmem:[%s1782_s26 + $0x28] sm:$0xff]  }
  0x4a   : > { %v1523_v44 = vld [vmem:[%s1789_s12 + $0x4] ss:$8 sps:$4 sm:$0xff]   ;;  %v1517_v47 = vld [vmem:[%s1782_s26 + $0x70] sm:$0xff]   ;;  %v1519_v49 = vld [vmem:[%s1782_s26 + $0x78] sm:$0xff]  }
  0x4b   : > { %v1526_v45 = vld [vmem:[%s1789_s12 + $0x84] ss:$8 sps:$4 sm:$0xff]   ;;  %833 = vmatprep.mubr.bf16.mxu0 %v1523_v44  ;;  %v1518_v48 = vld [vmem:[%s1782_s26 + $0x30] sm:$0xff]   ;;  %v1520_v50 = vld [vmem:[%s1782_s26 + $0x38] sm:$0xff]  }
  0x4c   : > { %1323 = vmatpush3.bf16.msra.mxu0 %v1508_v36  ;;  %1441 = vmatpush3.bf16.msra.mxu1 %v1508_v36  ;;  %v1521_v51 = vld [vmem:[%s1789_s12] ss:$8 sps:$4 sm:$0xff]   ;;  %v1527_v53 = vld [vmem:[%s1789_s12 + $0x14] ss:$8 sps:$4 sm:$0xff]   ;;  %v1531_v55 = vld [vmem:[%s1789_s12 + $0x10] ss:$8 sps:$4 sm:$0xff]  }
  0x4d   : > { %1324 = vmatprep.subr.bf16.mxu0 %v1509_v37  ;;  %1434 = vmatprep.subr.bf16.mxu1 %v1509_v37  ;;  %v1524_v52 = vld [vmem:[%s1789_s12 + $0x80] ss:$8 sps:$4 sm:$0xff]   ;;  %v1529_v54 = vld [vmem:[%s1789_s12 + $0x94] ss:$8 sps:$4 sm:$0xff]   ;;  %v1532_v56 = vld [vmem:[%s1789_s12 + $0x90] ss:$8 sps:$4 sm:$0xff]  }
  0x4e   : > { %897 = vmatprep.mubr.bf16.mxu1 %v1526_v45  ;;  %v1533_v57 = vld [vmem:[%s1789_s12 + $0x24] ss:$8 sps:$4 sm:$0xff]   ;;  %v1537_v59 = vld [vmem:[%s1789_s12 + $0x20] ss:$8 sps:$4 sm:$0xff]   ;;  %v1539_v61 = vld [vmem:[%s1789_s12 + $0x34] ss:$8 sps:$4 sm:$0xff]  }
  0x4f   : > { %v1535_v58 = vld [vmem:[%s1789_s12 + $0xa4] ss:$8 sps:$4 sm:$0xff]   ;;  %v1538_v60 = vld [vmem:[%s1789_s12 + $0xa0] ss:$8 sps:$4 sm:$0xff]   ;;  %v1541_v62 = vld [vmem:[%s1789_s12 + $0xb4] ss:$8 sps:$4 sm:$0xff]  }
  0x50   : > { %1325 = vmatpush3.bf16.msra.mxu0 %v1510_v38  ;;  %1442 = vmatpush3.bf16.msra.mxu1 %v1510_v38  ;;  %v1543_v63 = vld [vmem:[%s1789_s12 + $0x30] ss:$8 sps:$4 sm:$0xff]   ;;  %v1545_v1 = vld [vmem:[%s1789_s12 + $0x44] ss:$8 sps:$4 sm:$0xff]   ;;  %v1549_v3 = vld [vmem:[%s1789_s12 + $0x40] ss:$8 sps:$4 sm:$0xff]  }
  0x51   : > { %1326 = vmatprep.subr.bf16.mxu0 %v1511_v39  ;;  %1435 = vmatprep.subr.bf16.mxu1 %v1511_v39  ;;  %v1544_v0 = vld [vmem:[%s1789_s12 + $0xb0] ss:$8 sps:$4 sm:$0xff]   ;;  %v1547_v2 = vld [vmem:[%s1789_s12 + $0xc4] ss:$8 sps:$4 sm:$0xff]   ;;  %v1550_v4 = vld [vmem:[%s1789_s12 + $0xc0] ss:$8 sps:$4 sm:$0xff]  }
  0x52   : > { %v1551_v5 = vld [vmem:[%s1789_s12 + $0x54] ss:$8 sps:$4 sm:$0xff]   ;;  %v1555_v7 = vld [vmem:[%s1789_s12 + $0x50] ss:$8 sps:$4 sm:$0xff]   ;;  %v1557_v9 = vld [vmem:[%s1789_s12 + $0x64] ss:$8 sps:$4 sm:$0xff]  }
  0x53   : > { %v1553_v6 = vld [vmem:[%s1789_s12 + $0xd4] ss:$8 sps:$4 sm:$0xff]   ;;  %v1556_v8 = vld [vmem:[%s1789_s12 + $0xd0] ss:$8 sps:$4 sm:$0xff]   ;;  %v1559_v10 = vld [vmem:[%s1789_s12 + $0xe4] ss:$8 sps:$4 sm:$0xff]  }
  0x54   : > { %1327 = vmatpush3.bf16.msra.mxu0 %v1512_v40  ;;  %1443 = vmatpush3.bf16.msra.mxu1 %v1512_v40  ;;  %v1561_v11 = vld [vmem:[%s1789_s12 + $0x60] ss:$8 sps:$4 sm:$0xff]   ;;  %v1563_v13 = vld [vmem:[%s1789_s12 + $0x74] ss:$8 sps:$4 sm:$0xff]   ;;  %v1567_v15 = vld [vmem:[%s1789_s12 + $0x70] ss:$8 sps:$4 sm:$0xff]  }
  0x55   : > { %1328 = vmatprep.subr.bf16.mxu0 %v1513_v41  ;;  %1436 = vmatprep.subr.bf16.mxu1 %v1513_v41  ;;  %v1562_v12 = vld [vmem:[%s1789_s12 + $0xe0] ss:$8 sps:$4 sm:$0xff]   ;;  %v1565_v14 = vld [vmem:[%s1789_s12 + $0xf4] ss:$8 sps:$4 sm:$0xff]   ;;  %v1568_v16 = vld [vmem:[%s1789_s12 + $0xf0] ss:$8 sps:$4 sm:$0xff]  }
  0x56   : > { %v449_v19 = vld [vmem:[#allocation2] sm:$0xff]  ;;  %v450_v27 = vld [vmem:[#allocation2 + $0x8] sm:$0xff]  ;;  %v451_v39 = vld [vmem:[#allocation2 + $0x10] sm:$0xff] }
  0x57   : > { %v465_v21 = vld [vmem:[#allocation2 + $0x80] sm:$0xff]  ;;  %v466_v29 = vld [vmem:[#allocation2 + $0x88] sm:$0xff]  ;;  %v467_v41 = vld [vmem:[#allocation2 + $0x90] sm:$0xff] }
  0x58   : > { %1329 = vmatpush3.bf16.msra.mxu0 %v1514_v42  ;;  %1444 = vmatpush3.bf16.msra.mxu1 %v1514_v42 }
  0x59   : > { %1330 = vmatprep.subr.bf16.mxu0 %v1515_v43  ;;  %1437 = vmatprep.subr.bf16.mxu1 %v1515_v43 }
  0x5c   : > { %1331 = vmatpush3.bf16.msra.mxu0 %v1516_v46  ;;  %1445 = vmatpush3.bf16.msra.mxu1 %v1516_v46 }
  0x5d   : > { %1332 = vmatprep.subr.bf16.mxu0 %v1517_v47  ;;  %1438 = vmatprep.subr.bf16.mxu1 %v1517_v47  ;;  %v452_v47 = vld [vmem:[#allocation2 + $0x18] sm:$0xff] }
  0x60   : > { %1333 = vmatpush3.bf16.msra.mxu0 %v1518_v48  ;;  %1446 = vmatpush3.bf16.msra.mxu1 %v1518_v48 }
  0x61   : > { %1334 = vmatprep.subr.bf16.mxu0 %v1519_v49  ;;  %1439 = vmatprep.subr.bf16.mxu1 %v1519_v49  ;;  %v468_v49 = vld [vmem:[#allocation2 + $0x98] sm:$0xff] }
  0x64   : > { %1335 = vmatpush3.bf16.msra.mxu0 %v1520_v50  ;;  %1447 = vmatpush3.bf16.msra.mxu1 %v1520_v50 }
  0x67   : > { %834 = vmatmul.mubr.bf16.vlgmr.msra.gmra.mrb[0].mxu0 %v1521_v51  ;;  %898 = vmatmul.mubr.bf16.vlgmr.msra.gmra.mrb[0].mxu1 %v1524_v52 }
  0x68   : > { %841 = vmatprep.mubr.bf16.mxu0 %v1527_v53  ;;  %905 = vmatprep.mubr.bf16.mxu1 %v1529_v54 }
  0x6f   : > { %842 = vmatmul.mubr.bf16.gmra.mrb[4].mxu0 %v1531_v55  ;;  %906 = vmatmul.mubr.bf16.gmra.mrb[4].mxu1 %v1532_v56 }
  0x70   : > { %849 = vmatprep.mubr.bf16.mxu0 %v1533_v57  ;;  %913 = vmatprep.mubr.bf16.mxu1 %v1535_v58 }
  0x77   : > { %850 = vmatmul.mubr.bf16.gmra.mrb[8].mxu0 %v1537_v59  ;;  %914 = vmatmul.mubr.bf16.gmra.mrb[8].mxu1 %v1538_v60  ;;  %v453_v59 = vld [vmem:[#allocation2 + $0x20] sm:$0xff] }
  0x78   : > { %857 = vmatprep.mubr.bf16.mxu0 %v1539_v61  ;;  %921 = vmatprep.mubr.bf16.mxu1 %v1541_v62  ;;  %v469_v61 = vld [vmem:[#allocation2 + $0xa0] sm:$0xff] }
  0x7f   : > { %858 = vmatmul.mubr.bf16.gmra.mrb[12].mxu0 %v1543_v63  ;;  %922 = vmatmul.mubr.bf16.gmra.mrb[12].mxu1 %v1544_v0 }
  0x80   : > { %865 = vmatprep.mubr.bf16.mxu0 %v1545_v1  ;;  %929 = vmatprep.mubr.bf16.mxu1 %v1547_v2 }
  0x87   : > { %866 = vmatmul.mubr.bf16.gmra.mrb[16].mxu0 %v1549_v3  ;;  %930 = vmatmul.mubr.bf16.gmra.mrb[16].mxu1 %v1550_v4  ;;  %v454_v3 = vld [vmem:[#allocation2 + $0x28] sm:$0xff] }
  0x88   : > { %873 = vmatprep.mubr.bf16.mxu0 %v1551_v5  ;;  %937 = vmatprep.mubr.bf16.mxu1 %v1553_v6  ;;  %v470_v5 = vld [vmem:[#allocation2 + $0xa8] sm:$0xff] }
  0x8f   : > { %874 = vmatmul.mubr.bf16.gmra.mrb[20].mxu0 %v1555_v7  ;;  %938 = vmatmul.mubr.bf16.gmra.mrb[20].mxu1 %v1556_v8 }
  0x90   : > { %881 = vmatprep.mubr.bf16.mxu0 %v1557_v9  ;;  %945 = vmatprep.mubr.bf16.mxu1 %v1559_v10 }
  0x97   : > { %882 = vmatmul.mubr.bf16.gmra.mrb[24].mxu0 %v1561_v11  ;;  %946 = vmatmul.mubr.bf16.gmra.mrb[24].mxu1 %v1562_v12 }
  0x98   : > { %889 = vmatprep.mubr.bf16.mxu0 %v1563_v13  ;;  %953 = vmatprep.mubr.bf16.mxu1 %v1565_v14 }
  0x9f   : > { %890 = vmatmul.mubr.bf16.gmra.mrb[28].mxu0 %v1567_v15  ;;  %954 = vmatmul.mubr.bf16.gmra.mrb[28].mxu1 %v1568_v16  ;;  %v455_v15 = vld [vmem:[#allocation2 + $0x30] sm:$0xff] }
 0x13a   : > { %v1336_v17 = vpop.f32.mrb[0].mxu0  ;;  %v1384_v18 = vpop.f32.mrb[0].mxu1 }
 0x13b   : > { %v1337_v20 = vpop.f32.mrb[1].mxu0  ;;  %v1385_v22 = vpop.f32.mrb[1].mxu1 }
 0x13c   : > { %v1338_v23 = vadd.f32 %v1337_v20, %v1336_v17  ;;  %v1386_v24 = vadd.f32 %v1385_v22, %v1384_v18  ;;  %v1339_v25 = vpop.f32.mrb[2].mxu0  ;;  %v1387_v26 = vpop.f32.mrb[2].mxu1  ;;  %v471_v17 = vld [vmem:[#allocation2 + $0xb0] sm:$0xff] }
 0x13d   : > { %v1340_v28 = vpop.f32.mrb[3].mxu0  ;;  %v1388_v30 = vpop.f32.mrb[3].mxu1 }
 0x13e   : > { %v962_v31 = vadd.f32 %v1338_v23, %v449_v19  ;;  %v978_v32 = vadd.f32 %v1386_v24, %v465_v21  ;;  %v1341_v33 = vadd.f32 %v1340_v28, %v1339_v25  ;;  %v1389_v34 = vadd.f32 %v1388_v30, %v1387_v26  ;;  %v456_v23 = vld [vmem:[#allocation2 + $0x38] sm:$0xff] }
 0x13f   : > { %v472_v25 = vld [vmem:[#allocation2 + $0xb8] sm:$0xff] }
 0x140   : > { %994 = vst [vmem:[#allocation2] sm:$0xff] %v962_v31  ;;  %1010 = vst [vmem:[#allocation2 + $0x80] sm:$0xff] %v978_v32  ;;  %v963_v35 = vadd.f32 %v1341_v33, %v450_v27  ;;  %v979_v36 = vadd.f32 %v1389_v34, %v466_v29 }
 0x142   : > { %995 = vst [vmem:[#allocation2 + $0x8] sm:$0xff] %v963_v35  ;;  %1011 = vst [vmem:[#allocation2 + $0x88] sm:$0xff] %v979_v36  ;;  %v1342_v37 = vpop.f32.mrb[4].mxu0  ;;  %v1390_v38 = vpop.f32.mrb[4].mxu1  ;;  %v457_v35 = vld [vmem:[#allocation2 + $0x40] sm:$0xff] }
 0x143   : > { %v1343_v40 = vpop.f32.mrb[5].mxu0  ;;  %v1391_v42 = vpop.f32.mrb[5].mxu1 }
 0x144   : > { %v1344_v43 = vadd.f32 %v1343_v40, %v1342_v37  ;;  %v1392_v44 = vadd.f32 %v1391_v42, %v1390_v38  ;;  %v1345_v45 = vpop.f32.mrb[6].mxu0  ;;  %v1393_v46 = vpop.f32.mrb[6].mxu1  ;;  %v473_v37 = vld [vmem:[#allocation2 + $0xc0] sm:$0xff] }
 0x145   : > { %v1346_v48 = vpop.f32.mrb[7].mxu0  ;;  %v1394_v50 = vpop.f32.mrb[7].mxu1 }
 0x146   : > { %v964_v51 = vadd.f32 %v1344_v43, %v451_v39  ;;  %v980_v52 = vadd.f32 %v1392_v44, %v467_v41  ;;  %v1347_v53 = vadd.f32 %v1346_v48, %v1345_v45  ;;  %v1395_v54 = vadd.f32 %v1394_v50, %v1393_v46  ;;  %v458_v43 = vld [vmem:[#allocation2 + $0x48] sm:$0xff] }
 0x147   : > { %v474_v45 = vld [vmem:[#allocation2 + $0xc8] sm:$0xff] }
 0x148   : > { %996 = vst [vmem:[#allocation2 + $0x10] sm:$0xff] %v964_v51  ;;  %1012 = vst [vmem:[#allocation2 + $0x90] sm:$0xff] %v980_v52  ;;  %v965_v55 = vadd.f32 %v1347_v53, %v452_v47  ;;  %v981_v56 = vadd.f32 %v1395_v54, %v468_v49 }
 0x14a   : > { %997 = vst [vmem:[#allocation2 + $0x18] sm:$0xff] %v965_v55  ;;  %1013 = vst [vmem:[#allocation2 + $0x98] sm:$0xff] %v981_v56  ;;  %v1348_v57 = vpop.f32.mrb[8].mxu0  ;;  %v1396_v58 = vpop.f32.mrb[8].mxu1  ;;  %v459_v55 = vld [vmem:[#allocation2 + $0x50] sm:$0xff] }
 0x14b   : > { %v1349_v60 = vpop.f32.mrb[9].mxu0  ;;  %v1397_v62 = vpop.f32.mrb[9].mxu1 }
 0x14c   : > { %v1350_v63 = vadd.f32 %v1349_v60, %v1348_v57  ;;  %v1398_v0 = vadd.f32 %v1397_v62, %v1396_v58  ;;  %v1351_v1 = vpop.f32.mrb[10].mxu0  ;;  %v1399_v2 = vpop.f32.mrb[10].mxu1  ;;  %v475_v57 = vld [vmem:[#allocation2 + $0xd0] sm:$0xff] }
 0x14d   : > { %v1352_v4 = vpop.f32.mrb[11].mxu0  ;;  %v1400_v6 = vpop.f32.mrb[11].mxu1 }
 0x14e   : > { %v966_v7 = vadd.f32 %v1350_v63, %v453_v59  ;;  %v982_v8 = vadd.f32 %v1398_v0, %v469_v61  ;;  %v1353_v9 = vadd.f32 %v1352_v4, %v1351_v1  ;;  %v1401_v10 = vadd.f32 %v1400_v6, %v1399_v2  ;;  %v460_v63 = vld [vmem:[#allocation2 + $0x58] sm:$0xff] }
 0x14f   : > { %v476_v1 = vld [vmem:[#allocation2 + $0xd8] sm:$0xff] }
 0x150   : > { %998 = vst [vmem:[#allocation2 + $0x20] sm:$0xff] %v966_v7  ;;  %1014 = vst [vmem:[#allocation2 + $0xa0] sm:$0xff] %v982_v8  ;;  %v967_v11 = vadd.f32 %v1353_v9, %v454_v3  ;;  %v983_v12 = vadd.f32 %v1401_v10, %v470_v5 }
 0x152   : > { %999 = vst [vmem:[#allocation2 + $0x28] sm:$0xff] %v967_v11  ;;  %1015 = vst [vmem:[#allocation2 + $0xa8] sm:$0xff] %v983_v12  ;;  %v1354_v13 = vpop.f32.mrb[12].mxu0  ;;  %v1402_v14 = vpop.f32.mrb[12].mxu1  ;;  %v461_v11 = vld [vmem:[#allocation2 + $0x60] sm:$0xff] }
 0x153   : > { %v1355_v16 = vpop.f32.mrb[13].mxu0  ;;  %v1403_v18 = vpop.f32.mrb[13].mxu1 }
 0x154   : > { %v1356_v19 = vadd.f32 %v1355_v16, %v1354_v13  ;;  %v1404_v20 = vadd.f32 %v1403_v18, %v1402_v14  ;;  %v1357_v21 = vpop.f32.mrb[14].mxu0  ;;  %v1405_v22 = vpop.f32.mrb[14].mxu1  ;;  %v477_v13 = vld [vmem:[#allocation2 + $0xe0] sm:$0xff] }
 0x155   : > { %v1358_v24 = vpop.f32.mrb[15].mxu0  ;;  %v1406_v26 = vpop.f32.mrb[15].mxu1 }
 0x156   : > { %v968_v27 = vadd.f32 %v1356_v19, %v455_v15  ;;  %v984_v28 = vadd.f32 %v1404_v20, %v471_v17  ;;  %v1359_v29 = vadd.f32 %v1358_v24, %v1357_v21  ;;  %v1407_v30 = vadd.f32 %v1406_v26, %v1405_v22  ;;  %v462_v19 = vld [vmem:[#allocation2 + $0x68] sm:$0xff] }
 0x157   : > { %v478_v21 = vld [vmem:[#allocation2 + $0xe8] sm:$0xff] }
 0x158   : > { %1000 = vst [vmem:[#allocation2 + $0x30] sm:$0xff] %v968_v27  ;;  %1016 = vst [vmem:[#allocation2 + $0xb0] sm:$0xff] %v984_v28  ;;  %v969_v31 = vadd.f32 %v1359_v29, %v456_v23  ;;  %v985_v32 = vadd.f32 %v1407_v30, %v472_v25 }
 0x15a   : > { %1001 = vst [vmem:[#allocation2 + $0x38] sm:$0xff] %v969_v31  ;;  %1017 = vst [vmem:[#allocation2 + $0xb8] sm:$0xff] %v985_v32  ;;  %v1360_v33 = vpop.f32.mrb[16].mxu0  ;;  %v1408_v34 = vpop.f32.mrb[16].mxu1  ;;  %v463_v31 = vld [vmem:[#allocation2 + $0x70] sm:$0xff] }
 0x15b   : > { %v1361_v36 = vpop.f32.mrb[17].mxu0  ;;  %v1409_v38 = vpop.f32.mrb[17].mxu1 }
 0x15c   : > { %v1362_v39 = vadd.f32 %v1361_v36, %v1360_v33  ;;  %v1410_v40 = vadd.f32 %v1409_v38, %v1408_v34  ;;  %v1363_v41 = vpop.f32.mrb[18].mxu0  ;;  %v1411_v42 = vpop.f32.mrb[18].mxu1  ;;  %v479_v33 = vld [vmem:[#allocation2 + $0xf0] sm:$0xff] }
 0x15d   : > { %v1364_v44 = vpop.f32.mrb[19].mxu0  ;;  %v1412_v46 = vpop.f32.mrb[19].mxu1 }
 0x15e   : > { %v970_v47 = vadd.f32 %v1362_v39, %v457_v35  ;;  %v986_v48 = vadd.f32 %v1410_v40, %v473_v37  ;;  %v1365_v49 = vadd.f32 %v1364_v44, %v1363_v41  ;;  %v1413_v50 = vadd.f32 %v1412_v46, %v1411_v42  ;;  %v464_v39 = vld [vmem:[#allocation2 + $0x78] sm:$0xff] }
 0x15f   : > { %v480_v41 = vld [vmem:[#allocation2 + $0xf8] sm:$0xff] }
 0x160   : > { %1002 = vst [vmem:[#allocation2 + $0x40] sm:$0xff] %v970_v47  ;;  %1018 = vst [vmem:[#allocation2 + $0xc0] sm:$0xff] %v986_v48  ;;  %v971_v51 = vadd.f32 %v1365_v49, %v458_v43  ;;  %v987_v52 = vadd.f32 %v1413_v50, %v474_v45  ;;  %v1030_v49 = vld [vmem:[#allocation2] sm:$0xff] (!%p1315_p13) }
 0x161   : > { %v1844_v50 = vld [vmem:[%s1933_s2] ss:$0 sm:$0xff] (!%p1315_p13) }
 0x162   : > { %1003 = vst [vmem:[#allocation2 + $0x48] sm:$0xff] %v971_v51  ;;  %1019 = vst [vmem:[#allocation2 + $0xc8] sm:$0xff] %v987_v52  ;;  %v1366_v53 = vpop.f32.mrb[20].mxu0  ;;  %v1414_v54 = vpop.f32.mrb[20].mxu1  ;;  %v1031_v51 = vld [vmem:[#allocation2 + $0x8] sm:$0xff] (!%p1315_p13)  ;;  %v1069_v52 = vadd.f32 (!%p1315_p13), %v1844_v50, %v1030_v49 }
 0x163   : > { %v1367_v56 = vpop.f32.mrb[21].mxu0  ;;  %v1415_v58 = vpop.f32.mrb[21].mxu1 }
 0x164   : > { %v1368_v59 = vadd.f32 %v1367_v56, %v1366_v53  ;;  %v1416_v60 = vadd.f32 %v1415_v58, %v1414_v54  ;;  %v1369_v61 = vpop.f32.mrb[22].mxu0  ;;  %v1417_v62 = vpop.f32.mrb[22].mxu1  ;;  %v1070_v53 = vadd.f32 (!%p1315_p13), %v1844_v50, %v1031_v51  ;;  %v1032_v54 = vld [vmem:[#allocation2 + $0x10] sm:$0xff] (!%p1315_p13)  ;;  %v1034_v56 = vld [vmem:[#allocation2 + $0x20] sm:$0xff] (!%p1315_p13)  ;;  %1101 = vst [vmem:[%s1787_s30] sm:$0xff] (!%p1315_p13), %v1069_v52 }
 0x165   : > { %v1370_v0 = vpop.f32.mrb[23].mxu0  ;;  %v1418_v2 = vpop.f32.mrb[23].mxu1 }
 0x166   : > { %v972_v3 = vadd.f32 %v1368_v59, %v459_v55  ;;  %v988_v4 = vadd.f32 %v1416_v60, %v475_v57  ;;  %v1371_v5 = vadd.f32 %v1370_v0, %v1369_v61  ;;  %v1419_v6 = vadd.f32 %v1418_v2, %v1417_v62  ;;  %v1033_v55 = vld [vmem:[#allocation2 + $0x18] sm:$0xff] (!%p1315_p13)  ;;  %v1035_v60 = vld [vmem:[#allocation2 + $0x28] sm:$0xff] (!%p1315_p13)  ;;  %v1036_v61 = vld [vmem:[#allocation2 + $0x30] sm:$0xff] (!%p1315_p13)  ;;  %1102 = vst [vmem:[%s1787_s30 + $0x8] sm:$0xff] (!%p1315_p13), %v1070_v53 }
 0x167   : > { %v1071_v57 = vadd.f32 (!%p1315_p13), %v1844_v50, %v1032_v54  ;;  %v1072_v58 = vadd.f32 (!%p1315_p13), %v1844_v50, %v1033_v55  ;;  %v1073_v59 = vadd.f32 (!%p1315_p13), %v1844_v50, %v1034_v56  ;;  %v1037_v62 = vld [vmem:[#allocation2 + $0x38] sm:$0xff] (!%p1315_p13)  ;;  %v1075_v0 = vadd.f32 (!%p1315_p13), %v1844_v50, %v1036_v61  ;;  %v1038_v2 = vld [vmem:[#allocation2 + $0x40] sm:$0xff] (!%p1315_p13) }
 0x168   : > { %1004 = vst [vmem:[#allocation2 + $0x50] sm:$0xff] %v972_v3  ;;  %1020 = vst [vmem:[#allocation2 + $0xd0] sm:$0xff] %v988_v4  ;;  %v973_v7 = vadd.f32 %v1371_v5, %v460_v63  ;;  %v989_v8 = vadd.f32 %v1419_v6, %v476_v1  ;;  %v1074_v63 = vadd.f32 (!%p1315_p13), %v1844_v50, %v1035_v60 }
 0x169   : > { %v1076_v1 = vadd.f32 (!%p1315_p13), %v1844_v50, %v1037_v62  ;;  %v1039_v3 = vld [vmem:[#allocation2 + $0x48] sm:$0xff] (!%p1315_p13)  ;;  %1103 = vst [vmem:[%s1787_s30 + $0x10] sm:$0xff] (!%p1315_p13), %v1071_v57  ;;  %1104 = vst [vmem:[%s1787_s30 + $0x18] sm:$0xff] (!%p1315_p13), %v1072_v58  ;;  %v1077_v5 = vadd.f32 (!%p1315_p13), %v1844_v50, %v1038_v2 }
 0x16a   : > { %1005 = vst [vmem:[#allocation2 + $0x58] sm:$0xff] %v973_v7  ;;  %1021 = vst [vmem:[#allocation2 + $0xd8] sm:$0xff] %v989_v8  ;;  %v1372_v9 = vpop.f32.mrb[24].mxu0  ;;  %v1420_v10 = vpop.f32.mrb[24].mxu1  ;;  %v1078_v6 = vadd.f32 (!%p1315_p13), %v1844_v50, %v1039_v3 }
 0x16b   : > { %v1373_v12 = vpop.f32.mrb[25].mxu0  ;;  %v1421_v14 = vpop.f32.mrb[25].mxu1  ;;  %1105 = vst [vmem:[%s1787_s30 + $0x20] sm:$0xff] (!%p1315_p13), %v1073_v59  ;;  %1106 = vst [vmem:[%s1787_s30 + $0x28] sm:$0xff] (!%p1315_p13), %v1074_v63 }
 0x16c   : > { %v1374_v15 = vadd.f32 %v1373_v12, %v1372_v9  ;;  %v1422_v16 = vadd.f32 %v1421_v14, %v1420_v10  ;;  %v1375_v17 = vpop.f32.mrb[26].mxu0  ;;  %v1423_v18 = vpop.f32.mrb[26].mxu1  ;;  %1107 = vst [vmem:[%s1787_s30 + $0x30] sm:$0xff] (!%p1315_p13), %v1075_v0  ;;  %1108 = vst [vmem:[%s1787_s30 + $0x38] sm:$0xff] (!%p1315_p13), %v1076_v1 }
 0x16d   : > { %v1376_v20 = vpop.f32.mrb[27].mxu0  ;;  %v1424_v22 = vpop.f32.mrb[27].mxu1  ;;  %1109 = vst [vmem:[%s1787_s30 + $0x40] sm:$0xff] (!%p1315_p13), %v1077_v5  ;;  %1110 = vst [vmem:[%s1787_s30 + $0x48] sm:$0xff] (!%p1315_p13), %v1078_v6 }
 0x16e   : > { %v974_v23 = vadd.f32 %v1374_v15, %v461_v11  ;;  %v990_v24 = vadd.f32 %v1422_v16, %v477_v13  ;;  %v1377_v25 = vadd.f32 %v1376_v20, %v1375_v17  ;;  %v1425_v26 = vadd.f32 %v1424_v22, %v1423_v18  ;;  %v1046_v16 = vld [vmem:[#allocation2 + $0x80] sm:$0xff] (!%p1315_p13)  ;;  %v1047_v20 = vld [vmem:[#allocation2 + $0x88] sm:$0xff] (!%p1315_p13)  ;;  %v1049_v22 = vld [vmem:[#allocation2 + $0x98] sm:$0xff] (!%p1315_p13) }
 0x16f   : > { %v1040_v4 = vld [vmem:[#allocation2 + $0x50] sm:$0xff] (!%p1315_p13) }
 0x170   : > { %1006 = vst [vmem:[#allocation2 + $0x60] sm:$0xff] %v974_v23  ;;  %1022 = vst [vmem:[#allocation2 + $0xe0] sm:$0xff] %v990_v24  ;;  %v975_v27 = vadd.f32 %v1377_v25, %v462_v19  ;;  %v991_v28 = vadd.f32 %v1425_v26, %v478_v21  ;;  %v1079_v7 = vadd.f32 (!%p1315_p13), %v1844_v50, %v1040_v4  ;;  %v1048_v21 = vld [vmem:[#allocation2 + $0x90] sm:$0xff] (!%p1315_p13)  ;;  %v1050_v26 = vld [vmem:[#allocation2 + $0xa0] sm:$0xff] (!%p1315_p13) }
 0x171   : > { %v1041_v8 = vld [vmem:[#allocation2 + $0x58] sm:$0xff] (!%p1315_p13)  ;;  %v1085_v19 = vadd.f32 (!%p1315_p13), %v1844_v50, %v1046_v16  ;;  %v1086_v23 = vadd.f32 (!%p1315_p13), %v1844_v50, %v1047_v20  ;;  %v1087_v24 = vadd.f32 (!%p1315_p13), %v1844_v50, %v1048_v21  ;;  %v1088_v25 = vadd.f32 (!%p1315_p13), %v1844_v50, %v1049_v22 }
 0x172   : > { %1007 = vst [vmem:[#allocation2 + $0x68] sm:$0xff] %v975_v27  ;;  %1023 = vst [vmem:[#allocation2 + $0xe8] sm:$0xff] %v991_v28  ;;  %v1378_v29 = vpop.f32.mrb[28].mxu0  ;;  %v1426_v30 = vpop.f32.mrb[28].mxu1  ;;  %v1080_v11 = vadd.f32 (!%p1315_p13), %v1844_v50, %v1041_v8  ;;  %v1051_v27 = vld [vmem:[#allocation2 + $0xa8] sm:$0xff] (!%p1315_p13)  ;;  %v1052_v28 = vld [vmem:[#allocation2 + $0xb0] sm:$0xff] (!%p1315_p13) }
 0x173   : > { %v1379_v32 = vpop.f32.mrb[29].mxu0  ;;  %v1427_v34 = vpop.f32.mrb[29].mxu1  ;;  %1111 = vst [vmem:[%s1787_s30 + $0x50] sm:$0xff] (!%p1315_p13), %v1079_v7  ;;  %1117 = vst [vmem:[%s1787_s30 + $0x80] sm:$0xff] (!%p1315_p13), %v1085_v19 }
 0x174   : > { %v1380_v35 = vadd.f32 %v1379_v32, %v1378_v29  ;;  %v1428_v36 = vadd.f32 %v1427_v34, %v1426_v30  ;;  %v1381_v37 = vpop.f32.mrb[30].mxu0  ;;  %v1429_v38 = vpop.f32.mrb[30].mxu1  ;;  %1029 = sbr.rel (%p1315_p13) target bundleno = 390 (0x186), region = 78  ;;  %1112 = vst [vmem:[%s1787_s30 + $0x58] sm:$0xff] (!%p1315_p13), %v1080_v11  ;;  %v1089_v29 = vadd.f32 (!%p1315_p13), %v1844_v50, %v1050_v26  ;;  %v1090_v30 = vadd.f32 (!%p1315_p13), %v1844_v50, %v1051_v27  ;;  %v1053_v32 = vld [vmem:[#allocation2 + $0xb8] sm:$0xff] (!%p1315_p13)  ;;  %v1055_v34 = vld [vmem:[#allocation2 + $0xc8] sm:$0xff] (!%p1315_p13) }
 0x175   : > { %v1382_v40 = vpop.f32.mrb[31].mxu0  ;;  %v1430_v42 = vpop.f32.mrb[31].mxu1  ;;  %1118 = vst [vmem:[%s1787_s30 + $0x88] sm:$0xff] (!%p1315_p13), %v1086_v23  ;;  %1119 = vst [vmem:[%s1787_s30 + $0x90] sm:$0xff] (!%p1315_p13), %v1087_v24 }
 0x176   : > { %v976_v43 = vadd.f32 %v1380_v35, %v463_v31  ;;  %v992_v44 = vadd.f32 %v1428_v36, %v479_v33  ;;  %v1383_v45 = vadd.f32 %v1382_v40, %v1381_v37  ;;  %v1431_v46 = vadd.f32 %v1430_v42, %v1429_v38  ;;  %v1054_v33 = vld [vmem:[#allocation2 + $0xc0] sm:$0xff] (!%p1315_p13)  ;;  %1120 = vst [vmem:[%s1787_s30 + $0x98] sm:$0xff] (!%p1315_p13), %v1088_v25  ;;  %v1056_v38 = vld [vmem:[#allocation2 + $0xd0] sm:$0xff] (!%p1315_p13) }
 0x177   : > { %v1042_v9 = vld [vmem:[#allocation2 + $0x60] sm:$0xff] (!%p1315_p13)  ;;  %v1091_v31 = vadd.f32 (!%p1315_p13), %v1844_v50, %v1052_v28  ;;  %v1092_v35 = vadd.f32 (!%p1315_p13), %v1844_v50, %v1053_v32  ;;  %v1093_v36 = vadd.f32 (!%p1315_p13), %v1844_v50, %v1054_v33  ;;  %v1094_v37 = vadd.f32 (!%p1315_p13), %v1844_v50, %v1055_v34  ;;  %1121 = vst [vmem:[%s1787_s30 + $0xa0] sm:$0xff] (!%p1315_p13), %v1089_v29 }
 0x178   : > { %1008 = vst [vmem:[#allocation2 + $0x70] sm:$0xff] %v976_v43  ;;  %1024 = vst [vmem:[#allocation2 + $0xf0] sm:$0xff] %v992_v44  ;;  %v977_v47 = vadd.f32 %v1383_v45, %v464_v39  ;;  %v993_v48 = vadd.f32 %v1431_v46, %v480_v41  ;;  %v1081_v12 = vadd.f32 (!%p1315_p13), %v1844_v50, %v1042_v9  ;;  %v1057_v39 = vld [vmem:[#allocation2 + $0xd8] sm:$0xff] (!%p1315_p13)  ;;  %v1058_v40 = vld [vmem:[#allocation2 + $0xe0] sm:$0xff] (!%p1315_p13) }
 0x179   : > { %v1043_v10 = vld [vmem:[#allocation2 + $0x68] sm:$0xff] (!%p1315_p13)  ;;  %1122 = vst [vmem:[%s1787_s30 + $0xa8] sm:$0xff] (!%p1315_p13), %v1090_v30  ;;  %1123 = vst [vmem:[%s1787_s30 + $0xb0] sm:$0xff] (!%p1315_p13), %v1091_v31  ;;  %v1095_v41 = vadd.f32 (!%p1315_p13), %v1844_v50, %v1056_v38  ;;  %v1096_v42 = vadd.f32 (!%p1315_p13), %v1844_v50, %v1057_v39  ;;  %v1097_v43 = vadd.f32 (!%p1315_p13), %v1844_v50, %v1058_v40 }
 0x17a   : > { %1009 = vst [vmem:[#allocation2 + $0x78] sm:$0xff] %v977_v47  ;;  %1025 = vst [vmem:[#allocation2 + $0xf8] sm:$0xff] %v993_v48  ;;  %v1082_v13 = vadd.f32 (!%p1315_p13), %v1844_v50, %v1043_v10  ;;  %v1059_v44 = vld [vmem:[#allocation2 + $0xe8] sm:$0xff] (!%p1315_p13) }
 0x17b   : > { %1113 = vst [vmem:[%s1787_s30 + $0x60] sm:$0xff] %v1081_v12  ;;  %1124 = vst [vmem:[%s1787_s30 + $0xb8] sm:$0xff] %v1092_v35  ;;  %v1098_v47 = vadd.f32 %v1844_v50, %v1059_v44 }
 0x17c   : > { %1114 = vst [vmem:[%s1787_s30 + $0x68] sm:$0xff] %v1082_v13  ;;  %1125 = vst [vmem:[%s1787_s30 + $0xc0] sm:$0xff] %v1093_v36 }
 0x17d   : > { %1126 = vst [vmem:[%s1787_s30 + $0xc8] sm:$0xff] %v1094_v37  ;;  %1127 = vst [vmem:[%s1787_s30 + $0xd0] sm:$0xff] %v1095_v41 }
 0x17e   : > { %1128 = vst [vmem:[%s1787_s30 + $0xd8] sm:$0xff] %v1096_v42  ;;  %1129 = vst [vmem:[%s1787_s30 + $0xe0] sm:$0xff] %v1097_v43 }
 0x17f   : > { %v1044_v14 = vld [vmem:[#allocation2 + $0x70] sm:$0xff]  ;;  %1130 = vst [vmem:[%s1787_s30 + $0xe8] sm:$0xff] %v1098_v47 }
 0x180   : > { %v1083_v17 = vadd.f32 %v1844_v50, %v1044_v14  ;;  %v1060_v45 = vld [vmem:[#allocation2 + $0xf0] sm:$0xff] }
 0x181   : > { %v1045_v15 = vld [vmem:[#allocation2 + $0x78] sm:$0xff]  ;;  %v1099_v48 = vadd.f32 %v1844_v50, %v1060_v45 }
 0x182   : > { %v1084_v18 = vadd.f32 %v1844_v50, %v1045_v15  ;;  %1115 = vst [vmem:[%s1787_s30 + $0x70] sm:$0xff] %v1083_v17  ;;  %v1061_v46 = vld [vmem:[#allocation2 + $0xf8] sm:$0xff] }
 0x183   : > { %v1100_v49 = vadd.f32 %v1844_v50, %v1061_v46  ;;  %1131 = vst [vmem:[%s1787_s30 + $0xf0] sm:$0xff] %v1099_v48 }
 0x184   : > { %1116 = vst [vmem:[%s1787_s30 + $0x78] sm:$0xff] %v1084_v18 }
 0x185   : > { %1132 = vst [vmem:[%s1787_s30 + $0xf8] sm:$0xff] %v1100_v49 }
 0x186 PF: > { %s13_s18 = sadd.s32 1, %s1623_s18   ;;  %s1935_s12 = smov %s1603_s13 }
 0x187   : > { %p10_p0 = scmp.ge.s32.totalorder %s13_s18, 6   ;;  %s1936_s13 = smov %s1697_s25 }
 0x188   : > { %s1937_s14 = smov %s1615_s16  ;;  %s1938_s15 = smov %s1619_s17 }
 0x189   : > { %s1939_s16 = smov %s1942_s19  ;;  %s1940_s17 = smov %s1946_s20 }
 0x18a   :  { %12 = sbr.rel (!%p10_p0) target bundleno = 4 (0x4), region = 119 }

</bundles_post_ra>
